<compile_context>
chip_gen: v5e
topology: v5e:2x2
jax: 0.10.0
libtpu: 0.0.40
codegen_flags: <defaults>
</compile_context>

<pallas_src>
import numpy as np
import jax
import jax.numpy as jnp
from jax.experimental import pallas as pl
from jax.experimental.pallas import tpu as pltpu


# ----------------------------------------------------------------------------
# Host-side (numpy) interpolation / folding matrices -- glue, built once.
# ----------------------------------------------------------------------------
def _linear_matrix(out_size, in_size):
    """PyTorch Upsample(mode='bilinear', align_corners=True) along one axis."""
    m = np.zeros((out_size, in_size), dtype=np.float64)
    scale = 0.0 if out_size == 1 else (in_size - 1) / (out_size - 1)
    for o in range(out_size):
        src = o * scale
        i0 = min(int(np.floor(src)), in_size - 1)
        t = src - i0
        i1 = min(i0 + 1, in_size - 1)
        m[o, i0] += 1.0 - t
        m[o, i1] += t
    return m.astype(np.float32)


def _cubic_w(x, A=-0.75):
    x = abs(x)
    if x <= 1.0:
        return (A + 2.0) * x**3 - (A + 3.0) * x**2 + 1.0
    if x < 2.0:
        return A * x**3 - 5.0 * A * x**2 + 8.0 * A * x - 4.0 * A
    return 0.0


def _cubic_matrix(out_size, in_size):
    """PyTorch F.interpolate(mode='bicubic', align_corners=True) along one axis."""
    m = np.zeros((out_size, in_size), dtype=np.float64)
    scale = 0.0 if out_size == 1 else (in_size - 1) / (out_size - 1)
    for o in range(out_size):
        src = o * scale
        i0 = int(np.floor(src))
        t = src - i0
        for k in range(-1, 3):
            w = _cubic_w(t - k)
            idx = min(max(i0 + k, 0), in_size - 1)  # border clamp, as in PyTorch
            m[o, idx] += w
    return m.astype(np.float32)


def _build_conv_g(w_oihw, H):
    """Fold a 3x3 conv weight (Co, Ci, 3, 3) into 3 matrices G[dx] of shape
    (Co*H, Ci*H) acting on the channel-folded (C*H, W) layout.  G[dx] combines
    the channel contraction with the vertical tap dy (and vertical zero
    padding); the horizontal tap/padding is a right-multiply by a shift matrix.
    """
    w = np.asarray(w_oihw, dtype=np.float32)
    Co, Ci, KH, KW = w.shape
    G = np.zeros((KW, Co, H, Ci, H), dtype=np.float32)
    for dx in range(KW):
        for dy in range(KH):
            for y in range(H):
                y2 = y + dy - 1
                if 0 <= y2 < H:
                    G[dx, :, y, :, y2] += w[:, :, dy, dx]
    return G.reshape(KW, Co * H, Ci * H)


def prepare_up_params(wr_list, br_list, w1, w2, s1, t1, s2, t2,
                      x_shape, down_shapes):
    """Fold all module parameters into kernel-ready matrices (host-side glue)."""
    _, Cx, H, W = x_shape
    H2, W2 = 2 * H, 2 * W
    n = len(wr_list)
    Cr = int(np.asarray(wr_list[0]).shape[0])

    ah_x = _linear_matrix(H2, H)
    aw_x = _linear_matrix(W2, W)

    # Banded shift matrices for the horizontal conv taps (zero-padded borders).
    shift = np.stack([np.eye(W2, k=1 - dx, dtype=np.float32) for dx in range(3)])

    # Full conv1 fold, then split its columns per concatenated feature so the
    # kernel never needs an explicit concatenate.
    g1_full = _build_conv_g(w1, H2)                      # (3, Cmid*H2, Ctot*H2)
    col_sizes = [Cx * H2] + [Cr * H2] * n
    g1_parts, off = [], 0
    for sz in col_sizes:
        g1_parts.append(jnp.asarray(g1_full[:, :, off:off + sz]))
        off += sz

    kp = {
        "awt_x": jnp.asarray(aw_x.T),                                          # (W, W2)
        "ahx": jnp.asarray(np.kron(np.eye(Cx, dtype=np.float32), ah_x)),       # (Cx*H2, Cx*H)
        "skips": [],
        "shift": jnp.asarray(shift),                                           # (3, W2, W2)
        "g1_parts": g1_parts,
        "g2": jnp.asarray(_build_conv_g(w2, H2)),                              # (3, Cout*H2, Cmid*H2)
        "s1": jnp.asarray(np.repeat(np.asarray(s1, np.float32), H2)[:, None]),
        "t1": jnp.asarray(np.repeat(np.asarray(t1, np.float32), H2)[:, None]),
        "s2": jnp.asarray(np.repeat(np.asarray(s2, np.float32), H2)[:, None]),
        "t2": jnp.asarray(np.repeat(np.asarray(t2, np.float32), H2)[:, None]),
        "dims": (Cx, Cr, H2, W2),
    }
    for i, (_, Cd, Hd, Wd) in enumerate(down_shapes):
        wr = np.asarray(wr_list[i], np.float32)
        br = np.asarray(br_list[i], np.float32)
        ah_d = _cubic_matrix(H2, Hd)
        aw_d = _cubic_matrix(W2, Wd)
        kp["skips"].append({
            "wr": jnp.asarray(np.kron(wr, np.eye(Hd, dtype=np.float32))),      # (Cr*Hd, Cd*Hd)
            "awt": jnp.asarray(aw_d.T),                                        # (Wd, W2)
            "ahd": jnp.asarray(np.kron(np.eye(Cr, dtype=np.float32), ah_d)),   # (Cr*H2, Cr*Hd)
            "b": jnp.asarray(np.repeat(br, H2)[:, None]),                      # (Cr*H2, 1)
        })
    return kp


# ----------------------------------------------------------------------------
# Fused Pallas kernel: whole Up.forward for one batch element per grid step.
# ----------------------------------------------------------------------------
def _make_up_kernel(n_skips):
    def kernel(*refs):
        it = iter(refs)
        x_ref = next(it)
        d_refs = [next(it) for _ in range(n_skips)]
        awt_x_ref = next(it)
        ahx_ref = next(it)
        skip_refs = [tuple(next(it) for _ in range(4)) for _ in range(n_skips)]
        shift_ref = next(it)
        g1_refs = [next(it) for _ in range(n_skips + 1)]
        s1_ref, t1_ref = next(it), next(it)
        g2_ref = next(it)
        s2_ref, t2_ref = next(it), next(it)
        o_ref = next(it)

        f32 = jnp.float32
        w2 = shift_ref.shape[1]

        # ---- bilinear x2 upsample of x (channel-folded separable matmuls) ----
        xw = jnp.dot(x_ref[...], awt_x_ref[...], preferred_element_type=f32)     # (Cx*H, W2)
        x_up = jnp.dot(ahx_ref[...], xw, preferred_element_type=f32)             # (Cx*H2, W2)
        feats = [x_up]

        # ---- skips: 1x1 channel reduce -> bicubic resize -> +bias -> LeakyReLU
        for i in range(n_skips):
            wr_ref, awt_ref, ahd_ref, b_ref = skip_refs[i]
            s = jnp.dot(wr_ref[...], d_refs[i][...], preferred_element_type=f32)  # (Cr*Hd, Wd)
            s = jnp.dot(s, awt_ref[...], preferred_element_type=f32)              # (Cr*Hd, W2)
            r = jnp.dot(ahd_ref[...], s, preferred_element_type=f32) + b_ref[...] # (Cr*H2, W2)
            feats.append(jnp.where(r >= 0.0, r, 0.1 * r))

        # ---- conv1 (3x3, pad 1, no bias) + BN + LeakyReLU -------------------
        # per horizontal tap dx: (G[dx] @ concat(feats)) @ S[dx]; the concat is
        # realized by summing per-feature column blocks of G.
        y1 = jnp.zeros((g1_refs[0].shape[1], w2), f32)
        for dx in range(3):
            p = jnp.dot(g1_refs[0][dx], feats[0], preferred_element_type=f32)
            for f in range(1, n_skips + 1):
                p = p + jnp.dot(g1_refs[f][dx], feats[f], preferred_element_type=f32)
            y1 = y1 + jnp.dot(p, shift_ref[dx], preferred_element_type=f32)
        y1 = y1 * s1_ref[...] + t1_ref[...]
        y1 = jnp.where(y1 >= 0.0, y1, 0.1 * y1)

        # ---- conv2 (3x3, pad 1, no bias) + BN + LeakyReLU -------------------
        y2 = jnp.zeros((g2_ref.shape[1], w2), f32)
        for dx in range(3):
            y2 = y2 + jnp.dot(jnp.dot(g2_ref[dx], y1, preferred_element_type=f32),
                              shift_ref[dx], preferred_element_type=f32)
        y2 = y2 * s2_ref[...] + t2_ref[...]
        o_ref[...] = jnp.where(y2 >= 0.0, y2, 0.1 * y2)

    return kernel


def up_forward(x, down_weights, kp):
    """x: (B, Cx, H, W) NCHW; down_weights: list of (B, Cd_i, Hd_i, Wd_i) NCHW."""
    B, Cx, H, W = x.shape
    Cx_, Cr, H2, W2 = kp["dims"]
    assert Cx == Cx_ and H2 == 2 * H and W2 == 2 * W
    n = len(down_weights)
    cout_rows = kp["g2"].shape[1]          # Cout * H2
    Cout = cout_rows // H2

    # Free, contiguous reshapes to the channel-folded (C*H, W) layout.
    arrays = [x.reshape(B, Cx * H, W)]
    in_specs = [pl.BlockSpec((None, Cx * H, W), lambda b: (b, 0, 0))]
    for d in down_weights:
        _, Cd, Hd, Wd = d.shape
        arrays.append(d.reshape(B, Cd * Hd, Wd))
        in_specs.append(pl.BlockSpec((None, Cd * Hd, Wd), lambda b: (b, 0, 0)))

    def _full(a):
        nd = a.ndim
        return pl.BlockSpec(a.shape, lambda b: (0,) * nd)

    param_arrays = [kp["awt_x"], kp["ahx"]]
    for s in kp["skips"][:n]:
        param_arrays += [s["wr"], s["awt"], s["ahd"], s["b"]]
    param_arrays += [kp["shift"]] + list(kp["g1_parts"])
    param_arrays += [kp["s1"], kp["t1"], kp["g2"], kp["s2"], kp["t2"]]
    arrays += param_arrays
    in_specs += [_full(a) for a in param_arrays]

    out = pl.pallas_call(
        _make_up_kernel(n),
        out_shape=jax.ShapeDtypeStruct((B, cout_rows, W2), jnp.float32),
        grid=(B,),
        in_specs=in_specs,
        out_specs=pl.BlockSpec((None, cout_rows, W2), lambda b: (b, 0, 0)),
        compiler_params=pltpu.CompilerParams(dimension_semantics=("parallel",)),
    )(*arrays)
    return out.reshape(B, Cout, H2, W2)   # (B, Cout, H2, W2) NCHW, free reshape


# ----------------------------------------------------------------------------
# Pure-JAX reference (same interpolation matrices) for the correctness check.
# ----------------------------------------------------------------------------
def _leaky(x):
    return jnp.where(x >= 0.0, x, 0.1 * x)


def _conv_nchw(x, w_oihw, padding):
    return jax.lax.conv_general_dilated(
        x, w_oihw, (1, 1), ((padding, padding), (padding, padding)),
        dimension_numbers=("NCHW", "OIHW", "NCHW"))


def reference_forward(x, downs, raw):
    B, Cx, H, W = x.shape
    H2, W2 = 2 * H, 2 * W
    ah = jnp.asarray(_linear_matrix(H2, H))
    aw = jnp.asarray(_linear_matrix(W2, W))
    xu = jnp.einsum("oh,bchw,pw->bcop", ah, x, aw)
    feats = [xu]
    for i, d in enumerate(downs):
        Hd, Wd = d.shape[2], d.shape[3]
        ahd = jnp.asarray(_cubic_matrix(H2, Hd))
        awd = jnp.asarray(_cubic_matrix(W2, Wd))
        dr = jnp.einsum("oh,bchw,pw->bcop", ahd, d, awd)
        y = _conv_nchw(dr, raw["wr_oihw"][i], 0) + raw["br"][i][None, :, None, None]
        feats.append(_leaky(y))
    xc = jnp.concatenate(feats, axis=1)
    h = _leaky(_conv_nchw(xc, raw["w1_oihw"], 1) * raw["s1"][None, :, None, None]
               + raw["t1"][None, :, None, None])
    out = _leaky(_conv_nchw(h, raw["w2_oihw"], 1) * raw["s2"][None, :, None, None]
                 + raw["t2"][None, :, None, None])
    return out


# ----------------------------------------------------------------------------
# main
# ----------------------------------------------------------------------------
if __name__ == "__main__":
    # Module config: Up(in_channels=16, out_channels=8, channel_resize=4,
    #                   conv_size=<unused>, num_skip_connections=2, bilinear=True)
    B = 2
    C_X, HH, WW = 8, 8, 8              # x channels + spatial (8 + 2*4 = in_channels=16)
    CH_RESIZE = 4
    IN_CH, OUT_CH = 16, 8
    MID_CH = IN_CH // 2                # 8
    SKIP_CH = (64, 128)                # resize1: 64->4, resize2: 128->4
    SKIP_HW = ((5, 5), (7, 7))
    EPS = 1e-5

    key = jax.random.PRNGKey(0)
    ks = jax.random.split(key, 20)

    x = jax.random.normal(ks[0], (B, C_X, HH, WW), jnp.float32)
    d1 = jax.random.normal(ks[1], (B, SKIP_CH[0], *SKIP_HW[0]), jnp.float32)
    d2 = jax.random.normal(ks[2], (B, SKIP_CH[1], *SKIP_HW[1]), jnp.float32)
    downs = [d1, d2]

    # --- deterministic parameter init (shapes per the PyTorch __init__) ---
    wr1 = 0.1 * jax.random.normal(ks[3], (CH_RESIZE, SKIP_CH[0]), jnp.float32)   # Conv2d(64,4,1)
    br1 = 0.1 * jax.random.normal(ks[4], (CH_RESIZE,), jnp.float32)
    wr2 = 0.1 * jax.random.normal(ks[5], (CH_RESIZE, SKIP_CH[1]), jnp.float32)   # Conv2d(128,4,1)
    br2 = 0.1 * jax.random.normal(ks[6], (CH_RESIZE,), jnp.float32)
    w1 = 0.1 * jax.random.normal(ks[7], (MID_CH, IN_CH, 3, 3), jnp.float32)      # conv1, no bias
    w2 = 0.1 * jax.random.normal(ks[8], (OUT_CH, MID_CH, 3, 3), jnp.float32)     # conv2, no bias

    def bn_affine(kg, kb, km, kv, c):
        gamma = 1.0 + 0.1 * jax.random.normal(kg, (c,), jnp.float32)
        beta = 0.1 * jax.random.normal(kb, (c,), jnp.float32)
        mean = 0.1 * jax.random.normal(km, (c,), jnp.float32)
        var = 1.0 + jnp.abs(0.1 * jax.random.normal(kv, (c,), jnp.float32))
        scale = gamma / jnp.sqrt(var + EPS)
        shift = beta - mean * scale
        return scale, shift

    s1, t1 = bn_affine(ks[9], ks[10], ks[11], ks[12], MID_CH)
    s2, t2 = bn_affine(ks[13], ks[14], ks[15], ks[16], OUT_CH)

    # Kernel-ready folded parameters (host-side glue, built once).
    kp = prepare_up_params(
        wr_list=[np.asarray(wr1), np.asarray(wr2)],
        br_list=[np.asarray(br1), np.asarray(br2)],
        w1=np.asarray(w1), w2=np.asarray(w2),
        s1=np.asarray(s1), t1=np.asarray(t1),
        s2=np.asarray(s2), t2=np.asarray(t2),
        x_shape=x.shape,
        down_shapes=[d.shape for d in downs],
    )

    raw = {
        "wr_oihw": [wr1[:, :, None, None], wr2[:, :, None, None]],
        "br": [br1, br2],
        "w1_oihw": w1, "w2_oihw": w2,
        "s1": s1, "t1": t1, "s2": s2, "t2": t2,
    }

    out = jax.block_until_ready(up_forward(x, downs, kp))        # (B, 8, 16, 16) NCHW
    ref = jax.block_until_ready(reference_forward(x, downs, raw))

    np.testing.assert_allclose(np.asarray(out), np.asarray(ref), rtol=2e-2, atol=2e-2)
    print("KERNEL_OK")
</pallas_src>

<mosaic_0001>
module attributes {stable_mosaic.version = 11 : i64} {
  func.func @kernel(%arg0: i32, %arg1: memref<1x64x8xf32, #tpu.memory_space<vmem>>, %arg2: memref<1x320x5xf32, #tpu.memory_space<vmem>>, %arg3: memref<1x896x7xf32, #tpu.memory_space<vmem>>, %arg4: memref<8x16xf32, #tpu.memory_space<vmem>>, %arg5: memref<128x64xf32, #tpu.memory_space<vmem>>, %arg6: memref<20x320xf32, #tpu.memory_space<vmem>>, %arg7: memref<5x16xf32, #tpu.memory_space<vmem>>, %arg8: memref<64x20xf32, #tpu.memory_space<vmem>>, %arg9: memref<64x1xf32, #tpu.memory_space<vmem>>, %arg10: memref<28x896xf32, #tpu.memory_space<vmem>>, %arg11: memref<7x16xf32, #tpu.memory_space<vmem>>, %arg12: memref<64x28xf32, #tpu.memory_space<vmem>>, %arg13: memref<64x1xf32, #tpu.memory_space<vmem>>, %arg14: memref<3x16x16xf32, #tpu.memory_space<vmem>>, %arg15: memref<3x128x128xf32, #tpu.memory_space<vmem>>, %arg16: memref<3x128x64xf32, #tpu.memory_space<vmem>>, %arg17: memref<3x128x64xf32, #tpu.memory_space<vmem>>, %arg18: memref<128x1xf32, #tpu.memory_space<vmem>>, %arg19: memref<128x1xf32, #tpu.memory_space<vmem>>, %arg20: memref<3x128x128xf32, #tpu.memory_space<vmem>>, %arg21: memref<128x1xf32, #tpu.memory_space<vmem>>, %arg22: memref<128x1xf32, #tpu.memory_space<vmem>>, %arg23: memref<1x128x16xf32, #tpu.memory_space<vmem>>) attributes {dimension_semantics = [#tpu.dimension_semantics<parallel>], iteration_bounds = array<i64: 2>, scalar_prefetch = 0 : i64, scratch_operands = 0 : i64, tpu.core_type = #tpu.core_type<tc>, window_params = [{transform_indices = @transform_0, window_bounds = array<i64: 1, 64, 8>}, {transform_indices = @transform_1, window_bounds = array<i64: 1, 320, 5>}, {transform_indices = @transform_2, window_bounds = array<i64: 1, 896, 7>}, {pipeline_mode = #tpu.pipeline_mode<synchronous>, transform_indices = @transform_3, window_bounds = array<i64: 8, 16>}, {pipeline_mode = #tpu.pipeline_mode<synchronous>, transform_indices = @transform_4, window_bounds = array<i64: 128, 64>}, {pipeline_mode = #tpu.pipeline_mode<synchronous>, transform_indices = @transform_5, window_bounds = array<i64: 20, 320>}, {pipeline_mode = #tpu.pipeline_mode<synchronous>, transform_indices = @transform_6, window_bounds = array<i64: 5, 16>}, {pipeline_mode = #tpu.pipeline_mode<synchronous>, transform_indices = @transform_7, window_bounds = array<i64: 64, 20>}, {pipeline_mode = #tpu.pipeline_mode<synchronous>, transform_indices = @transform_8, window_bounds = array<i64: 64, 1>}, {pipeline_mode = #tpu.pipeline_mode<synchronous>, transform_indices = @transform_9, window_bounds = array<i64: 28, 896>}, {pipeline_mode = #tpu.pipeline_mode<synchronous>, transform_indices = @transform_10, window_bounds = array<i64: 7, 16>}, {pipeline_mode = #tpu.pipeline_mode<synchronous>, transform_indices = @transform_11, window_bounds = array<i64: 64, 28>}, {pipeline_mode = #tpu.pipeline_mode<synchronous>, transform_indices = @transform_12, window_bounds = array<i64: 64, 1>}, {pipeline_mode = #tpu.pipeline_mode<synchronous>, transform_indices = @transform_13, window_bounds = array<i64: 3, 16, 16>}, {pipeline_mode = #tpu.pipeline_mode<synchronous>, transform_indices = @transform_14, window_bounds = array<i64: 3, 128, 128>}, {pipeline_mode = #tpu.pipeline_mode<synchronous>, transform_indices = @transform_15, window_bounds = array<i64: 3, 128, 64>}, {pipeline_mode = #tpu.pipeline_mode<synchronous>, transform_indices = @transform_16, window_bounds = array<i64: 3, 128, 64>}, {pipeline_mode = #tpu.pipeline_mode<synchronous>, transform_indices = @transform_17, window_bounds = array<i64: 128, 1>}, {pipeline_mode = #tpu.pipeline_mode<synchronous>, transform_indices = @transform_18, window_bounds = array<i64: 128, 1>}, {pipeline_mode = #tpu.pipeline_mode<synchronous>, transform_indices = @transform_19, window_bounds = array<i64: 3, 128, 128>}, {pipeline_mode = #tpu.pipeline_mode<synchronous>, transform_indices = @transform_20, window_bounds = array<i64: 128, 1>}, {pipeline_mode = #tpu.pipeline_mode<synchronous>, transform_indices = @transform_21, window_bounds = array<i64: 128, 1>}, {transform_indices = @transform_22, window_bounds = array<i64: 1, 128, 16>}]} {
    %c0 = arith.constant 0 : index
    %c0_0 = arith.constant 0 : index
    %c0_1 = arith.constant 0 : index
    %0 = vector.load %arg1[%c0, %c0_0, %c0_1] : memref<1x64x8xf32, #tpu.memory_space<vmem>>, vector<1x64x8xf32>
    %1 = vector.shape_cast %0 : vector<1x64x8xf32> to vector<64x8xf32>
    %c0_2 = arith.constant 0 : index
    %c0_3 = arith.constant 0 : index
    %2 = vector.load %arg4[%c0_2, %c0_3] : memref<8x16xf32, #tpu.memory_space<vmem>>, vector<8x16xf32>
    %cst = arith.constant dense<0.000000e+00> : vector<64x16xf32>
    %3 = tpu.matmul %1, %2, %cst {dimension_numbers = #tpu.dot_dimension_numbers<[1], [0], [0], [1], [0, 0, 1, 1], [], []>} : vector<64x8xf32>, vector<8x16xf32>, vector<64x16xf32> -> vector<64x16xf32>
    %c0_4 = arith.constant 0 : index
    %c0_5 = arith.constant 0 : index
    %4 = vector.load %arg5[%c0_4, %c0_5] : memref<128x64xf32, #tpu.memory_space<vmem>>, vector<128x64xf32>
    %cst_6 = arith.constant dense<0.000000e+00> : vector<128x16xf32>
    %5 = tpu.matmul %4, %3, %cst_6 {dimension_numbers = #tpu.dot_dimension_numbers<[1], [0], [0], [1], [0, 0, 1, 1], [], []>} : vector<128x64xf32>, vector<64x16xf32>, vector<128x16xf32> -> vector<128x16xf32>
    %c0_7 = arith.constant 0 : index
    %c0_8 = arith.constant 0 : index
    %6 = vector.load %arg6[%c0_7, %c0_8] : memref<20x320xf32, #tpu.memory_space<vmem>>, vector<20x320xf32>
    %c0_9 = arith.constant 0 : index
    %c0_10 = arith.constant 0 : index
    %c0_11 = arith.constant 0 : index
    %7 = vector.load %arg2[%c0_9, %c0_10, %c0_11] : memref<1x320x5xf32, #tpu.memory_space<vmem>>, vector<1x320x5xf32>
    %8 = vector.shape_cast %7 : vector<1x320x5xf32> to vector<320x5xf32>
    %cst_12 = arith.constant dense<0.000000e+00> : vector<20x5xf32>
    %9 = tpu.matmul %6, %8, %cst_12 {dimension_numbers = #tpu.dot_dimension_numbers<[1], [0], [0], [1], [0, 0, 1, 1], [], []>} : vector<20x320xf32>, vector<320x5xf32>, vector<20x5xf32> -> vector<20x5xf32>
    %c0_13 = arith.constant 0 : index
    %c0_14 = arith.constant 0 : index
    %10 = vector.load %arg7[%c0_13, %c0_14] : memref<5x16xf32, #tpu.memory_space<vmem>>, vector<5x16xf32>
    %cst_15 = arith.constant dense<0.000000e+00> : vector<20x16xf32>
    %11 = tpu.matmul %9, %10, %cst_15 {dimension_numbers = #tpu.dot_dimension_numbers<[1], [0], [0], [1], [0, 0, 1, 1], [], []>} : vector<20x5xf32>, vector<5x16xf32>, vector<20x16xf32> -> vector<20x16xf32>
    %c0_16 = arith.constant 0 : index
    %c0_17 = arith.constant 0 : index
    %12 = vector.load %arg8[%c0_16, %c0_17] : memref<64x20xf32, #tpu.memory_space<vmem>>, vector<64x20xf32>
    %cst_18 = arith.constant dense<0.000000e+00> : vector<64x16xf32>
    %13 = tpu.matmul %12, %11, %cst_18 {dimension_numbers = #tpu.dot_dimension_numbers<[1], [0], [0], [1], [0, 0, 1, 1], [], []>} : vector<64x20xf32>, vector<20x16xf32>, vector<64x16xf32> -> vector<64x16xf32>
    %c0_19 = arith.constant 0 : index
    %c0_20 = arith.constant 0 : index
    %14 = vector.load %arg9[%c0_19, %c0_20] : memref<64x1xf32, #tpu.memory_space<vmem>>, vector<64x1xf32>
    %15 = vector.broadcast %14 : vector<64x1xf32> to vector<64x16xf32>
    %16 = arith.addf %13, %15 : vector<64x16xf32>
    %cst_21 = arith.constant 0.000000e+00 : f32
    %17 = vector.broadcast %cst_21 : f32 to vector<64x16xf32>
    %18 = arith.cmpf oge, %16, %17 : vector<64x16xf32>
    %cst_22 = arith.constant 1.000000e-01 : f32
    %19 = vector.broadcast %cst_22 : f32 to vector<64x16xf32>
    %20 = arith.mulf %19, %16 : vector<64x16xf32>
    %21 = arith.select %18, %16, %20 : vector<64x16xi1>, vector<64x16xf32>
    %c0_23 = arith.constant 0 : index
    %c0_24 = arith.constant 0 : index
    %22 = vector.load %arg10[%c0_23, %c0_24] : memref<28x896xf32, #tpu.memory_space<vmem>>, vector<28x896xf32>
    %c0_25 = arith.constant 0 : index
    %c0_26 = arith.constant 0 : index
    %c0_27 = arith.constant 0 : index
    %23 = vector.load %arg3[%c0_25, %c0_26, %c0_27] : memref<1x896x7xf32, #tpu.memory_space<vmem>>, vector<1x896x7xf32>
    %24 = vector.shape_cast %23 : vector<1x896x7xf32> to vector<896x7xf32>
    %cst_28 = arith.constant dense<0.000000e+00> : vector<28x7xf32>
    %25 = tpu.matmul %22, %24, %cst_28 {dimension_numbers = #tpu.dot_dimension_numbers<[1], [0], [0], [1], [0, 0, 1, 1], [], []>} : vector<28x896xf32>, vector<896x7xf32>, vector<28x7xf32> -> vector<28x7xf32>
    %c0_29 = arith.constant 0 : index
    %c0_30 = arith.constant 0 : index
    %26 = vector.load %arg11[%c0_29, %c0_30] : memref<7x16xf32, #tpu.memory_space<vmem>>, vector<7x16xf32>
    %cst_31 = arith.constant dense<0.000000e+00> : vector<28x16xf32>
    %27 = tpu.matmul %25, %26, %cst_31 {dimension_numbers = #tpu.dot_dimension_numbers<[1], [0], [0], [1], [0, 0, 1, 1], [], []>} : vector<28x7xf32>, vector<7x16xf32>, vector<28x16xf32> -> vector<28x16xf32>
    %c0_32 = arith.constant 0 : index
    %c0_33 = arith.constant 0 : index
    %28 = vector.load %arg12[%c0_32, %c0_33] : memref<64x28xf32, #tpu.memory_space<vmem>>, vector<64x28xf32>
    %cst_34 = arith.constant dense<0.000000e+00> : vector<64x16xf32>
    %29 = tpu.matmul %28, %27, %cst_34 {dimension_numbers = #tpu.dot_dimension_numbers<[1], [0], [0], [1], [0, 0, 1, 1], [], []>} : vector<64x28xf32>, vector<28x16xf32>, vector<64x16xf32> -> vector<64x16xf32>
    %c0_35 = arith.constant 0 : index
    %c0_36 = arith.constant 0 : index
    %30 = vector.load %arg13[%c0_35, %c0_36] : memref<64x1xf32, #tpu.memory_space<vmem>>, vector<64x1xf32>
    %31 = vector.broadcast %30 : vector<64x1xf32> to vector<64x16xf32>
    %32 = arith.addf %29, %31 : vector<64x16xf32>
    %cst_37 = arith.constant 0.000000e+00 : f32
    %33 = vector.broadcast %cst_37 : f32 to vector<64x16xf32>
    %34 = arith.cmpf oge, %32, %33 : vector<64x16xf32>
    %cst_38 = arith.constant 1.000000e-01 : f32
    %35 = vector.broadcast %cst_38 : f32 to vector<64x16xf32>
    %36 = arith.mulf %35, %32 : vector<64x16xf32>
    %37 = arith.select %34, %32, %36 : vector<64x16xi1>, vector<64x16xf32>
    %cst_39 = arith.constant 0.000000e+00 : f32
    %38 = vector.broadcast %cst_39 : f32 to vector<128x16xf32>
    %c0_40 = arith.constant 0 : index
    %c0_41 = arith.constant 0 : index
    %c0_42 = arith.constant 0 : index
    %39 = vector.load %arg15[%c0_40, %c0_41, %c0_42] : memref<3x128x128xf32, #tpu.memory_space<vmem>>, vector<1x128x128xf32>
    %40 = vector.shape_cast %39 : vector<1x128x128xf32> to vector<128x128xf32>
    %cst_43 = arith.constant dense<0.000000e+00> : vector<128x16xf32>
    %41 = tpu.matmul %40, %5, %cst_43 {dimension_numbers = #tpu.dot_dimension_numbers<[1], [0], [0], [1], [0, 0, 1, 1], [], []>} : vector<128x128xf32>, vector<128x16xf32>, vector<128x16xf32> -> vector<128x16xf32>
    %c0_44 = arith.constant 0 : index
    %c0_45 = arith.constant 0 : index
    %c0_46 = arith.constant 0 : index
    %42 = vector.load %arg16[%c0_44, %c0_45, %c0_46] : memref<3x128x64xf32, #tpu.memory_space<vmem>>, vector<1x128x64xf32>
    %43 = vector.shape_cast %42 : vector<1x128x64xf32> to vector<128x64xf32>
    %cst_47 = arith.constant dense<0.000000e+00> : vector<128x16xf32>
    %44 = tpu.matmul %43, %21, %cst_47 {dimension_numbers = #tpu.dot_dimension_numbers<[1], [0], [0], [1], [0, 0, 1, 1], [], []>} : vector<128x64xf32>, vector<64x16xf32>, vector<128x16xf32> -> vector<128x16xf32>
    %45 = arith.addf %41, %44 : vector<128x16xf32>
    %c0_48 = arith.constant 0 : index
    %c0_49 = arith.constant 0 : index
    %c0_50 = arith.constant 0 : index
    %46 = vector.load %arg17[%c0_48, %c0_49, %c0_50] : memref<3x128x64xf32, #tpu.memory_space<vmem>>, vector<1x128x64xf32>
    %47 = vector.shape_cast %46 : vector<1x128x64xf32> to vector<128x64xf32>
    %cst_51 = arith.constant dense<0.000000e+00> : vector<128x16xf32>
    %48 = tpu.matmul %47, %37, %cst_51 {dimension_numbers = #tpu.dot_dimension_numbers<[1], [0], [0], [1], [0, 0, 1, 1], [], []>} : vector<128x64xf32>, vector<64x16xf32>, vector<128x16xf32> -> vector<128x16xf32>
    %49 = arith.addf %45, %48 : vector<128x16xf32>
    %c0_52 = arith.constant 0 : index
    %c0_53 = arith.constant 0 : index
    %c0_54 = arith.constant 0 : index
    %50 = vector.load %arg14[%c0_52, %c0_53, %c0_54] : memref<3x16x16xf32, #tpu.memory_space<vmem>>, vector<1x16x16xf32>
    %51 = vector.shape_cast %50 : vector<1x16x16xf32> to vector<16x16xf32>
    %cst_55 = arith.constant dense<0.000000e+00> : vector<128x16xf32>
    %52 = tpu.matmul %49, %51, %cst_55 {dimension_numbers = #tpu.dot_dimension_numbers<[1], [0], [0], [1], [0, 0, 1, 1], [], []>} : vector<128x16xf32>, vector<16x16xf32>, vector<128x16xf32> -> vector<128x16xf32>
    %53 = arith.addf %38, %52 : vector<128x16xf32>
    %c1 = arith.constant 1 : index
    %c0_56 = arith.constant 0 : index
    %c0_57 = arith.constant 0 : index
    %54 = vector.load %arg15[%c1, %c0_56, %c0_57] : memref<3x128x128xf32, #tpu.memory_space<vmem>>, vector<1x128x128xf32>
    %55 = vector.shape_cast %54 : vector<1x128x128xf32> to vector<128x128xf32>
    %cst_58 = arith.constant dense<0.000000e+00> : vector<128x16xf32>
    %56 = tpu.matmul %55, %5, %cst_58 {dimension_numbers = #tpu.dot_dimension_numbers<[1], [0], [0], [1], [0, 0, 1, 1], [], []>} : vector<128x128xf32>, vector<128x16xf32>, vector<128x16xf32> -> vector<128x16xf32>
    %c1_59 = arith.constant 1 : index
    %c0_60 = arith.constant 0 : index
    %c0_61 = arith.constant 0 : index
    %57 = vector.load %arg16[%c1_59, %c0_60, %c0_61] : memref<3x128x64xf32, #tpu.memory_space<vmem>>, vector<1x128x64xf32>
    %58 = vector.shape_cast %57 : vector<1x128x64xf32> to vector<128x64xf32>
    %cst_62 = arith.constant dense<0.000000e+00> : vector<128x16xf32>
    %59 = tpu.matmul %58, %21, %cst_62 {dimension_numbers = #tpu.dot_dimension_numbers<[1], [0], [0], [1], [0, 0, 1, 1], [], []>} : vector<128x64xf32>, vector<64x16xf32>, vector<128x16xf32> -> vector<128x16xf32>
    %60 = arith.addf %56, %59 : vector<128x16xf32>
    %c1_63 = arith.constant 1 : index
    %c0_64 = arith.constant 0 : index
    %c0_65 = arith.constant 0 : index
    %61 = vector.load %arg17[%c1_63, %c0_64, %c0_65] : memref<3x128x64xf32, #tpu.memory_space<vmem>>, vector<1x128x64xf32>
    %62 = vector.shape_cast %61 : vector<1x128x64xf32> to vector<128x64xf32>
    %cst_66 = arith.constant dense<0.000000e+00> : vector<128x16xf32>
    %63 = tpu.matmul %62, %37, %cst_66 {dimension_numbers = #tpu.dot_dimension_numbers<[1], [0], [0], [1], [0, 0, 1, 1], [], []>} : vector<128x64xf32>, vector<64x16xf32>, vector<128x16xf32> -> vector<128x16xf32>
    %64 = arith.addf %60, %63 : vector<128x16xf32>
    %c1_67 = arith.constant 1 : index
    %c0_68 = arith.constant 0 : index
    %c0_69 = arith.constant 0 : index
    %65 = vector.load %arg14[%c1_67, %c0_68, %c0_69] : memref<3x16x16xf32, #tpu.memory_space<vmem>>, vector<1x16x16xf32>
    %66 = vector.shape_cast %65 : vector<1x16x16xf32> to vector<16x16xf32>
    %cst_70 = arith.constant dense<0.000000e+00> : vector<128x16xf32>
    %67 = tpu.matmul %64, %66, %cst_70 {dimension_numbers = #tpu.dot_dimension_numbers<[1], [0], [0], [1], [0, 0, 1, 1], [], []>} : vector<128x16xf32>, vector<16x16xf32>, vector<128x16xf32> -> vector<128x16xf32>
    %68 = arith.addf %53, %67 : vector<128x16xf32>
    %c2 = arith.constant 2 : index
    %c0_71 = arith.constant 0 : index
    %c0_72 = arith.constant 0 : index
    %69 = vector.load %arg15[%c2, %c0_71, %c0_72] : memref<3x128x128xf32, #tpu.memory_space<vmem>>, vector<1x128x128xf32>
    %70 = vector.shape_cast %69 : vector<1x128x128xf32> to vector<128x128xf32>
    %cst_73 = arith.constant dense<0.000000e+00> : vector<128x16xf32>
    %71 = tpu.matmul %70, %5, %cst_73 {dimension_numbers = #tpu.dot_dimension_numbers<[1], [0], [0], [1], [0, 0, 1, 1], [], []>} : vector<128x128xf32>, vector<128x16xf32>, vector<128x16xf32> -> vector<128x16xf32>
    %c2_74 = arith.constant 2 : index
    %c0_75 = arith.constant 0 : index
    %c0_76 = arith.constant 0 : index
    %72 = vector.load %arg16[%c2_74, %c0_75, %c0_76] : memref<3x128x64xf32, #tpu.memory_space<vmem>>, vector<1x128x64xf32>
    %73 = vector.shape_cast %72 : vector<1x128x64xf32> to vector<128x64xf32>
    %cst_77 = arith.constant dense<0.000000e+00> : vector<128x16xf32>
    %74 = tpu.matmul %73, %21, %cst_77 {dimension_numbers = #tpu.dot_dimension_numbers<[1], [0], [0], [1], [0, 0, 1, 1], [], []>} : vector<128x64xf32>, vector<64x16xf32>, vector<128x16xf32> -> vector<128x16xf32>
    %75 = arith.addf %71, %74 : vector<128x16xf32>
    %c2_78 = arith.constant 2 : index
    %c0_79 = arith.constant 0 : index
    %c0_80 = arith.constant 0 : index
    %76 = vector.load %arg17[%c2_78, %c0_79, %c0_80] : memref<3x128x64xf32, #tpu.memory_space<vmem>>, vector<1x128x64xf32>
    %77 = vector.shape_cast %76 : vector<1x128x64xf32> to vector<128x64xf32>
    %cst_81 = arith.constant dense<0.000000e+00> : vector<128x16xf32>
    %78 = tpu.matmul %77, %37, %cst_81 {dimension_numbers = #tpu.dot_dimension_numbers<[1], [0], [0], [1], [0, 0, 1, 1], [], []>} : vector<128x64xf32>, vector<64x16xf32>, vector<128x16xf32> -> vector<128x16xf32>
    %79 = arith.addf %75, %78 : vector<128x16xf32>
    %c2_82 = arith.constant 2 : index
    %c0_83 = arith.constant 0 : index
    %c0_84 = arith.constant 0 : index
    %80 = vector.load %arg14[%c2_82, %c0_83, %c0_84] : memref<3x16x16xf32, #tpu.memory_space<vmem>>, vector<1x16x16xf32>
    %81 = vector.shape_cast %80 : vector<1x16x16xf32> to vector<16x16xf32>
    %cst_85 = arith.constant dense<0.000000e+00> : vector<128x16xf32>
    %82 = tpu.matmul %79, %81, %cst_85 {dimension_numbers = #tpu.dot_dimension_numbers<[1], [0], [0], [1], [0, 0, 1, 1], [], []>} : vector<128x16xf32>, vector<16x16xf32>, vector<128x16xf32> -> vector<128x16xf32>
    %83 = arith.addf %68, %82 : vector<128x16xf32>
    %c0_86 = arith.constant 0 : index
    %c0_87 = arith.constant 0 : index
    %84 = vector.load %arg18[%c0_86, %c0_87] : memref<128x1xf32, #tpu.memory_space<vmem>>, vector<128x1xf32>
    %85 = vector.broadcast %84 : vector<128x1xf32> to vector<128x16xf32>
    %86 = arith.mulf %83, %85 : vector<128x16xf32>
    %c0_88 = arith.constant 0 : index
    %c0_89 = arith.constant 0 : index
    %87 = vector.load %arg19[%c0_88, %c0_89] : memref<128x1xf32, #tpu.memory_space<vmem>>, vector<128x1xf32>
    %88 = vector.broadcast %87 : vector<128x1xf32> to vector<128x16xf32>
    %89 = arith.addf %86, %88 : vector<128x16xf32>
    %cst_90 = arith.constant 0.000000e+00 : f32
    %90 = vector.broadcast %cst_90 : f32 to vector<128x16xf32>
    %91 = arith.cmpf oge, %89, %90 : vector<128x16xf32>
    %cst_91 = arith.constant 1.000000e-01 : f32
    %92 = vector.broadcast %cst_91 : f32 to vector<128x16xf32>
    %93 = arith.mulf %92, %89 : vector<128x16xf32>
    %94 = arith.select %91, %89, %93 : vector<128x16xi1>, vector<128x16xf32>
    %cst_92 = arith.constant 0.000000e+00 : f32
    %95 = vector.broadcast %cst_92 : f32 to vector<128x16xf32>
    %c0_93 = arith.constant 0 : index
    %c0_94 = arith.constant 0 : index
    %c0_95 = arith.constant 0 : index
    %96 = vector.load %arg20[%c0_93, %c0_94, %c0_95] : memref<3x128x128xf32, #tpu.memory_space<vmem>>, vector<1x128x128xf32>
    %97 = vector.shape_cast %96 : vector<1x128x128xf32> to vector<128x128xf32>
    %cst_96 = arith.constant dense<0.000000e+00> : vector<128x16xf32>
    %98 = tpu.matmul %97, %94, %cst_96 {dimension_numbers = #tpu.dot_dimension_numbers<[1], [0], [0], [1], [0, 0, 1, 1], [], []>} : vector<128x128xf32>, vector<128x16xf32>, vector<128x16xf32> -> vector<128x16xf32>
    %c0_97 = arith.constant 0 : index
    %c0_98 = arith.constant 0 : index
    %c0_99 = arith.constant 0 : index
    %99 = vector.load %arg14[%c0_97, %c0_98, %c0_99] : memref<3x16x16xf32, #tpu.memory_space<vmem>>, vector<1x16x16xf32>
    %100 = vector.shape_cast %99 : vector<1x16x16xf32> to vector<16x16xf32>
    %cst_100 = arith.constant dense<0.000000e+00> : vector<128x16xf32>
    %101 = tpu.matmul %98, %100, %cst_100 {dimension_numbers = #tpu.dot_dimension_numbers<[1], [0], [0], [1], [0, 0, 1, 1], [], []>} : vector<128x16xf32>, vector<16x16xf32>, vector<128x16xf32> -> vector<128x16xf32>
    %102 = arith.addf %95, %101 : vector<128x16xf32>
    %c1_101 = arith.constant 1 : index
    %c0_102 = arith.constant 0 : index
    %c0_103 = arith.constant 0 : index
    %103 = vector.load %arg20[%c1_101, %c0_102, %c0_103] : memref<3x128x128xf32, #tpu.memory_space<vmem>>, vector<1x128x128xf32>
    %104 = vector.shape_cast %103 : vector<1x128x128xf32> to vector<128x128xf32>
    %cst_104 = arith.constant dense<0.000000e+00> : vector<128x16xf32>
    %105 = tpu.matmul %104, %94, %cst_104 {dimension_numbers = #tpu.dot_dimension_numbers<[1], [0], [0], [1], [0, 0, 1, 1], [], []>} : vector<128x128xf32>, vector<128x16xf32>, vector<128x16xf32> -> vector<128x16xf32>
    %c1_105 = arith.constant 1 : index
    %c0_106 = arith.constant 0 : index
    %c0_107 = arith.constant 0 : index
    %106 = vector.load %arg14[%c1_105, %c0_106, %c0_107] : memref<3x16x16xf32, #tpu.memory_space<vmem>>, vector<1x16x16xf32>
    %107 = vector.shape_cast %106 : vector<1x16x16xf32> to vector<16x16xf32>
    %cst_108 = arith.constant dense<0.000000e+00> : vector<128x16xf32>
    %108 = tpu.matmul %105, %107, %cst_108 {dimension_numbers = #tpu.dot_dimension_numbers<[1], [0], [0], [1], [0, 0, 1, 1], [], []>} : vector<128x16xf32>, vector<16x16xf32>, vector<128x16xf32> -> vector<128x16xf32>
    %109 = arith.addf %102, %108 : vector<128x16xf32>
    %c2_109 = arith.constant 2 : index
    %c0_110 = arith.constant 0 : index
    %c0_111 = arith.constant 0 : index
    %110 = vector.load %arg20[%c2_109, %c0_110, %c0_111] : memref<3x128x128xf32, #tpu.memory_space<vmem>>, vector<1x128x128xf32>
    %111 = vector.shape_cast %110 : vector<1x128x128xf32> to vector<128x128xf32>
    %cst_112 = arith.constant dense<0.000000e+00> : vector<128x16xf32>
    %112 = tpu.matmul %111, %94, %cst_112 {dimension_numbers = #tpu.dot_dimension_numbers<[1], [0], [0], [1], [0, 0, 1, 1], [], []>} : vector<128x128xf32>, vector<128x16xf32>, vector<128x16xf32> -> vector<128x16xf32>
    %c2_113 = arith.constant 2 : index
    %c0_114 = arith.constant 0 : index
    %c0_115 = arith.constant 0 : index
    %113 = vector.load %arg14[%c2_113, %c0_114, %c0_115] : memref<3x16x16xf32, #tpu.memory_space<vmem>>, vector<1x16x16xf32>
    %114 = vector.shape_cast %113 : vector<1x16x16xf32> to vector<16x16xf32>
    %cst_116 = arith.constant dense<0.000000e+00> : vector<128x16xf32>
    %115 = tpu.matmul %112, %114, %cst_116 {dimension_numbers = #tpu.dot_dimension_numbers<[1], [0], [0], [1], [0, 0, 1, 1], [], []>} : vector<128x16xf32>, vector<16x16xf32>, vector<128x16xf32> -> vector<128x16xf32>
    %116 = arith.addf %109, %115 : vector<128x16xf32>
    %c0_117 = arith.constant 0 : index
    %c0_118 = arith.constant 0 : index
    %117 = vector.load %arg21[%c0_117, %c0_118] : memref<128x1xf32, #tpu.memory_space<vmem>>, vector<128x1xf32>
    %118 = vector.broadcast %117 : vector<128x1xf32> to vector<128x16xf32>
    %119 = arith.mulf %116, %118 : vector<128x16xf32>
    %c0_119 = arith.constant 0 : index
    %c0_120 = arith.constant 0 : index
    %120 = vector.load %arg22[%c0_119, %c0_120] : memref<128x1xf32, #tpu.memory_space<vmem>>, vector<128x1xf32>
    %121 = vector.broadcast %120 : vector<128x1xf32> to vector<128x16xf32>
    %122 = arith.addf %119, %121 : vector<128x16xf32>
    %cst_121 = arith.constant 0.000000e+00 : f32
    %123 = vector.broadcast %cst_121 : f32 to vector<128x16xf32>
    %124 = arith.cmpf oge, %122, %123 : vector<128x16xf32>
    %cst_122 = arith.constant 1.000000e-01 : f32
    %125 = vector.broadcast %cst_122 : f32 to vector<128x16xf32>
    %126 = arith.mulf %125, %122 : vector<128x16xf32>
    %127 = arith.select %124, %122, %126 : vector<128x16xi1>, vector<128x16xf32>
    %c0_123 = arith.constant 0 : index
    %c0_124 = arith.constant 0 : index
    %c0_125 = arith.constant 0 : index
    %128 = vector.load %arg23[%c0_123, %c0_124, %c0_125] : memref<1x128x16xf32, #tpu.memory_space<vmem>>, vector<1x128x16xf32>
    %129 = vector.shape_cast %128 : vector<1x128x16xf32> to vector<128x16xf32>
    %130 = vector.shape_cast %127 : vector<128x16xf32> to vector<1x128x16xf32>
    tpu.vector_store %arg23[%c0_123, %c0_124, %c0_125], %130 {strides = array<i32>} : memref<1x128x16xf32, #tpu.memory_space<vmem>>, vector<1x128x16xf32>,
    return
  }
  func.func @transform_0(%arg0: i32) -> (i32, i32, i32) {
    %c0_i32 = arith.constant 0 : i32
    %c0_i32_0 = arith.constant 0 : i32
    %c0_i32_1 = arith.constant 0 : i32
    return %arg0, %c0_i32, %c0_i32_0 : i32, i32, i32
  }
  func.func @transform_1(%arg0: i32) -> (i32, i32, i32) {
    %c0_i32 = arith.constant 0 : i32
    %c0_i32_0 = arith.constant 0 : i32
    %c0_i32_1 = arith.constant 0 : i32
    return %arg0, %c0_i32, %c0_i32_0 : i32, i32, i32
  }
  func.func @transform_2(%arg0: i32) -> (i32, i32, i32) {
    %c0_i32 = arith.constant 0 : i32
    %c0_i32_0 = arith.constant 0 : i32
    %c0_i32_1 = arith.constant 0 : i32
    return %arg0, %c0_i32, %c0_i32_0 : i32, i32, i32
  }
  func.func @transform_3(%arg0: i32) -> (i32, i32) {
    %c0_i32 = arith.constant 0 : i32
    %c0_i32_0 = arith.constant 0 : i32
    %c0_i32_1 = arith.constant 0 : i32
    return %c0_i32, %c0_i32_0 : i32, i32
  }
  func.func @transform_4(%arg0: i32) -> (i32, i32) {
    %c0_i32 = arith.constant 0 : i32
    %c0_i32_0 = arith.constant 0 : i32
    %c0_i32_1 = arith.constant 0 : i32
    return %c0_i32, %c0_i32_0 : i32, i32
  }
  func.func @transform_5(%arg0: i32) -> (i32, i32) {
    %c0_i32 = arith.constant 0 : i32
    %c0_i32_0 = arith.constant 0 : i32
    %c0_i32_1 = arith.constant 0 : i32
    return %c0_i32, %c0_i32_0 : i32, i32
  }
  func.func @transform_6(%arg0: i32) -> (i32, i32) {
    %c0_i32 = arith.constant 0 : i32
    %c0_i32_0 = arith.constant 0 : i32
    %c0_i32_1 = arith.constant 0 : i32
    return %c0_i32, %c0_i32_0 : i32, i32
  }
  func.func @transform_7(%arg0: i32) -> (i32, i32) {
    %c0_i32 = arith.constant 0 : i32
    %c0_i32_0 = arith.constant 0 : i32
    %c0_i32_1 = arith.constant 0 : i32
    return %c0_i32, %c0_i32_0 : i32, i32
  }
  func.func @transform_8(%arg0: i32) -> (i32, i32) {
    %c0_i32 = arith.constant 0 : i32
    %c0_i32_0 = arith.constant 0 : i32
    %c0_i32_1 = arith.constant 0 : i32
    return %c0_i32, %c0_i32_0 : i32, i32
  }
  func.func @transform_9(%arg0: i32) -> (i32, i32) {
    %c0_i32 = arith.constant 0 : i32
    %c0_i32_0 = arith.constant 0 : i32
    %c0_i32_1 = arith.constant 0 : i32
    return %c0_i32, %c0_i32_0 : i32, i32
  }
  func.func @transform_10(%arg0: i32) -> (i32, i32) {
    %c0_i32 = arith.constant 0 : i32
    %c0_i32_0 = arith.constant 0 : i32
    %c0_i32_1 = arith.constant 0 : i32
    return %c0_i32, %c0_i32_0 : i32, i32
  }
  func.func @transform_11(%arg0: i32) -> (i32, i32) {
    %c0_i32 = arith.constant 0 : i32
    %c0_i32_0 = arith.constant 0 : i32
    %c0_i32_1 = arith.constant 0 : i32
    return %c0_i32, %c0_i32_0 : i32, i32
  }
  func.func @transform_12(%arg0: i32) -> (i32, i32) {
    %c0_i32 = arith.constant 0 : i32
    %c0_i32_0 = arith.constant 0 : i32
    %c0_i32_1 = arith.constant 0 : i32
    return %c0_i32, %c0_i32_0 : i32, i32
  }
  func.func @transform_13(%arg0: i32) -> (i32, i32, i32) {
    %c0_i32 = arith.constant 0 : i32
    %c0_i32_0 = arith.constant 0 : i32
    %c0_i32_1 = arith.constant 0 : i32
    %c0_i32_2 = arith.constant 0 : i32
    return %c0_i32, %c0_i32_0, %c0_i32_1 : i32, i32, i32
  }
  func.func @transform_14(%arg0: i32) -> (i32, i32, i32) {
    %c0_i32 = arith.constant 0 : i32
    %c0_i32_0 = arith.constant 0 : i32
    %c0_i32_1 = arith.constant 0 : i32
    %c0_i32_2 = arith.constant 0 : i32
    return %c0_i32, %c0_i32_0, %c0_i32_1 : i32, i32, i32
  }
  func.func @transform_15(%arg0: i32) -> (i32, i32, i32) {
    %c0_i32 = arith.constant 0 : i32
    %c0_i32_0 = arith.constant 0 : i32
    %c0_i32_1 = arith.constant 0 : i32
    %c0_i32_2 = arith.constant 0 : i32
    return %c0_i32, %c0_i32_0, %c0_i32_1 : i32, i32, i32
  }
  func.func @transform_16(%arg0: i32) -> (i32, i32, i32) {
    %c0_i32 = arith.constant 0 : i32
    %c0_i32_0 = arith.constant 0 : i32
    %c0_i32_1 = arith.constant 0 : i32
    %c0_i32_2 = arith.constant 0 : i32
    return %c0_i32, %c0_i32_0, %c0_i32_1 : i32, i32, i32
  }
  func.func @transform_17(%arg0: i32) -> (i32, i32) {
    %c0_i32 = arith.constant 0 : i32
    %c0_i32_0 = arith.constant 0 : i32
    %c0_i32_1 = arith.constant 0 : i32
    return %c0_i32, %c0_i32_0 : i32, i32
  }
  func.func @transform_18(%arg0: i32) -> (i32, i32) {
    %c0_i32 = arith.constant 0 : i32
    %c0_i32_0 = arith.constant 0 : i32
    %c0_i32_1 = arith.constant 0 : i32
    return %c0_i32, %c0_i32_0 : i32, i32
  }
  func.func @transform_19(%arg0: i32) -> (i32, i32, i32) {
    %c0_i32 = arith.constant 0 : i32
    %c0_i32_0 = arith.constant 0 : i32
    %c0_i32_1 = arith.constant 0 : i32
    %c0_i32_2 = arith.constant 0 : i32
    return %c0_i32, %c0_i32_0, %c0_i32_1 : i32, i32, i32
  }
  func.func @transform_20(%arg0: i32) -> (i32, i32) {
    %c0_i32 = arith.constant 0 : i32
    %c0_i32_0 = arith.constant 0 : i32
    %c0_i32_1 = arith.constant 0 : i32
    return %c0_i32, %c0_i32_0 : i32, i32
  }
  func.func @transform_21(%arg0: i32) -> (i32, i32) {
    %c0_i32 = arith.constant 0 : i32
    %c0_i32_0 = arith.constant 0 : i32
    %c0_i32_1 = arith.constant 0 : i32
    return %c0_i32, %c0_i32_0 : i32, i32
  }
  func.func @transform_22(%arg0: i32) -> (i32, i32, i32) {
    %c0_i32 = arith.constant 0 : i32
    %c0_i32_0 = arith.constant 0 : i32
    %c0_i32_1 = arith.constant 0 : i32
    return %arg0, %c0_i32, %c0_i32_0 : i32, i32, i32
  }
}

</mosaic_0001>

<bundles_post_ra>
// kernel: tpu_custom_call.1
= control target key start
LH: loop header
LB: loop body
LE: loop exit
PB: predicated region body
PF: predicated region fallthrough
CT: control target
= control target key end

     0   :  { %s7152_s0 = inlined_call_operand.vmem [shape: f32[2,64,8], index: 0, kind: input, shape index: {}]   ;;  %s7153_s1 = inlined_call_operand.vmem [shape: f32[2,320,5], index: 1, kind: input, shape index: {}]   ;;  %s7154_s2 = inlined_call_operand.vmem [shape: f32[2,896,7], index: 2, kind: input, shape index: {}]   ;;  %s7155_s3 = inlined_call_operand.vmem [shape: f32[8,16], index: 3, kind: input, shape index: {}]   ;;  %s7156_s4 = inlined_call_operand.vmem [shape: f32[128,64], index: 4, kind: input, shape index: {}]   ;;  %s7157_s5 = inlined_call_operand.vmem [shape: f32[20,320], index: 5, kind: input, shape index: {}]   ;;  %s7158_s6 = inlined_call_operand.vmem [shape: f32[5,16], index: 6, kind: input, shape index: {}]   ;;  %s7159_s7 = inlined_call_operand.vmem [shape: f32[64,20], index: 7, kind: input, shape index: {}]   ;;  %s7160_s8 = inlined_call_operand.vmem [shape: f32[64,1], index: 8, kind: input, shape index: {}]   ;;  %s7161_s9 = inlined_call_operand.vmem [shape: f32[28,896], index: 9, kind: input, shape index: {}]   ;;  %s7162_s10 = inlined_call_operand.vmem [shape: f32[7,16], index: 10, kind: input, shape index: {}]   ;;  %s7163_s11 = inlined_call_operand.vmem [shape: f32[64,28], index: 11, kind: input, shape index: {}]   ;;  %s7164_s12 = inlined_call_operand.vmem [shape: f32[64,1], index: 12, kind: input, shape index: {}]   ;;  %s7165_s13 = inlined_call_operand.vmem [shape: f32[3,16,16], index: 13, kind: input, shape index: {}]   ;;  %s7166_s14 = inlined_call_operand.vmem [shape: f32[3,128,128], index: 14, kind: input, shape index: {}]   ;;  %s7167_s15 = inlined_call_operand.vmem [shape: f32[3,128,64], index: 15, kind: input, shape index: {}]   ;;  %s7168_s16 = inlined_call_operand.vmem [shape: f32[3,128,64], index: 16, kind: input, shape index: {}]   ;;  %s7169_s17 = inlined_call_operand.vmem [shape: f32[128,1], index: 17, kind: input, shape index: {}]   ;;  %s7170_s18 = inlined_call_operand.vmem [shape: f32[128,1], index: 18, kind: input, shape index: {}]   ;;  %s7171_s19 = inlined_call_operand.vmem [shape: f32[3,128,128], index: 19, kind: input, shape index: {}]   ;;  %s7172_s20 = inlined_call_operand.vmem [shape: f32[128,1], index: 20, kind: input, shape index: {}]   ;;  %s7173_s21 = inlined_call_operand.vmem [shape: f32[128,1], index: 21, kind: input, shape index: {}]   ;;  %s7174_s22 = inlined_call_operand.vmem [shape: f32[2,128,16], index: 22, kind: output, shape index: {}]  }
   0x1   :  { %7179 = sst [smem:[#allocation19_spill]] %s7152_s0 }
   0x2   :  { %7180 = sst [smem:[#allocation20_spill]] %s7153_s1 }
   0x3   :  { %7181 = sst [smem:[#allocation21_spill]] %s7154_s2 }
   0x4   :  { %7182 = sst [smem:[#allocation22_spill]] %s7155_s3  ;;  %s5032_s3 = smov 0  }
   0x5   :  { %7183 = sst [smem:[#allocation23_spill]] %s7156_s4 }
   0x6   :  { %7184 = sst [smem:[#allocation24_spill]] %s7157_s5 }
   0x7   :  { %7185 = sst [smem:[#allocation25_spill]] %s7158_s6 }
   0x8 LB: > { %s4469_s28 = sadd.s32 4294967295, %s4914_s3   ;;  %p4473_p0 = scmp.ge.s32.totalorder %s4914_s3, 1  ;;  %s4914_s3 = sphi %s5032_s3, %s32_s3  }
   0x9   : > { %p632_p1 = scmp.lt.s32.totalorder %s4914_s3, 3 }
   0xb   : > { %p633_p2 = pnand %p4473_p0, %p632_p1 }
   0xd   : > { %636 = sbr.rel (%p633_p2) target bundleno = 2175 (0x87f), region = 108 }
  0x12   : > { %p704_p3 = scmp.lt.s32.totalorder %s4469_s28, 1  ;;  %s7186_s0 = sld [smem:[#allocation20_spill]]  ;;  %vm733_vm0 = vcmask 64512   ;;  %vm815_vm1 = vcmask 523264   ;;  %vm1076_vm2 = vcmask 1044480   ;;  %vm1066_vm3 = vcmask 39936  }
  0x13   : > { %s7187_s24 = sld [smem:[#allocation24_spill]]  ;;  %vm1187_vm4 = vcmask 1043456   ;;  %vm1162_vm5 = vcmask 162816   ;;  %vm1613_vm11 = vcmask 1046528   ;;  %vm1600_vm15 = vcmask 56320  }
  0x14   : > { %s7228_s28 = smov (!%p704_p3, %s4469_s28), 1  ;;  %s7188_s1 = sld [smem:[#allocation19_spill]] }
  0x15   : > { %s4894_s29 = smul.u32 320, %s7228_s28  ;;  %s4860_s26 = sshll.u32 %s7228_s28, 6 }
  0x16   : > { %s7189_s2 = sld [smem:[#allocation22_spill]] }
  0x17   : > { %s7190_s27 = sld [smem:[#allocation25_spill]] }
  0x18   : > { %s5046_s23 = scalar_lea.vmem %s7186_s0, %s4894_s29  ;;  %s7192_s6 = sld [smem:[#allocation23_spill]] }
  0x19   : > { %v953_v0 = vld [vmem:[%s5046_s23 + $0x78] sm:$0xff]  ;;  %v952_v2 = vld [vmem:[%s5046_s23 + $0x70] sm:$0xff]  ;;  %v951_v4 = vld [vmem:[%s5046_s23 + $0x68] sm:$0xff] }
  0x1a   : > { %v969_v1 = vld [vmem:[%s5046_s23 + $0xf8] sm:$0xff]  ;;  %987 = vmatpush.msra.mxu2 %v953_v0  ;;  %v968_v3 = vld [vmem:[%s5046_s23 + $0xf0] sm:$0xff]  ;;  %v967_v5 = vld [vmem:[%s5046_s23 + $0xe8] sm:$0xff]  ;;  %s5100_s5 = scalar_lea.vmem %s7188_s1, %s4860_s26 }
  0x1b   : > { %1013 = vmatpush.msra.mxu3 %v969_v1  ;;  %v950_v6 = vld [vmem:[%s5046_s23 + $0x60] sm:$0xff]  ;;  %v949_v8 = vld [vmem:[%s5046_s23 + $0x58] sm:$0xff]  ;;  %v948_v10 = vld [vmem:[%s5046_s23 + $0x50] sm:$0xff] }
  0x1c   : > { %988 = vmatpush.msra.mxu2 %v952_v2  ;;  %v966_v7 = vld [vmem:[%s5046_s23 + $0xe0] sm:$0xff]  ;;  %v965_v9 = vld [vmem:[%s5046_s23 + $0xd8] sm:$0xff]  ;;  %v964_v11 = vld [vmem:[%s5046_s23 + $0xd0] sm:$0xff] }
  0x1d   : > { %1014 = vmatpush.msra.mxu3 %v968_v3  ;;  %v947_v12 = vld [vmem:[%s5046_s23 + $0x48] sm:$0xff]  ;;  %v946_v14 = vld [vmem:[%s5046_s23 + $0x40] sm:$0xff]  ;;  %v945_v16 = vld [vmem:[%s5046_s23 + $0x38] sm:$0xff] }
  0x1e   : > { %989 = vmatpush.msra.mxu2 %v951_v4  ;;  %v963_v13 = vld [vmem:[%s5046_s23 + $0xc8] sm:$0xff]  ;;  %v962_v15 = vld [vmem:[%s5046_s23 + $0xc0] sm:$0xff]  ;;  %v961_v17 = vld [vmem:[%s5046_s23 + $0xb8] sm:$0xff] }
  0x1f   : > { %1015 = vmatpush.msra.mxu3 %v967_v5  ;;  %v944_v18 = vld [vmem:[%s5046_s23 + $0x30] sm:$0xff]  ;;  %v943_v20 = vld [vmem:[%s5046_s23 + $0x28] sm:$0xff]  ;;  %v942_v22 = vld [vmem:[%s5046_s23 + $0x20] sm:$0xff] }
  0x20   : > { %990 = vmatpush.msra.mxu2 %v950_v6  ;;  %v960_v19 = vld [vmem:[%s5046_s23 + $0xb0] sm:$0xff]  ;;  %v959_v21 = vld [vmem:[%s5046_s23 + $0xa8] sm:$0xff]  ;;  %v958_v23 = vld [vmem:[%s5046_s23 + $0xa0] sm:$0xff] }
  0x21   : > { %1016 = vmatpush.msra.mxu3 %v966_v7  ;;  %v941_v24 = vld [vmem:[%s5046_s23 + $0x18] sm:$0xff]  ;;  %v940_v26 = vld [vmem:[%s5046_s23 + $0x10] sm:$0xff]  ;;  %v939_v28 = vld [vmem:[%s5046_s23 + $0x8] sm:$0xff] }
  0x22   : > { %991 = vmatpush.msra.mxu2 %v949_v8  ;;  %v957_v25 = vld [vmem:[%s5046_s23 + $0x98] sm:$0xff]  ;;  %v956_v27 = vld [vmem:[%s5046_s23 + $0x90] sm:$0xff]  ;;  %v955_v29 = vld [vmem:[%s5046_s23 + $0x88] sm:$0xff] }
  0x23   : > { %1017 = vmatpush.msra.mxu3 %v965_v9  ;;  %v938_v30 = vld [vmem:[%s5046_s23] sm:$0xff]  ;;  %v930_v33 = vld [vmem:[%s7187_s24 + $0x8] sm:$0xff]  ;;  %v977_v34 = vld [vmem:[%s5046_s23 + $0x138] sm:$0xff] }
  0x24   : > { %992 = vmatpush.msra.mxu2 %v948_v10  ;;  %v954_v31 = vld [vmem:[%s5046_s23 + $0x80] sm:$0xff]  ;;  %v976_v35 = vld [vmem:[%s5046_s23 + $0x130] sm:$0xff]  ;;  %v975_v36 = vld [vmem:[%s5046_s23 + $0x128] sm:$0xff] }
  0x25   : > { %1018 = vmatpush.msra.mxu3 %v964_v11  ;;  %v929_v32 = vld [vmem:[%s7187_s24] sm:$0xff]  ;;  %v932_v38 = vld [vmem:[%s7187_s24 + $0x18] sm:$0xff]  ;;  %v972_v41 = vld [vmem:[%s5046_s23 + $0x110] sm:$0xff] }
  0x26   : > { %993 = vmatpush.msra.mxu2 %v947_v12  ;;  %v974_v37 = vld [vmem:[%s5046_s23 + $0x120] sm:$0xff]  ;;  %v973_v40 = vld [vmem:[%s5046_s23 + $0x118] sm:$0xff]  ;;  %v971_v44 = vld [vmem:[%s5046_s23 + $0x108] sm:$0xff] }
  0x27   : > { %1019 = vmatpush.msra.mxu3 %v963_v13  ;;  %v933_v39 = vld [vmem:[%s7187_s24 + $0x20] sm:$0xff]  ;;  %v935_v46 = vld [vmem:[%s7187_s24 + $0x30] sm:$0xf]  ;;  %v936_v47 = vld [vmem:[%s7187_s24 + $0x38] sm:$0xf] }
  0x28   : > { %994 = vmatpush.msra.mxu2 %v946_v14  ;;  %v732_v42 = vld [vmem:[%s7189_s2] sm:$0xff]  ;;  %v725_v48 = vld [vmem:[%s5100_s5 + $0x8] sm:$0xff]  ;;  %v931_v49 = vld [vmem:[%s7187_s24 + $0x10] sm:$0xff] }
  0x29   : > { %1020 = vmatpush.msra.mxu3 %v962_v15  ;;  %v724_v43 = vld [vmem:[%s5100_s5] sm:$0xff]  ;;  %773 = vmatpush.msra.mxu0 %v732_v42  ;;  %v726_v50 = vld [vmem:[%s5100_s5 + $0x10] sm:$0xff]  ;;  %v934_v51 = vld [vmem:[%s7187_s24 + $0x28] sm:$0xff] }
  0x2a   : > { %995 = vmatpush.msra.mxu2 %v945_v16  ;;  %4480 = vmatmul.msk.f32.vlgmr.msra.gmra.mxu0 %vm733_vm0, %v724_v43  ;;  %v970_v45 = vld [vmem:[%s5046_s23 + $0x100] sm:$0xff]  ;;  %v727_v52 = vld [vmem:[%s5100_s5 + $0x18] sm:$0xff]  ;;  %v729_v55 = vld [vmem:[%s5100_s5 + $0x28] sm:$0xff]  ;;  %s7191_s23 = sld [smem:[#allocation21_spill]] }
  0x2b   : > { %1021 = vmatpush.msra.mxu3 %v961_v17  ;;  %v937_v53 = vld [vmem:[%s7187_s24 + $0x40] sm:$0xf]  ;;  %v730_v56 = vld [vmem:[%s5100_s5 + $0x30] sm:$0xff]  ;;  %v731_v57 = vld [vmem:[%s5100_s5 + $0x38] sm:$0xff] }
  0x2c   : > { %996 = vmatpush.msra.mxu2 %v944_v18  ;;  %v728_v54 = vld [vmem:[%s5100_s5 + $0x20] sm:$0xff]  ;;  %s4895_s5 = smul.u32 896, %s7228_s28 }
  0x2d   : > { %1022 = vmatpush.msra.mxu3 %v960_v19  ;;  %v1065_v58 = vld [vmem:[%s7190_s27] sm:$0x1f]  ;;  %s4861_s27 = sshll.u32 %s7228_s28, 7 }
  0x2e   : > { %997 = vmatpush.msra.mxu2 %v943_v20  ;;  %v803_v43 = vld [vmem:[%s7192_s6 + $0x20] sm:$0xff]  ;;  %s7100_s30 = scalar_lea.vmem %s7174_s22, %s4861_s27 }
  0x2f   : > { %1023 = vmatpush.msra.mxu3 %v959_v21 }
  0x30   : > { %998 = vmatpush.msra.mxu2 %v942_v22  ;;  %s5150_s4 = scalar_lea.vmem %s7191_s23, %s4895_s5 }
  0x31   : > { %1024 = vmatpush.msra.mxu3 %v958_v23  ;;  %v1299_v17 = vld [vmem:[%s5150_s4 + $0x78] sm:$0xff]  ;;  %v1298_v18 = vld [vmem:[%s5150_s4 + $0x70] sm:$0xff]  ;;  %v1297_v21 = vld [vmem:[%s5150_s4 + $0x68] sm:$0xff] }
  0x32   : > { %999 = vmatpush.msra.mxu2 %v941_v24  ;;  %4481 = vmatmul.msk.f32.gmra.mxu0 %vm733_vm0, %v725_v48  ;;  %v1315_v19 = vld [vmem:[%s5150_s4 + $0xf8] sm:$0xff]  ;;  %v1314_v20 = vld [vmem:[%s5150_s4 + $0xf0] sm:$0xff]  ;;  %v1296_v23 = vld [vmem:[%s5150_s4 + $0x60] sm:$0xff]  ;;  %v4916_v48 = vmov 0  }
  0x33   : > { %1025 = vmatpush.msra.mxu3 %v957_v25  ;;  %v1313_v24 = vld [vmem:[%s5150_s4 + $0xe8] sm:$0xff]  ;;  %v1295_v25 = vld [vmem:[%s5150_s4 + $0x58] sm:$0xff]  ;;  %v1306_v42 = vld [vmem:[%s5150_s4 + $0xb0] sm:$0xff]  ;;  %4906 = vset.pattern.permute.xlu1 %v4916_v48 }
  0x34   : > { %1000 = vmatpush.msra.mxu2 %v940_v26  ;;  %v1312_v26 = vld [vmem:[%s5150_s4 + $0xe0] sm:$0xff]  ;;  %4905 = vset.pattern.permute.xlu0 %v4916_v48 }
  0x35   : > { %1026 = vmatpush.msra.mxu3 %v956_v27  ;;  %v1294_v27 = vld [vmem:[%s5150_s4 + $0x50] sm:$0xff]  ;;  %4907 = vset.pattern.permute.xlu2 %v4916_v48  ;;  %v1259_v48 = vld [vmem:[%s7161_s9 + $0x18] sm:$0xff] }
  0x36   : > { %1001 = vmatpush.msra.mxu2 %v939_v28  ;;  %v1311_v28 = vld [vmem:[%s5150_s4 + $0xd8] sm:$0xff] }
  0x37   : > { %1027 = vmatpush.msra.mxu3 %v955_v29  ;;  %v799_v29 = vld [vmem:[%s7192_s6] sm:$0xff] }
  0x38   : > { %1002 = vmatpush.msra.mxu2 %v938_v30  ;;  %v800_v30 = vld [vmem:[%s7192_s6 + $0x8] sm:$0xff] }
  0x39   : > { %1028 = vmatpush.msra.mxu3 %v954_v31  ;;  %1003 = vmatmul.f32.vlgmr.msra.gmra.mxu2 %v929_v32  ;;  %v801_v31 = vld [vmem:[%s7192_s6 + $0x10] sm:$0xff]  ;;  %v1293_v32 = vld [vmem:[%s5150_s4 + $0x48] sm:$0xff] }
  0x3a   : > { %1029 = vmatmul.f32.vlgmr.msra.gmra.mxu3 %v930_v33  ;;  %1047 = vmatpush.msrb.mxu2 %v977_v34  ;;  %v1310_v33 = vld [vmem:[%s5150_s4 + $0xd0] sm:$0xff]  ;;  %v802_v34 = vld [vmem:[%s7192_s6 + $0x18] sm:$0xff] }
  0x3b   : > { %4482 = vmatmul.msk.f32.gmra.mxu0 %vm733_vm0, %v726_v50  ;;  %4507 = vmatpush.msk.msrb.mxu3 %vm1076_vm2, %v1065_v58  ;;  %v1303_v50 = vld [vmem:[%s5150_s4 + $0x98] sm:$0xff]  ;;  %v1300_v58 = vld [vmem:[%s5150_s4 + $0x80] sm:$0xff] }
  0x3c   : > { %1048 = vmatpush.msrb.mxu2 %v976_v35  ;;  %v1292_v35 = vld [vmem:[%s5150_s4 + $0x40] sm:$0xff] }
  0x3d   : > { %1425 = vmatpush.msra.mxu3 %v1315_v19  ;;  %v1341_v19 = vld [vmem:[%s5150_s4 + $0x1c8] sm:$0xff] }
  0x3e   : > { %1049 = vmatpush.msrb.mxu2 %v975_v36  ;;  %v1309_v36 = vld [vmem:[%s5150_s4 + $0xc8] sm:$0xff] }
  0x3f   : > { %1426 = vmatpush.msra.mxu3 %v1314_v20  ;;  %v1270_v20 = vld [vmem:[%s7161_s9 + $0x70] sm:$0xff] }
  0x40   : > { %1050 = vmatpush.msrb.mxu2 %v974_v37  ;;  %v1291_v37 = vld [vmem:[%s5150_s4 + $0x38] sm:$0xff] }
  0x41   : > { %1006 = vmatmul.f32.gmra.mxu2 %v932_v38  ;;  %1427 = vmatpush.msra.mxu3 %v1313_v24  ;;  %v1308_v38 = vld [vmem:[%s5150_s4 + $0xc0] sm:$0xff]  ;;  %v1322_v24 = vld [vmem:[%s5150_s4 + $0x130] sm:$0xff] }
  0x42   : > { %1032 = vmatmul.f32.gmra.mxu3 %v933_v39  ;;  %1051 = vmatpush.msrb.mxu2 %v973_v40  ;;  %v1290_v39 = vld [vmem:[%s5150_s4 + $0x30] sm:$0xff]  ;;  %v1307_v40 = vld [vmem:[%s5150_s4 + $0xb8] sm:$0xff] }
  0x43   : > { %4483 = vmatmul.msk.f32.gmra.mxu0 %vm733_vm0, %v727_v52  ;;  %1428 = vmatpush.msra.mxu3 %v1312_v26  ;;  %v1285_v52 = vld [vmem:[%s5150_s4 + $0x8] sm:$0xff] }
  0x44   : > { %1052 = vmatpush.msrb.mxu2 %v972_v41  ;;  %v1289_v41 = vld [vmem:[%s5150_s4 + $0x28] sm:$0xff] }
  0x45   : > { %1429 = vmatpush.msra.mxu3 %v1311_v28  ;;  %v1115_v26 = vld [vmem:[%s7160_s8 + $0x8] sm:$0xff]  ;;  %v1338_v28 = vld [vmem:[%s5150_s4 + $0x1b0] sm:$0xff] }
  0x46   : > { %1053 = vmatpush.msrb.mxu2 %v971_v44  ;;  %v1288_v44 = vld [vmem:[%s5150_s4 + $0x20] sm:$0xff] }
  0x47   : > { %1430 = vmatpush.msra.mxu3 %v1310_v33  ;;  %v1277_v33 = vld [vmem:[%s7161_s9 + $0xa8] sm:$0xf] }
  0x48   : > { %1054 = vmatpush.msrb.mxu2 %v970_v45  ;;  %v1305_v45 = vld [vmem:[%s5150_s4 + $0xa8] sm:$0xff] }
  0x49   : > { %1009 = vmatmul.f32.gmra.mxu2 %v935_v46  ;;  %1431 = vmatpush.msra.mxu3 %v1309_v36  ;;  %v1287_v46 = vld [vmem:[%s5150_s4 + $0x18] sm:$0xff]  ;;  %v1278_v36 = vld [vmem:[%s7161_s9 + $0xb0] sm:$0xf] }
  0x4a   : > { %1035 = vmatmul.f32.gmra.mxu3 %v936_v47  ;;  %1396 = vmatpush.msra.mxu2 %v1299_v17  ;;  %v1304_v47 = vld [vmem:[%s5150_s4 + $0xa0] sm:$0xff]  ;;  %v806_v17 = vld [vmem:[%s7192_s6 + $0x38] sm:$0xff] }
  0x4b   : > { %4484 = vmatmul.msk.f32.gmra.mxu0 %vm733_vm0, %v728_v54  ;;  %1432 = vmatpush.msra.mxu3 %v1308_v38  ;;  %v804_v54 = vld [vmem:[%s7192_s6 + $0x28] sm:$0xff]  ;;  %v1335_v38 = vld [vmem:[%s5150_s4 + $0x198] sm:$0xff] }
  0x4c   : > { %1397 = vmatpush.msra.mxu2 %v1298_v18  ;;  %v1324_v18 = vld [vmem:[%s5150_s4 + $0x140] sm:$0xff] }
  0x4d   : > { %1433 = vmatpush.msra.mxu3 %v1307_v40  ;;  %v1334_v40 = vld [vmem:[%s5150_s4 + $0x190] sm:$0xff] }
  0x4e   : > { %1398 = vmatpush.msra.mxu2 %v1297_v21  ;;  %v1323_v21 = vld [vmem:[%s5150_s4 + $0x138] sm:$0xff] }
  0x4f   : > { %1434 = vmatpush.msra.mxu3 %v1306_v42 }
  0x50   : > { %1399 = vmatpush.msra.mxu2 %v1296_v23  ;;  %v1271_v23 = vld [vmem:[%s7161_s9 + $0x78] sm:$0xff] }
  0x51   : > { %4504 = vmatmul.msk.f32.vlgmr.msrb.gmra.mxu2 %vm815_vm1, %v931_v49  ;;  %1435 = vmatpush.msra.mxu3 %v1305_v45  ;;  %v1286_v49 = vld [vmem:[%s5150_s4 + $0x10] sm:$0xff] }
  0x52   : > { %1400 = vmatpush.msra.mxu2 %v1295_v25  ;;  %v1339_v25 = vld [vmem:[%s5150_s4 + $0x1b8] sm:$0xff]  ;;  %v1258_v45 = vld [vmem:[%s7161_s9 + $0x10] sm:$0xff] }
  0x53   : > { %4485 = vmatmul.msk.f32.gmra.mxu0 %vm733_vm0, %v729_v55  ;;  %1436 = vmatpush.msra.mxu3 %v1304_v47  ;;  %v1284_v55 = vld [vmem:[%s5150_s4] sm:$0xff] }
  0x54   : > { %1401 = vmatpush.msra.mxu2 %v1294_v27  ;;  %v1321_v27 = vld [vmem:[%s5150_s4 + $0x128] sm:$0xff]  ;;  %v1332_v47 = vld [vmem:[%s5150_s4 + $0x180] sm:$0xff] }
  0x55   : > { %1437 = vmatpush.msra.mxu3 %v1303_v50  ;;  %v1362_v50 = vld [vmem:[%s5150_s4 + $0x270] sm:$0xff] }
  0x56   : > { %1402 = vmatpush.msra.mxu2 %v1293_v32  ;;  %v1337_v32 = vld [vmem:[%s5150_s4 + $0x1a8] sm:$0xff] }
  0x58   : > { %1403 = vmatpush.msra.mxu2 %v1292_v35  ;;  %v1336_v35 = vld [vmem:[%s5150_s4 + $0x1a0] sm:$0xff] }
  0x59   : > { %4505 = vmatmul.msk.f32.gmra.mxu2 %vm815_vm1, %v934_v51  ;;  %v1119_v51 = vld [vmem:[%s7160_s8 + $0x28] sm:$0xff] }
  0x5a   : > { %1404 = vmatpush.msra.mxu2 %v1291_v37  ;;  %1149 = vperm.xlu1 %4906, %v1119_v51   ;;  %v1318_v37 = vld [vmem:[%s5150_s4 + $0x110] sm:$0xff] }
  0x5b   : > { %4486 = vmatmul.msk.f32.gmra.mxu0 %vm733_vm0, %v730_v56  ;;  %v1301_v56 = vld [vmem:[%s5150_s4 + $0x88] sm:$0xff]  ;;  %v809_v51 = vld [vmem:[%s7192_s6 + $0x50] sm:$0xff] }
  0x5c   : > { %1405 = vmatpush.msra.mxu2 %v1290_v39  ;;  %v1317_v39 = vld [vmem:[%s5150_s4 + $0x108] sm:$0xff] }
  0x5e   : > { %1406 = vmatpush.msra.mxu2 %v1289_v41  ;;  %v808_v41 = vld [vmem:[%s7192_s6 + $0x48] sm:$0xff] }
  0x60   : > { %1407 = vmatpush.msra.mxu2 %v1288_v44  ;;  %v1333_v44 = vld [vmem:[%s5150_s4 + $0x188] sm:$0xff] }
  0x61   : > { %4506 = vmatmul.msk.f32.gmra.mxu2 %vm815_vm1, %v937_v53  ;;  %v1302_v53 = vld [vmem:[%s5150_s4 + $0x90] sm:$0xff] }
  0x62   : > { %1408 = vmatpush.msra.mxu2 %v1287_v46  ;;  %1438 = vmatpush.msra.mxu3 %v1302_v53  ;;  %v1106_v46 = vld [vmem:[%s7159_s7] sm:$0xff]  ;;  %v1265_v53 = vld [vmem:[%s7161_s9 + $0x48] sm:$0xff] }
  0x63   : > { %4487 = vmatmul.msk.f32.gmra.mxu0 %vm733_vm0, %v731_v57  ;;  %v1256_v57 = vld [vmem:[%s7161_s9] sm:$0xff]  ;;  %vm1702_vm0 = vcmask 228352  }
  0x64   : > { %1409 = vmatpush.msra.mxu2 %v1286_v49  ;;  %1439 = vmatpush.msra.mxu3 %v1301_v56  ;;  %v1363_v49 = vld [vmem:[%s5150_s4 + $0x278] sm:$0xff]  ;;  %v1266_v56 = vld [vmem:[%s7161_s9 + $0x50] sm:$0xff] }
  0x66   : > { %1410 = vmatpush.msra.mxu2 %v1285_v52  ;;  %1440 = vmatpush.msra.mxu3 %v1300_v58  ;;  %v1361_v52 = vld [vmem:[%s5150_s4 + $0x268] sm:$0xff]  ;;  %v1117_v58 = vld [vmem:[%s7160_s8 + $0x18] sm:$0xff] }
  0x67   : > { %1139 = vperm.xlu2 %4907, %v1117_v58  }
  0x68   : > { %1411 = vmatpush.msra.mxu2 %v1284_v55  ;;  %v1107_v55 = vld [vmem:[%s7159_s7 + $0x8] sm:$0xff] }
  0x69   : > { %1412 = vmatmul.f32.vlgmr.msra.gmra.mxu2 %v1256_v57  ;;  %v1359_v57 = vld [vmem:[%s5150_s4 + $0x258] sm:$0xff] }
  0xa7   : > { %v775_v61 = vpop.f32.mrf.mxu0 }
  0xaf   : > { %v778_v0 = vpop.f32.mrf.mxu0 }
  0xb8   : > { %v781_v5 = vpop.f32.mrf.mxu0 }
  0xbc   : > { %v1004_v59 = vpop.f32.mrf.mxu2 }
  0xbd   : > { %v1030_v62 = vpop.f32.mrf.mxu3 }
  0xbe   : > { %v1031_v1 = vadd.f32 %v1030_v62, %v1004_v59  ;;  %v1331_v59 = vld [vmem:[%s5150_s4 + $0x178] sm:$0xff] }
  0xbf   : > { %1454 = vmatpush.msrb.mxu2 %v1331_v59  ;;  %v1347_v62 = vld [vmem:[%s5150_s4 + $0x1f8] sm:$0xff]  ;;  %v1358_v59 = vld [vmem:[%s5150_s4 + $0x250] sm:$0xff] }
  0xc0   : > { %v784_v9 = vpop.f32.mrf.mxu0 }
  0xc4   : > { %v1007_v60 = vpop.f32.mrf.mxu2 }
  0xc5   : > { %v1033_v4 = vpop.f32.mrf.mxu3 }
  0xc6   : > { %v1034_v6 = vadd.f32 %v1033_v4, %v1007_v60  ;;  %v1257_v60 = vld [vmem:[%s7161_s9 + $0x8] sm:$0xff]  ;;  %v1328_v4 = vld [vmem:[%s5150_s4 + $0x160] sm:$0xff] }
  0xc8   : > { %v787_v14 = vpop.f32.mrf.mxu0 }
  0xcc   : > { %v1010_v63 = vpop.f32.mrf.mxu2 }
  0xcd   : > { %v1036_v10 = vpop.f32.mrf.mxu3 }
  0xce   : > { %v1037_v11 = vadd.f32 %v1036_v10, %v1010_v63  ;;  %v1121_v63 = vld [vmem:[%s7160_s8 + $0x38] sm:$0xff]  ;;  %v1326_v10 = vld [vmem:[%s5150_s4 + $0x150] sm:$0xff] }
  0xcf   : > { %1159 = vperm.xlu0 %4905, %v1121_v63   ;;  %v1356_v63 = vld [vmem:[%s5150_s4 + $0x240] sm:$0xff] }
  0xd0   : > { %v790_v15 = vpop.f32.mrf.mxu0 }
  0xd4   : > { %v1056_v2 = vpop.f32.mrf.mxu2 }
  0xd5   : > { %v1057_v3 = vadd.f32 %v1056_v2, %v1031_v1  ;;  %v1329_v1 = vld [vmem:[%s5150_s4 + $0x168] sm:$0xff]  ;;  %v1346_v2 = vld [vmem:[%s5150_s4 + $0x1f0] sm:$0xff] }
  0xd7   : > { %4508 = vmatmul.msk.f32.vlgmr.msrb.gmra.mxu3 %vm1066_vm3, %v1057_v3  ;;  %v805_v3 = vld [vmem:[%s7192_s6 + $0x30] sm:$0xff] }
  0xd8   : > { %v793_v16 = vpop.f32.mrf.mxu0  ;;  %1483 = vmatpush.msrb.mxu3 %v1347_v62  ;;  %v1272_v62 = vld [vmem:[%s7161_s9 + $0x80] sm:$0xff] }
  0xda   : > { %1484 = vmatpush.msrb.mxu3 %v1346_v2  ;;  %v1355_v2 = vld [vmem:[%s5150_s4 + $0x238] sm:$0xff] }
  0xdc   : > { %v1059_v7 = vpop.f32.mrf.mxu2 }
  0xdd   : > { %v1060_v8 = vadd.f32 %v1059_v7, %v1034_v6  ;;  %v1263_v6 = vld [vmem:[%s7161_s9 + $0x38] sm:$0xff] }
  0xde   : > { %v1327_v7 = vld [vmem:[%s5150_s4 + $0x158] sm:$0xff]  ;;  %1415 = vmatmul.f32.gmra.mxu2 %v1263_v6  ;;  %v1353_v6 = vld [vmem:[%s5150_s4 + $0x228] sm:$0xff] }
  0xdf   : > { %4509 = vmatmul.msk.f32.gmra.mxu3 %vm1066_vm3, %v1060_v8  ;;  %v1344_v8 = vld [vmem:[%s5150_s4 + $0x1e0] sm:$0xff] }
  0xe0   : > { %v796_v22 = vpop.f32.mrf.mxu0 }
  0xe1   : > { %872 = vmatpush.msra.mxu1 %v796_v22  ;;  %v1340_v22 = vld [vmem:[%s5150_s4 + $0x1c0] sm:$0xff] }
  0xe3   : > { %873 = vmatpush.msra.mxu1 %v793_v16 }
  0xe4   : > { %v1062_v12 = vpop.f32.mrf.mxu2 }
  0xe5   : > { %v1063_v13 = vadd.f32 %v1062_v12, %v1037_v11  ;;  %874 = vmatpush.msra.mxu1 %v790_v15  ;;  %v1343_v11 = vld [vmem:[%s5150_s4 + $0x1d8] sm:$0xff]  ;;  %v1120_v12 = vld [vmem:[%s7160_s8 + $0x30] sm:$0xff] }
  0xe6   : > { %v1342_v15 = vld [vmem:[%s5150_s4 + $0x1d0] sm:$0xff]  ;;  %1154 = vperm.xlu0 %4905, %v1120_v12   ;;  %1418 = vmatmul.f32.gmra.mxu2 %v1270_v20  ;;  %v1393_v20 = vld [vmem:[%s5150_s4 + $0x368] sm:$0xff] }
  0xe7   : > { %4510 = vmatmul.msk.f32.gmra.mxu3 %vm1066_vm3, %v1063_v13  ;;  %875 = vmatpush.msra.mxu1 %v787_v14  ;;  %v1114_v13 = vld [vmem:[%s7160_s8] sm:$0xff]  ;;  %v1325_v14 = vld [vmem:[%s5150_s4 + $0x148] sm:$0xff]  ;;  %v1350_v12 = vld [vmem:[%s5150_s4 + $0x210] sm:$0xff] }
  0xe9   : > { %876 = vmatpush.msra.mxu1 %v784_v9  ;;  %v1264_v9 = vld [vmem:[%s7161_s9 + $0x40] sm:$0xff] }
  0xeb   : > { %877 = vmatpush.msra.mxu1 %v781_v5  ;;  %v1345_v5 = vld [vmem:[%s5150_s4 + $0x1e8] sm:$0xff] }
  0xec   : > { %1485 = vmatpush.msrb.mxu3 %v1345_v5  ;;  %v811_v5 = vld [vmem:[%s7192_s6 + $0x60] sm:$0xff] }
  0xed   : > { %878 = vmatpush.msra.mxu1 %v778_v0  ;;  %v1118_v0 = vld [vmem:[%s7160_s8 + $0x20] sm:$0xff] }
  0xee   : > { %1144 = vperm.xlu1 %4906, %v1118_v0   ;;  %1486 = vmatpush.msrb.mxu3 %v1344_v8  ;;  %v1108_v0 = vld [vmem:[%s7159_s7 + $0x10] sm:$0xff]  ;;  %v1352_v8 = vld [vmem:[%s5150_s4 + $0x220] sm:$0xff] }
  0xef   : > { %879 = vmatpush.msra.mxu1 %v775_v61  ;;  %v1330_v61 = vld [vmem:[%s5150_s4 + $0x170] sm:$0xff]  ;;  %1441 = vmatmul.f32.vlgmr.msra.gmra.mxu3 %v1257_v60  ;;  %v810_v60 = vld [vmem:[%s7192_s6 + $0x58] sm:$0xff] }
  0xf0   : > { %4488 = vmatmul.msk.f32.vlgmr.msra.gmra.mxu1 %vm815_vm1, %v799_v29  ;;  %1455 = vmatpush.msrb.mxu2 %v1330_v61  ;;  %v807_v29 = vld [vmem:[%s7192_s6 + $0x40] sm:$0xff]  ;;  %v1357_v61 = vld [vmem:[%s5150_s4 + $0x248] sm:$0xff] }
  0xf1   : > { %1487 = vmatpush.msrb.mxu3 %v1343_v11  ;;  %1129 = vperm.xlu0 %4905, %v1115_v26   ;;  %v1351_v11 = vld [vmem:[%s5150_s4 + $0x218] sm:$0xff]  ;;  %v1376_v26 = vld [vmem:[%s5150_s4 + $0x2e0] sm:$0xff] }
  0xf2   : > { %1456 = vmatpush.msrb.mxu2 %v1329_v1  ;;  %v1273_v1 = vld [vmem:[%s7161_s9 + $0x88] sm:$0xff] }
  0xf3   : > { %1488 = vmatpush.msrb.mxu3 %v1342_v15  ;;  %1421 = vmatmul.f32.gmra.mxu2 %v1277_v33  ;;  %v1349_v15 = vld [vmem:[%s5150_s4 + $0x208] sm:$0xff]  ;;  %v814_v33 = vld [vmem:[%s7192_s6 + $0x78] sm:$0xff] }
  0xf4   : > { %1457 = vmatpush.msrb.mxu2 %v1328_v4  ;;  %v1354_v4 = vld [vmem:[%s5150_s4 + $0x230] sm:$0xff] }
  0xf5   : > { %1489 = vmatpush.msrb.mxu3 %v1341_v19  ;;  %v1379_v19 = vld [vmem:[%s5150_s4 + $0x2f8] sm:$0xff] }
  0xf6   : > { %1458 = vmatpush.msrb.mxu2 %v1327_v7  ;;  %1124 = vperm.xlu1 %4906, %v1114_v13   ;;  %v1279_v7 = vld [vmem:[%s7161_s9 + $0xb8] sm:$0xf]  ;;  %v812_v13 = vld [vmem:[%s7192_s6 + $0x68] sm:$0xff] }
  0xf7   : > { %1444 = vmatmul.f32.gmra.mxu3 %v1264_v9  ;;  %v1109_v9 = vld [vmem:[%s7159_s7 + $0x18] sm:$0xff] }
  0xf8   : > { %4489 = vmatmul.msk.f32.gmra.mxu1 %vm815_vm1, %v800_v30  ;;  %1459 = vmatpush.msrb.mxu2 %v1326_v10  ;;  %v1280_v10 = vld [vmem:[%s7161_s9 + $0xc0] sm:$0xf] }
  0xf9   : > { %1490 = vmatpush.msrb.mxu3 %v1340_v22  ;;  %v1392_v22 = vld [vmem:[%s5150_s4 + $0x360] sm:$0xff] }
  0xfa   : > { %1460 = vmatpush.msrb.mxu2 %v1325_v14  ;;  %v1395_v14 = vld [vmem:[%s5150_s4 + $0x378] sm:$0xff] }
  0xfb   : > { %1491 = vmatpush.msrb.mxu3 %v1339_v25  ;;  %v1391_v25 = vld [vmem:[%s5150_s4 + $0x358] sm:$0xff] }
  0xfc   : > { %1461 = vmatpush.msrb.mxu2 %v1324_v18  ;;  %v1110_v18 = vld [vmem:[%s7159_s7 + $0x20] sm:$0xff] }
  0xfd   : > { %1492 = vmatpush.msrb.mxu3 %v1338_v28  ;;  %v1111_v28 = vld [vmem:[%s7159_s7 + $0x28] sm:$0xff] }
  0xfe   : > { %1462 = vmatpush.msrb.mxu2 %v1323_v21  ;;  %v1378_v21 = vld [vmem:[%s5150_s4 + $0x2f0] sm:$0xff] }
  0xff   : > { %1447 = vmatmul.f32.gmra.mxu3 %v1271_v23  ;;  %v813_v23 = vld [vmem:[%s7192_s6 + $0x70] sm:$0xff] }
 0x100   : > { %4490 = vmatmul.msk.f32.gmra.mxu1 %vm815_vm1, %v801_v31  ;;  %1463 = vmatpush.msrb.mxu2 %v1322_v24  ;;  %v1320_v31 = vld [vmem:[%s5150_s4 + $0x120] sm:$0xff]  ;;  %v1377_v24 = vld [vmem:[%s5150_s4 + $0x2e8] sm:$0xff] }
 0x101   : > { %1493 = vmatpush.msrb.mxu3 %v1337_v32  ;;  %v1388_v32 = vld [vmem:[%s5150_s4 + $0x340] sm:$0xff] }
 0x102   : > { %1464 = vmatpush.msrb.mxu2 %v1321_v27  ;;  %v1390_v27 = vld [vmem:[%s5150_s4 + $0x350] sm:$0xff] }
 0x103   : > { %1494 = vmatpush.msrb.mxu3 %v1336_v35  ;;  %v1387_v35 = vld [vmem:[%s5150_s4 + $0x338] sm:$0xff] }
 0x104   : > { %1465 = vmatpush.msrb.mxu2 %v1320_v31  ;;  %v1374_v31 = vld [vmem:[%s5150_s4 + $0x2d0] sm:$0xff] }
 0x105   : > { %1495 = vmatpush.msrb.mxu3 %v1335_v38  ;;  %v1112_v38 = vld [vmem:[%s7159_s7 + $0x30] sm:$0xff] }
 0x107   : > { %1450 = vmatmul.f32.gmra.mxu3 %v1278_v36  ;;  %v1372_v36 = vld [vmem:[%s5150_s4 + $0x2c0] sm:$0xff] }
 0x108   : > { %4491 = vmatmul.msk.f32.gmra.mxu1 %vm815_vm1, %v802_v34  ;;  %v1319_v34 = vld [vmem:[%s5150_s4 + $0x118] sm:$0xff]  ;;  %1496 = vmatpush.msrb.mxu3 %v1334_v40 }
 0x109   : > { %1466 = vmatpush.msrb.mxu2 %v1319_v34  ;;  %v1373_v34 = vld [vmem:[%s5150_s4 + $0x2c8] sm:$0xff]  ;;  %v1371_v40 = vld [vmem:[%s5150_s4 + $0x2b8] sm:$0xff] }
 0x10a   : > { %1497 = vmatpush.msrb.mxu3 %v1333_v44  ;;  %v1369_v44 = vld [vmem:[%s5150_s4 + $0x2a8] sm:$0xff] }
 0x10b   : > { %1467 = vmatpush.msrb.mxu2 %v1318_v37  ;;  %v1386_v37 = vld [vmem:[%s5150_s4 + $0x330] sm:$0xff] }
 0x10c   : > { %1498 = vmatpush.msrb.mxu3 %v1332_v47  ;;  %v1382_v47 = vld [vmem:[%s5150_s4 + $0x310] sm:$0xff] }
 0x10d   : > { %1468 = vmatpush.msrb.mxu2 %v1317_v39 }
 0x10f   : > { %1499 = vmatmul.f32.vlgmr.msrb.gmra.mxu3 %v1259_v48  ;;  %v1113_v48 = vld [vmem:[%s7159_s7 + $0x38] sm:$0xff] }
 0x110   : > { %4492 = vmatmul.msk.f32.gmra.mxu1 %vm815_vm1, %v803_v43  ;;  %v1316_v43 = vld [vmem:[%s5150_s4 + $0x100] sm:$0xff] }
 0x111   : > { %1469 = vmatpush.msrb.mxu2 %v1316_v43  ;;  %v1384_v43 = vld [vmem:[%s5150_s4 + $0x320] sm:$0xff] }
 0x112   : > { %1470 = vmatmul.f32.vlgmr.msrb.gmra.mxu2 %v1258_v45  ;;  %v1383_v45 = vld [vmem:[%s5150_s4 + $0x318] sm:$0xff] }
 0x113   : > { %1570 = vmatpush.msra.mxu2 %v1395_v14  ;;  %v1657_v14 = vld [vmem:[%s7164_s12 + $0x18] sm:$0xff] }
 0x117   : > { %1502 = vmatmul.f32.gmra.mxu3 %v1266_v56  ;;  %v1364_v56 = vld [vmem:[%s5150_s4 + $0x280] sm:$0xff] }
 0x118   : > { %4493 = vmatmul.msk.f32.gmra.mxu1 %vm815_vm1, %v804_v54  ;;  %v1360_v54 = vld [vmem:[%s5150_s4 + $0x260] sm:$0xff] }
 0x11a   : > { %1473 = vmatmul.f32.gmra.mxu2 %v1265_v53  ;;  %v1380_v53 = vld [vmem:[%s5150_s4 + $0x300] sm:$0xff] }
 0x11f   : > { %1505 = vmatmul.f32.gmra.mxu3 %v1273_v1  ;;  %v1283_v1 = vld [vmem:[%s7161_s9 + $0xd8] sm:$0xf] }
 0x120   : > { %4494 = vmatmul.msk.f32.gmra.mxu1 %vm815_vm1, %v805_v3  ;;  %v1116_v3 = vld [vmem:[%s7160_s8 + $0x10] sm:$0xff] }
 0x121   : > { %1134 = vperm.xlu2 %4907, %v1116_v3  }
 0x122   : > { %1476 = vmatmul.f32.gmra.mxu2 %v1272_v62  ;;  %v1276_v62 = vld [vmem:[%s7161_s9 + $0xa0] sm:$0xff] }
 0x127   : > { %1508 = vmatmul.f32.gmra.mxu3 %v1280_v10  ;;  %v1282_v10 = vld [vmem:[%s7161_s9 + $0xd0] sm:$0xf] }
 0x128   : > { %4495 = vmatmul.msk.f32.gmra.mxu1 %vm815_vm1, %v806_v17  ;;  %v1348_v17 = vld [vmem:[%s5150_s4 + $0x200] sm:$0xff] }
 0x12a   : > { %1479 = vmatmul.f32.gmra.mxu2 %v1279_v7 }
 0x130   : > { %4496 = vmatmul.msk.f32.gmra.mxu1 %vm815_vm1, %v807_v29  ;;  %v1375_v29 = vld [vmem:[%s5150_s4 + $0x2d8] sm:$0xff] }
 0x138   : > { %4497 = vmatmul.msk.f32.gmra.mxu1 %vm815_vm1, %v808_v41  ;;  %v1385_v41 = vld [vmem:[%s5150_s4 + $0x328] sm:$0xff] }
 0x140   : > { %4498 = vmatmul.msk.f32.gmra.mxu1 %vm815_vm1, %v809_v51  ;;  %v1381_v51 = vld [vmem:[%s5150_s4 + $0x308] sm:$0xff] }
 0x148   : > { %4499 = vmatmul.msk.f32.gmra.mxu1 %vm815_vm1, %v810_v60  ;;  %v1267_v60 = vld [vmem:[%s7161_s9 + $0x58] sm:$0xff] }
 0x150   : > { %4500 = vmatmul.msk.f32.gmra.mxu1 %vm815_vm1, %v811_v5 }
 0x158   : > { %4501 = vmatmul.msk.f32.gmra.mxu1 %vm815_vm1, %v812_v13 }
 0x15a   : > { %v5252_v16 = vpop.f32.mrf.mxu3 }
 0x160   : > { %4502 = vmatmul.msk.f32.gmra.mxu1 %vm815_vm1, %v813_v23  ;;  %v3357_v23 = vld [vmem:[%s7170_s18 + $0x78] sm:$0xff] }
 0x162   : > { %v1100_v30 = vpop.f32.mrf.mxu3 }
 0x168   : > { %4503 = vmatmul.msk.f32.gmra.mxu1 %vm815_vm1, %v814_v33  ;;  %v3354_v33 = vld [vmem:[%s7170_s18 + $0x60] sm:$0xff] }
 0x16a   : > { %v1103_v42 = vpop.f32.mrf.mxu3 }
 0x16b   : > { %4511 = vmatpush.msk.msrb.mxu0 %vm1187_vm4, %v1103_v42  ;;  %v1370_v42 = vld [vmem:[%s5150_s4 + $0x2b0] sm:$0xff] }
 0x16d   : > { %1205 = vmatpush.msrb.mxu0 %v1100_v30  ;;  %v1389_v30 = vld [vmem:[%s5150_s4 + $0x348] sm:$0xff]  ;;  %v5418_v39 = vpop.f32.mrf.mxu1 }
 0x16f   : > { %1206 = vmatpush.msrb.mxu0 %v5252_v16  ;;  %v1394_v16 = vld [vmem:[%s5150_s4 + $0x370] sm:$0xff] }
 0x170   : > { %4512 = vmatmul.msk.f32.vlgmr.msrb.gmra.mxu0 %vm1162_vm5, %v1106_v46  ;;  %1571 = vmatpush.msra.mxu2 %v1394_v16  ;;  %v1368_v46 = vld [vmem:[%s5150_s4 + $0x2a0] sm:$0xff] }
 0x171   : > { %1512 = vmatpush.msra.mxu0 %v1363_v49 }
 0x172   : > { %1572 = vmatpush.msra.mxu2 %v1393_v20  ;;  %v5513_v20 = vpop.f32.mrf.mxu2 }
 0x173   : > { %1513 = vmatpush.msra.mxu0 %v1362_v50  ;;  %v1367_v50 = vld [vmem:[%s5150_s4 + $0x298] sm:$0xff] }
 0x174   : > { %1573 = vmatpush.msra.mxu2 %v1392_v22 }
 0x175   : > { %1514 = vmatpush.msra.mxu0 %v1361_v52  ;;  %v5432_v49 = vpop.f32.mrf.mxu1  ;;  %v1366_v52 = vld [vmem:[%s5150_s4 + $0x290] sm:$0xff] }
 0x176   : > { %1574 = vmatpush.msra.mxu2 %v1391_v25 }
 0x177   : > { %1515 = vmatpush.msra.mxu0 %v1360_v54  ;;  %v1262_v54 = vld [vmem:[%s7161_s9 + $0x30] sm:$0xff] }
 0x178   : > { %4513 = vmatmul.msk.f32.gmra.mxu0 %vm1162_vm5, %v1107_v55  ;;  %1575 = vmatpush.msra.mxu2 %v1390_v27  ;;  %v1365_v55 = vld [vmem:[%s5150_s4 + $0x288] sm:$0xff] }
 0x179   : > { %1516 = vmatpush.msra.mxu0 %v1359_v57  ;;  %v1260_v57 = vld [vmem:[%s7161_s9 + $0x20] sm:$0xff] }
 0x17a   : > { %1576 = vmatpush.msra.mxu2 %v1389_v30  ;;  %v3243_v30 = vld [vmem:[%s7169_s17 + $0x68] sm:$0xff] }
 0x17b   : > { %1517 = vmatpush.msra.mxu0 %v1358_v59  ;;  %v1269_v59 = vld [vmem:[%s7161_s9 + $0x68] sm:$0xff] }
 0x17c   : > { %1577 = vmatpush.msra.mxu2 %v1388_v32 }
 0x17d   : > { %1518 = vmatpush.msra.mxu0 %v1357_v61  ;;  %v5446_v58 = vpop.f32.mrf.mxu1 }
 0x17e   : > { %1578 = vmatpush.msra.mxu2 %v1387_v35 }
 0x17f   : > { %1519 = vmatpush.msra.mxu0 %v1356_v63  ;;  %v1274_v63 = vld [vmem:[%s7161_s9 + $0x90] sm:$0xff] }
 0x180   : > { %4514 = vmatmul.msk.f32.gmra.mxu0 %vm1162_vm5, %v1108_v0  ;;  %1579 = vmatpush.msra.mxu2 %v1386_v37 }
 0x181   : > { %1520 = vmatpush.msra.mxu0 %v1355_v2  ;;  %v1281_v2 = vld [vmem:[%s7161_s9 + $0xc8] sm:$0xf] }
 0x182   : > { %1580 = vmatpush.msra.mxu2 %v1385_v41 }
 0x183   : > { %1521 = vmatpush.msra.mxu0 %v1354_v4  ;;  %v1261_v4 = vld [vmem:[%s7161_s9 + $0x28] sm:$0xff] }
 0x184   : > { %1581 = vmatpush.msra.mxu2 %v1384_v43  ;;  %v1150_v43 = vpop.permute.xlu1 %1149 }
 0x185   : > { %1522 = vmatpush.msra.mxu0 %v1353_v6  ;;  %v5454_v61 = vpop.f32.mrf.mxu1  ;;  %v1268_v6 = vld [vmem:[%s7161_s9 + $0x60] sm:$0xff] }
 0x186   : > { %1582 = vmatpush.msra.mxu2 %v1383_v45 }
 0x187   : > { %1523 = vmatpush.msra.mxu0 %v1352_v8  ;;  %v1275_v8 = vld [vmem:[%s7161_s9 + $0x98] sm:$0xff] }
 0x188   : > { %4515 = vmatmul.msk.f32.gmra.mxu0 %vm1162_vm5, %v1109_v9  ;;  %1583 = vmatpush.msra.mxu2 %v1382_v47 }
 0x189   : > { %1524 = vmatpush.msra.mxu0 %v1351_v11  ;;  %v1660_v11 = vld [vmem:[%s7164_s12 + $0x30] sm:$0xff] }
 0x18a   : > { %1584 = vmatpush.msra.mxu2 %v1381_v51  ;;  %1694 = vperm.xlu0 %4905, %v1660_v11   ;;  %v1140_v51 = vpop.permute.xlu2 %1139 }
 0x18b   : > { %1525 = vmatpush.msra.mxu0 %v1350_v12 }
 0x18c   : > { %1585 = vmatpush.msra.mxu2 %v1380_v53 }
 0x18d   : > { %1526 = vmatpush.msra.mxu0 %v1349_v15  ;;  %1586 = vmatmul.f32.vlgmr.msra.gmra.mxu2 %v1262_v54  ;;  %v5462_v0 = vpop.f32.mrf.mxu1  ;;  %v1659_v15 = vld [vmem:[%s7164_s12 + $0x28] sm:$0xff]  ;;  %v1145_v54 = vpop.permute.xlu1 %1144 }
 0x18e   : > { %1689 = vperm.xlu1 %4906, %v1659_v15   ;;  %v3237_v15 = vld [vmem:[%s7169_s17 + $0x38] sm:$0xff] }
 0x18f   : > { %1527 = vmatpush.msra.mxu0 %v1348_v17 }
 0x190   : > { %4516 = vmatmul.msk.f32.gmra.mxu0 %vm1162_vm5, %v1110_v18  ;;  %v1654_v18 = vld [vmem:[%s7164_s12] sm:$0xff] }
 0x191   : > { %1541 = vmatpush.msrb.mxu0 %v1379_v19  ;;  %v1656_v19 = vld [vmem:[%s7164_s12 + $0x10] sm:$0xff] }
 0x192   : > { %1679 = vperm.xlu0 %4905, %v1657_v14  }
 0x193   : > { %1542 = vmatpush.msrb.mxu0 %v1378_v21 }
 0x195   : > { %1543 = vmatpush.msrb.mxu0 %v1377_v24  ;;  %1589 = vmatmul.f32.gmra.mxu2 %v1269_v59  ;;  %v5470_v3 = vpop.f32.mrf.mxu1  ;;  %v3245_v24 = vld [vmem:[%s7169_s17 + $0x78] sm:$0xff] }
 0x196   : > { %1674 = vperm.xlu1 %4906, %v1656_v19  }
 0x197   : > { %1544 = vmatpush.msrb.mxu0 %v1376_v26  ;;  %v5527_v26 = vpop.f32.mrf.mxu2 }
 0x198   : > { %4517 = vmatmul.msk.f32.gmra.mxu0 %vm1162_vm5, %v1111_v28  ;;  %v3242_v28 = vld [vmem:[%s7169_s17 + $0x60] sm:$0xff] }
 0x199   : > { %1545 = vmatpush.msrb.mxu0 %v1375_v29 }
 0x19a   : > { %1664 = vperm.xlu0 %4905, %v1654_v18  }
 0x19b   : > { %1546 = vmatpush.msrb.mxu0 %v1374_v31 }
 0x19d   : > { %1547 = vmatpush.msrb.mxu0 %v1373_v34  ;;  %1592 = vmatmul.f32.gmra.mxu2 %v1276_v62  ;;  %v5475_v5 = vpop.f32.mrf.mxu1  ;;  %v1661_v34 = vld [vmem:[%s7164_s12 + $0x38] sm:$0xff] }
 0x19e   : > { %3323 = vperm.xlu1 %4906, %v3245_v24   ;;  %1699 = vperm.xlu2 %4907, %v1661_v34  }
 0x19f   : > { %1548 = vmatpush.msrb.mxu0 %v1372_v36  ;;  %v5537_v31 = vpop.f32.mrf.mxu2  ;;  %v3355_v36 = vld [vmem:[%s7170_s18 + $0x68] sm:$0xff] }
 0x1a0   : > { %4518 = vmatmul.msk.f32.gmra.mxu0 %vm1162_vm5, %v1112_v38  ;;  %v3239_v38 = vld [vmem:[%s7169_s17 + $0x48] sm:$0xff] }
 0x1a1   : > { %1549 = vmatpush.msrb.mxu0 %v1371_v40  ;;  %v1160_v40 = vpop.permute.xlu0 %1159 }
 0x1a2   : > { %3435 = vperm.xlu0 %4905, %v3357_v23   ;;  %v1125_v23 = vpop.permute.xlu1 %1124 }
 0x1a3   : > { %1550 = vmatpush.msrb.mxu0 %v1370_v42  ;;  %v1658_v42 = vld [vmem:[%s7164_s12 + $0x20] sm:$0xff] }
 0x1a5   : > { %1551 = vmatpush.msrb.mxu0 %v1369_v44  ;;  %1595 = vmatmul.f32.gmra.mxu2 %v1283_v1  ;;  %v5480_v7 = vpop.f32.mrf.mxu1  ;;  %v5558_v44 = vpop.f32.mrf.mxu3  ;;  %v3244_v1 = vld [vmem:[%s7169_s17 + $0x70] sm:$0xff] }
 0x1a6   : > { %3313 = vperm.xlu1 %4906, %v3243_v30   ;;  %1684 = vperm.xlu2 %4907, %v1658_v42   ;;  %v1599_v42 = vld [vmem:[%s7162_s10] sm:$0x7f] }
 0x1a7   : > { %1552 = vmatpush.msrb.mxu0 %v1368_v46  ;;  %v5553_v41 = vpop.f32.mrf.mxu2  ;;  %v3240_v46 = vld [vmem:[%s7169_s17 + $0x50] sm:$0xff]  ;;  %4520 = vmatpush.msk.msra.mxu3 %vm1613_vm11, %v1599_v42 }
 0x1a8   : > { %4519 = vmatmul.msk.f32.gmra.mxu0 %vm1162_vm5, %v1113_v48  ;;  %v3351_v48 = vld [vmem:[%s7170_s18 + $0x48] sm:$0xff] }
 0x1a9   : > { %1553 = vmatpush.msrb.mxu0 %v1367_v50  ;;  %v1655_v50 = vld [vmem:[%s7164_s12 + $0x8] sm:$0xff] }
 0x1aa   : > { %3308 = vperm.xlu0 %4905, %v3242_v28  }
 0x1ab   : > { %1554 = vmatpush.msrb.mxu0 %v1366_v52  ;;  %v1155_v52 = vpop.permute.xlu0 %1154 }
 0x1ad   : > { %1555 = vmatpush.msrb.mxu0 %v1365_v55  ;;  %v5485_v9 = vpop.f32.mrf.mxu1  ;;  %v3352_v55 = vld [vmem:[%s7170_s18 + $0x50] sm:$0xff] }
 0x1ae   : > { %3425 = vperm.xlu1 %4906, %v3355_v36   ;;  %1669 = vperm.xlu2 %4907, %v1655_v50  }
 0x1af   : > { %1556 = vmatpush.msrb.mxu0 %v1364_v56  ;;  %v5575_v53 = vpop.f32.mrf.mxu2  ;;  %v5581_v56 = vpop.f32.mrf.mxu3 }
 0x1b0   : > { %1528 = vmatmul.f32.vlgmr.msra.gmra.mxu0 %v1260_v57 }
 0x1b2   : > { %3420 = vperm.xlu0 %4905, %v3354_v33  }
 0x1b3   : > { %v1130_v18 = vpop.permute.xlu0 %1129 }
 0x1b5   : > { %v5493_v12 = vpop.f32.mrf.mxu1 }
 0x1b6   : > { %3298 = vperm.xlu1 %4906, %v3240_v46   ;;  %3318 = vperm.xlu2 %4907, %v3244_v1   ;;  %v3345_v1 = vld [vmem:[%s7170_s18 + $0x18] sm:$0xff] }
 0x1b7   : > { %v5598_v19 = vpop.f32.mrf.mxu2  ;;  %v5605_v30 = vpop.f32.mrf.mxu3 }
 0x1b8   : > { %1531 = vmatmul.f32.gmra.mxu0 %v1267_v60 }
 0x1ba   : > { %3293 = vperm.xlu0 %4905, %v3239_v38  }
 0x1bd   : > { %v5503_v16 = vpop.f32.mrf.mxu1 }
 0x1be   : > { %3410 = vperm.xlu1 %4906, %v3352_v55  }
 0x1bf   : > { %v5640_v50 = vpop.f32.mrf.mxu2  ;;  %v5652_v55 = vpop.f32.mrf.mxu3 }
 0x1c0   : > { %1534 = vmatmul.f32.gmra.mxu0 %v1274_v63  ;;  %v3236_v63 = vld [vmem:[%s7169_s17 + $0x30] sm:$0xff] }
 0x1c2   : > { %3405 = vperm.xlu0 %4905, %v3351_v48  }
 0x1c5   : > { %v5515_v21 = vpop.f32.mrf.mxu1 }
 0x1c6   : > { %3283 = vperm.xlu1 %4906, %v3237_v15  }
 0x1c8   : > { %1537 = vmatmul.f32.gmra.mxu0 %v1281_v2 }
 0x1ca   : > { %3278 = vperm.xlu0 %4905, %v3236_v63  }
 0x1cd   : > { %v5525_v25 = vpop.f32.mrf.mxu1 }
 0x1d0   : > { %1557 = vmatmul.f32.vlgmr.msrb.gmra.mxu0 %v1261_v4 }
 0x1d5   : > { %v5532_v29 = vpop.f32.mrf.mxu1 }
 0x1d8   : > { %1560 = vmatmul.f32.gmra.mxu0 %v1268_v6 }
 0x1dd   : > { %v5545_v35 = vpop.f32.mrf.mxu1 }
 0x1e0   : > { %1563 = vmatmul.f32.gmra.mxu0 %v1275_v8  ;;  %v1135_v8 = vpop.permute.xlu2 %1134 }
 0x1e5   : > { %v5560_v45 = vpop.f32.mrf.mxu1 }
 0x1e6   : > { %1940 = vmatpush.msrb.mxu2 %v5560_v45  ;;  %4862 = vmatpush.msrb.mxu3 %v5560_v45 }
 0x1e8   : > { %1566 = vmatmul.f32.gmra.mxu0 %v1282_v10  ;;  %1941 = vmatpush.msrb.mxu2 %v5545_v35 }
 0x1e9   : > { %4863 = vmatpush.msrb.mxu3 %v5545_v35 }
 0x1ea   : > { %1942 = vmatpush.msrb.mxu2 %v5532_v29 }
 0x1eb   : > { %4864 = vmatpush.msrb.mxu3 %v5532_v29 }
 0x1ec   : > { %1943 = vmatpush.msrb.mxu2 %v5525_v25 }
 0x1ed   : > { %v5495_v13 = vpop.f32.mrf.mxu0  ;;  %4865 = vmatpush.msrb.mxu3 %v5525_v25 }
 0x1ee   : > { %1944 = vmatpush.msrb.mxu2 %v5515_v21  ;;  %v1209_v38 = vadd.f32 %v5495_v13, %v1125_v23  ;;  %v3349_v13 = vld [vmem:[%s7170_s18 + $0x38] sm:$0xff] }
 0x1ef   : > { %3395 = vperm.xlu1 %4906, %v3349_v13   ;;  %4866 = vmatpush.msrb.mxu3 %v5515_v21  ;;  %v4105_v13 = vld [vmem:[%s7172_s20 + $0x18] sm:$0xff] }
 0x1f0   : > { %1945 = vmatpush.msrb.mxu2 %v5503_v16  ;;  %v1240_v48 = vmul.f32 0.1, %v1209_v38  ;;  %vm1232_vm14 = vcmp.ge.f32.partialorder %v1209_v38, 0.0 }
 0x1f1   : > { %4867 = vmatpush.msrb.mxu3 %v5503_v16 }
 0x1f2   : > { %1946 = vmatpush.msrb.mxu2 %v5493_v12 }
 0x1f3   : > { %4868 = vmatpush.msrb.mxu3 %v5493_v12 }
 0x1f4   : > { %1947 = vmatpush.msrb.mxu2 %v5485_v9 }
 0x1f5   : > { %v5505_v17 = vpop.f32.mrf.mxu0  ;;  %4869 = vmatpush.msrb.mxu3 %v5485_v9 }
 0x1f6   : > { %1948 = vmatpush.msrb.mxu2 %v5480_v7  ;;  %v1212_v33 = vadd.f32 %v5505_v17, %v1130_v18  ;;  %v3238_v18 = vld [vmem:[%s7169_s17 + $0x40] sm:$0xff] }
 0x1f7   : > { %4870 = vmatpush.msrb.mxu3 %v5480_v7 }
 0x1f8   : > { %1949 = vmatpush.msrb.mxu2 %v5475_v5  ;;  %v1241_v46 = vmul.f32 0.1, %v1212_v33  ;;  %vm1233_vm13 = vcmp.ge.f32.partialorder %v1212_v33, 0.0 }
 0x1f9   : > { %4871 = vmatpush.msrb.mxu3 %v5475_v5 }
 0x1fa   : > { %1950 = vmatpush.msrb.mxu2 %v5470_v3 }
 0x1fb   : > { %4872 = vmatpush.msrb.mxu3 %v5470_v3 }
 0x1fc   : > { %1951 = vmatpush.msrb.mxu2 %v5462_v0 }
 0x1fd   : > { %v5517_v22 = vpop.f32.mrf.mxu0  ;;  %4873 = vmatpush.msrb.mxu3 %v5462_v0 }
 0x1fe   : > { %v1215_v24 = vadd.f32 %v5517_v22, %v1135_v8  ;;  %v3348_v22 = vld [vmem:[%s7170_s18 + $0x30] sm:$0xff]  ;;  %1952 = vmatpush.msrb.mxu2 %v5454_v61  ;;  %v1443_v8 = vadd.f32 %v5558_v44, %v5513_v20  ;;  %v3230_v20 = vld [vmem:[%s7169_s17] sm:$0xff] }
 0x1ff   : > { %3390 = vperm.xlu0 %4905, %v3348_v22   ;;  %4874 = vmatpush.msrb.mxu3 %v5454_v61 }
 0x200   : > { %vm1234_vm12 = vcmp.ge.f32.partialorder %v1215_v24, 0.0  ;;  %1953 = vmatpush.msrb.mxu2 %v5446_v58  ;;  %v1472_v15 = vadd.f32 %v5575_v53, %v1443_v8  ;;  %v1446_v53 = vadd.f32 %v5581_v56, %v5527_v26  ;;  %v3350_v56 = vld [vmem:[%s7170_s18 + $0x40] sm:$0xff] }
 0x201   : > { %4875 = vmatpush.msrb.mxu3 %v5446_v58 }
 0x202   : > { %1954 = vmatpush.msrb.mxu2 %v5432_v49  ;;  %v1475_v22 = vadd.f32 %v5598_v19, %v1446_v53  ;;  %v1449_v19 = vadd.f32 %v5605_v30, %v5537_v31  ;;  %v3235_v31 = vld [vmem:[%s7169_s17 + $0x28] sm:$0xff] }
 0x203   : > { %4876 = vmatpush.msrb.mxu3 %v5432_v49 }
 0x204   : > { %1955 = vmatpush.msrb.mxu2 %v5418_v39  ;;  %v1478_v30 = vadd.f32 %v5640_v50, %v1449_v19  ;;  %v4214_v19 = vld [vmem:[%s7173_s21] sm:$0xff] }
 0x205   : > { %v1217_v27 = vpop.f32.mrf.mxu0  ;;  %4877 = vmatpush.msrb.mxu3 %v5418_v39 }
 0x206   : > { %v1218_v10 = vadd.f32 %v1217_v27, %v1140_v51 }
 0x208   : > { %v1243_v36 = vmul.f32 0.1, %v1218_v10  ;;  %vm1235_vm10 = vcmp.ge.f32.partialorder %v1218_v10, 0.0 }
 0x20d   : > { %v1220_v32 = vpop.f32.mrf.mxu0 }
 0x20e   : > { %v1221_v2 = vadd.f32 %v1220_v32, %v1145_v54  ;;  %v3233_v54 = vld [vmem:[%s7169_s17 + $0x18] sm:$0xff] }
 0x20f   : > { %3263 = vperm.xlu0 %4905, %v3233_v54  }
 0x210   : > { %v1244_v27 = vmul.f32 0.1, %v1221_v2  ;;  %vm1236_vm9 = vcmp.ge.f32.partialorder %v1221_v2, 0.0 }
 0x212   : > { %v5622_v17 = vsel %vm1236_vm9, %v1221_v2, %v1244_v27  ;;  %v5681_v2 = vpop.f32.mrf.mxu2 }
 0x215   : > { %v1223_v37 = vpop.f32.mrf.mxu0 }
 0x216   : > { %v1224_v60 = vadd.f32 %v1223_v37, %v1150_v43  ;;  %v3356_v37 = vld [vmem:[%s7170_s18 + $0x70] sm:$0xff]  ;;  %v5629_v43 = vsel %vm1235_vm10, %v1218_v10, %v1243_v36  ;;  %v3346_v10 = vld [vmem:[%s7170_s18 + $0x20] sm:$0xff]  ;;  %vm2513_vm10 = vcmask 130048  }
 0x217   : > { %3430 = vperm.xlu2 %4907, %v3356_v37   ;;  %3375 = vperm.xlu0 %4905, %v3345_v1   ;;  %v4102_v36 = vld [vmem:[%s7172_s20] sm:$0xff] }
 0x218   : > { %v1245_v14 = vmul.f32 0.1, %v1224_v60  ;;  %vm1237_vm8 = vcmp.ge.f32.partialorder %v1224_v60, 0.0 }
 0x21a   : > { %v5611_v34 = vsel %vm1237_vm8, %v1224_v60, %v1245_v14  ;;  %v1811_v60 = vld [vmem:[%s7167_s15] sm:$0xff]  ;;  %v1587_v44 = vpop.f32.mrf.mxu2 }
 0x21d   : > { %v1226_v47 = vpop.f32.mrf.mxu0 }
 0x21e   : > { %v1227_v57 = vadd.f32 %v1226_v47, %v1155_v52  ;;  %v5646_v52 = vsel %vm1233_vm13, %v1212_v33, %v1241_v46 }
 0x21f   : > { %3248 = vperm.xlu0 %4905, %v3230_v20   ;;  %v4106_v20 = vld [vmem:[%s7172_s20 + $0x20] sm:$0xff] }
 0x220   : > { %v1246_v6 = vmul.f32 0.1, %v1227_v57  ;;  %vm1238_vm7 = vcmp.ge.f32.partialorder %v1227_v57, 0.0 }
 0x222   : > { %v5602_v28 = vsel %vm1238_vm7, %v1227_v57, %v1246_v6  ;;  %v3241_v57 = vld [vmem:[%s7169_s17 + $0x58] sm:$0xff]  ;;  %v1500_v6 = vpop.f32.mrf.mxu3 }
 0x223   : > { %3303 = vperm.xlu2 %4907, %v3241_v57   ;;  %v1501_v23 = vadd.f32 %v1500_v6, %v1472_v15  ;;  %v4108_v6 = vld [vmem:[%s7172_s20 + $0x30] sm:$0xff] }
 0x225   : > { %v1229_v59 = vpop.f32.mrf.mxu0 }
 0x226   : > { %v1230_v62 = vadd.f32 %v1229_v59, %v1160_v40  ;;  %v1242_v40 = vmul.f32 0.1, %v1215_v24  ;;  %v5658_v59 = vsel %vm1232_vm14, %v1209_v38, %v1240_v48  ;;  %v1590_v38 = vpop.f32.mrf.mxu2 }
 0x227   : > { %4120 = vperm.xlu0 %4905, %v4102_v36   ;;  %v4114_v36 = vld [vmem:[%s7172_s20 + $0x60] sm:$0xff] }
 0x228   : > { %vm1239_vm6 = vcmp.ge.f32.partialorder %v1230_v62, 0.0  ;;  %v1247_v4 = vmul.f32 0.1, %v1230_v62  ;;  %v5637_v47 = vsel %vm1234_vm12, %v1215_v24, %v1242_v40  ;;  %v3231_v24 = vld [vmem:[%s7169_s17 + $0x8] sm:$0xff] }
 0x229   : > { %v3343_v40 = vld [vmem:[%s7170_s18 + $0x8] sm:$0xff] }
 0x22a   : > { %v5592_v11 = vsel %vm1239_vm6, %v1230_v62, %v1247_v4  ;;  %v3234_v62 = vld [vmem:[%s7169_s17 + $0x20] sm:$0xff]  ;;  %v3353_v4 = vld [vmem:[%s7170_s18 + $0x58] sm:$0xff]  ;;  %v1503_v27 = vpop.f32.mrf.mxu3 }
 0x22b   : > { %1883 = vmatpush.msrb.mxu1 %v5592_v11  ;;  %3268 = vperm.xlu1 %4906, %v3234_v62   ;;  %v1504_v42 = vadd.f32 %v1503_v27, %v1475_v22  ;;  %v1452_v62 = vadd.f32 %v5652_v55, %v5553_v41  ;;  %v3347_v41 = vld [vmem:[%s7170_s18 + $0x28] sm:$0xff]  ;;  %v4117_v22 = vld [vmem:[%s7172_s20 + $0x78] sm:$0xff] }
 0x22c   : > { %3415 = vperm.xlu2 %4907, %v3353_v4  }
 0x22d   : > { %v5607_v32 = vpop.f32.mrf.mxu0  ;;  %1884 = vmatpush.msrb.mxu1 %v5602_v28  ;;  %v1481_v55 = vadd.f32 %v5681_v2, %v1452_v62  ;;  %v4116_v62 = vld [vmem:[%s7172_s20 + $0x70] sm:$0xff] }
 0x22e   : > { %v1530_v33 = vadd.f32 %v5607_v32, %v1501_v23  ;;  %v1593_v50 = vpop.f32.mrf.mxu2 }
 0x22f   : > { %1885 = vmatpush.msrb.mxu1 %v5611_v34  ;;  %4135 = vperm.xlu0 %4905, %v4105_v13   ;;  %v4217_v13 = vld [vmem:[%s7173_s21 + $0x18] sm:$0xff] }
 0x231   : > { %1886 = vmatpush.msrb.mxu1 %v5622_v17 }
 0x232   : > { %v1506_v48 = vpop.f32.mrf.mxu3 }
 0x233   : > { %1887 = vmatpush.msrb.mxu1 %v5629_v43  ;;  %3380 = vperm.xlu1 %4906, %v3346_v10   ;;  %v1507_v1 = vadd.f32 %v1506_v48, %v1478_v30  ;;  %v4222_v48 = vld [vmem:[%s7173_s21 + $0x40] sm:$0xff]  ;;  %v4225_v30 = vld [vmem:[%s7173_s21 + $0x58] sm:$0xff] }
 0x234   : > { %3288 = vperm.xlu2 %4907, %v3238_v18   ;;  %v4111_v18 = vld [vmem:[%s7172_s20 + $0x48] sm:$0xff] }
 0x235   : > { %v5642_v51 = vpop.f32.mrf.mxu0  ;;  %1888 = vmatpush.msrb.mxu1 %v5637_v47 }
 0x236   : > { %v1533_v46 = vadd.f32 %v5642_v51, %v1504_v42  ;;  %v1596_v23 = vpop.f32.mrf.mxu2  ;;  %v4219_v42 = vld [vmem:[%s7173_s21 + $0x28] sm:$0xff] }
 0x237   : > { %1889 = vmatpush.msrb.mxu1 %v5646_v52  ;;  %4150 = vperm.xlu0 %4905, %v4108_v6   ;;  %v4218_v6 = vld [vmem:[%s7173_s21 + $0x20] sm:$0xff] }
 0x239   : > { %1890 = vmatpush.msrb.mxu1 %v5658_v59 }
 0x23a   : > { %4534 = vmatmul.msk.f32.vlgmr.msrb.gmra.mxu1 %vm815_vm1, %v1811_v60  ;;  %v4103_v60 = vld [vmem:[%s7172_s20 + $0x8] sm:$0xff]  ;;  %v1509_v15 = vpop.f32.mrf.mxu3 }
 0x23b   : > { %2299 = vmatpush.msra.mxu1 %v5560_v45  ;;  %3253 = vperm.xlu1 %4906, %v3231_v24   ;;  %v3232_v24 = vld [vmem:[%s7169_s17 + $0x10] sm:$0xff] }
 0x23c   : > { %3400 = vperm.xlu2 %4907, %v3350_v56   ;;  %v4112_v56 = vld [vmem:[%s7172_s20 + $0x50] sm:$0xff] }
 0x23d   : > { %2300 = vmatpush.msra.mxu1 %v5545_v35  ;;  %v5674_v63 = vpop.f32.mrf.mxu0 }
 0x23e   : > { %v1536_v4 = vadd.f32 %v5674_v63, %v1507_v1  ;;  %v4226_v1 = vld [vmem:[%s7173_s21 + $0x60] sm:$0xff] }
 0x23f   : > { %2301 = vmatpush.msra.mxu1 %v5532_v29  ;;  %4165 = vperm.xlu0 %4905, %v4111_v18   ;;  %v1814_v18 = vld [vmem:[%s7167_s15 + $0x18] sm:$0xff] }
 0x241   : > { %2302 = vmatpush.msra.mxu1 %v5525_v25 }
 0x243   : > { %2303 = vmatpush.msra.mxu1 %v5515_v21  ;;  %3365 = vperm.xlu1 %4906, %v3343_v40   ;;  %v4104_v40 = vld [vmem:[%s7172_s20 + $0x10] sm:$0xff] }
 0x244   : > { %3273 = vperm.xlu2 %4907, %v3235_v31   ;;  %v4220_v31 = vld [vmem:[%s7173_s21 + $0x30] sm:$0xff] }
 0x245   : > { %2304 = vmatpush.msra.mxu1 %v5503_v16  ;;  %v5697_v14 = vpop.f32.mrf.mxu0 }
 0x247   : > { %2305 = vmatpush.msra.mxu1 %v5493_v12  ;;  %4180 = vperm.xlu0 %4905, %v4114_v36   ;;  %v1799_v36 = vld [vmem:[%s7166_s14 + $0x20] sm:$0xff] }
 0x249   : > { %2306 = vmatpush.msra.mxu1 %v5485_v9 }
 0x24b   : > { %2307 = vmatpush.msra.mxu1 %v5480_v7  ;;  %4125 = vperm.xlu1 %4906, %v4103_v60   ;;  %v4228_v60 = vld [vmem:[%s7173_s21 + $0x70] sm:$0xff] }
 0x24c   : > { %3385 = vperm.xlu2 %4907, %v3347_v41   ;;  %v4224_v41 = vld [vmem:[%s7173_s21 + $0x50] sm:$0xff] }
 0x24d   : > { %2308 = vmatpush.msra.mxu1 %v5475_v5  ;;  %v1558_v26 = vpop.f32.mrf.mxu0 }
 0x24e   : > { %v1559_v37 = vadd.f32 %v1558_v26, %v1530_v33  ;;  %v3344_v26 = vld [vmem:[%s7170_s18 + $0x10] sm:$0xff] }
 0x24f   : > { %2309 = vmatpush.msra.mxu1 %v5470_v3  ;;  %4195 = vperm.xlu0 %4905, %v4117_v22   ;;  %v1818_v22 = vld [vmem:[%s7167_s15 + $0x38] sm:$0xff] }
 0x250   : > { %v1588_v32 = vadd.f32 %v1587_v44, %v1559_v37  ;;  %v1510_v44 = vadd.f32 %v1509_v15, %v1481_v55  ;;  %v3342_v37 = vld [vmem:[%s7170_s18] sm:$0xff]  ;;  %v4227_v55 = vld [vmem:[%s7173_s21 + $0x68] sm:$0xff] }
 0x251   : > { %2310 = vmatpush.msra.mxu1 %v5462_v0 }
 0x252   : > { %4521 = vmatmul.msk.f32.vlgmr.msra.gmra.mxu3 %vm1600_vm15, %v1588_v32  ;;  %v1539_v2 = vadd.f32 %v5697_v14, %v1510_v44  ;;  %v4109_v14 = vld [vmem:[%s7172_s20 + $0x38] sm:$0xff]  ;;  %v4115_v32 = vld [vmem:[%s7172_s20 + $0x68] sm:$0xff]  ;;  %v1646_v44 = vld [vmem:[%s7163_s11] sm:$0xff] }
 0x253   : > { %2311 = vmatpush.msra.mxu1 %v5454_v61  ;;  %4140 = vperm.xlu1 %4906, %v4106_v20  }
 0x254   : > { %3258 = vperm.xlu2 %4907, %v3232_v24   ;;  %v1815_v24 = vld [vmem:[%s7167_s15 + $0x20] sm:$0xff] }
 0x255   : > { %2312 = vmatpush.msra.mxu1 %v5446_v58  ;;  %v1561_v54 = vpop.f32.mrf.mxu0 }
 0x256   : > { %v1562_v57 = vadd.f32 %v1561_v54, %v1533_v46  ;;  %v4107_v46 = vld [vmem:[%s7172_s20 + $0x28] sm:$0xff]  ;;  %v4110_v54 = vld [vmem:[%s7172_s20 + $0x40] sm:$0xff] }
 0x257   : > { %2313 = vmatpush.msra.mxu1 %v5432_v49 }
 0x258   : > { %v1591_v51 = vadd.f32 %v1590_v38, %v1562_v57  ;;  %v4216_v38 = vld [vmem:[%s7173_s21 + $0x10] sm:$0xff]  ;;  %v4113_v57 = vld [vmem:[%s7172_s20 + $0x58] sm:$0xff] }
 0x259   : > { %2314 = vmatpush.msra.mxu1 %v5418_v39  ;;  %4242 = vperm.xlu0 %4905, %v4216_v38   ;;  %v1802_v38 = vld [vmem:[%s7166_s14 + $0x38] sm:$0xff] }
 0x25a   : > { %4522 = vmatmul.msk.f32.gmra.mxu3 %vm1600_vm15, %v1591_v51  ;;  %v4223_v51 = vld [vmem:[%s7173_s21 + $0x48] sm:$0xff] }
 0x25b   : > { %2830 = vmatpush.msrb.mxu1 %v5592_v11  ;;  %4155 = vperm.xlu1 %4906, %v4109_v14   ;;  %v1816_v14 = vld [vmem:[%s7167_s15 + $0x28] sm:$0xff] }
 0x25c   : > { %3370 = vperm.xlu2 %4907, %v3344_v26   ;;  %v1817_v26 = vld [vmem:[%s7167_s15 + $0x30] sm:$0xff] }
 0x25d   : > { %2831 = vmatpush.msrb.mxu1 %v5602_v28  ;;  %v1564_v8 = vpop.f32.mrf.mxu0 }
 0x25e   : > { %v1565_v10 = vadd.f32 %v1564_v8, %v1536_v4  ;;  %v4229_v4 = vld [vmem:[%s7173_s21 + $0x78] sm:$0xff] }
 0x25f   : > { %2832 = vmatpush.msrb.mxu1 %v5611_v34  ;;  %v4221_v8 = vld [vmem:[%s7173_s21 + $0x38] sm:$0xff] }
 0x260   : > { %v1594_v63 = vadd.f32 %v1593_v50, %v1565_v10  ;;  %v4215_v50 = vld [vmem:[%s7173_s21 + $0x8] sm:$0xff] }
 0x261   : > { %2833 = vmatpush.msrb.mxu1 %v5622_v17  ;;  %4257 = vperm.xlu0 %4905, %v4219_v42   ;;  %v1803_v42 = vld [vmem:[%s7166_s14 + $0x40] sm:$0xff] }
 0x262   : > { %4523 = vmatmul.msk.f32.gmra.mxu3 %vm1600_vm15, %v1594_v63 }
 0x263   : > { %2834 = vmatpush.msrb.mxu1 %v5629_v43  ;;  %4170 = vperm.xlu1 %4906, %v4112_v56   ;;  %v1800_v56 = vld [vmem:[%s7166_s14 + $0x28] sm:$0xff] }
 0x264   : > { %3360 = vperm.xlu2 %4907, %v3342_v37   ;;  %v1801_v37 = vld [vmem:[%s7166_s14 + $0x30] sm:$0xff] }
 0x265   : > { %2835 = vmatpush.msrb.mxu1 %v5637_v47  ;;  %v1567_v53 = vpop.f32.mrf.mxu0 }
 0x266   : > { %v1568_v27 = vadd.f32 %v1567_v53, %v1539_v2  ;;  %v1647_v2 = vld [vmem:[%s7163_s11 + $0x8] sm:$0xff]  ;;  %v1797_v53 = vld [vmem:[%s7166_s14 + $0x10] sm:$0xff] }
 0x267   : > { %2836 = vmatpush.msrb.mxu1 %v5646_v52 }
 0x268   : > { %v1597_v33 = vadd.f32 %v1596_v23, %v1568_v27  ;;  %v1652_v23 = vld [vmem:[%s7163_s11 + $0x30] sm:$0xff]  ;;  %v1798_v27 = vld [vmem:[%s7166_s14 + $0x18] sm:$0xff] }
 0x269   : > { %2837 = vmatpush.msrb.mxu1 %v5658_v59  ;;  %4272 = vperm.xlu0 %4905, %v4222_v48   ;;  %v1821_v48 = vld [vmem:[%s7167_s15 + $0x50] sm:$0xff] }
 0x26a   : > { %4524 = vmatmul.msk.f32.gmra.mxu3 %vm1600_vm15, %v1597_v33  ;;  %v1653_v33 = vld [vmem:[%s7163_s11 + $0x38] sm:$0xff] }
 0x26b   : > { %4185 = vperm.xlu1 %4906, %v4115_v32   ;;  %v1819_v32 = vld [vmem:[%s7167_s15 + $0x40] sm:$0xff] }
 0x26c   : > { %4130 = vperm.xlu2 %4907, %v4104_v40   ;;  %v1804_v40 = vld [vmem:[%s7166_s14 + $0x48] sm:$0xff] }
 0x271   : > { %4287 = vperm.xlu0 %4905, %v4225_v30   ;;  %v1822_v30 = vld [vmem:[%s7167_s15 + $0x58] sm:$0xff] }
 0x272   : > { %1983 = vmatmul.f32.vlgmr.msrb.gmra.mxu3 %v1804_v40 }
 0x273   : > { %4232 = vperm.xlu1 %4906, %v4214_v19   ;;  %v1820_v19 = vld [vmem:[%s7167_s15 + $0x48] sm:$0xff] }
 0x274   : > { %4145 = vperm.xlu2 %4907, %v4107_v46   ;;  %v1805_v46 = vld [vmem:[%s7166_s14 + $0x50] sm:$0xff] }
 0x279   : > { %4302 = vperm.xlu0 %4905, %v4228_v60   ;;  %v1823_v60 = vld [vmem:[%s7167_s15 + $0x60] sm:$0xff] }
 0x27a   : > { %1986 = vmatmul.f32.gmra.mxu3 %v1805_v46 }
 0x27b   : > { %4247 = vperm.xlu1 %4906, %v4217_v13  }
 0x27c   : > { %4160 = vperm.xlu2 %4907, %v4110_v54   ;;  %v1806_v54 = vld [vmem:[%s7166_s14 + $0x58] sm:$0xff] }
 0x282   : > { %1989 = vmatmul.f32.gmra.mxu3 %v1806_v54 }
 0x283   : > { %4262 = vperm.xlu1 %4906, %v4220_v31  }
 0x284   : > { %4175 = vperm.xlu2 %4907, %v4113_v57   ;;  %v1807_v57 = vld [vmem:[%s7166_s14 + $0x60] sm:$0xff] }
 0x28a   : > { %1992 = vmatmul.f32.gmra.mxu3 %v1807_v57 }
 0x28b   : > { %4277 = vperm.xlu1 %4906, %v4223_v51  }
 0x28c   : > { %4190 = vperm.xlu2 %4907, %v4116_v62   ;;  %v1808_v62 = vld [vmem:[%s7166_s14 + $0x68] sm:$0xff] }
 0x292   : > { %1995 = vmatmul.f32.gmra.mxu3 %v1808_v62 }
 0x293   : > { %4292 = vperm.xlu1 %4906, %v4226_v1  }
 0x294   : > { %4237 = vperm.xlu2 %4907, %v4215_v50   ;;  %v1824_v50 = vld [vmem:[%s7167_s15 + $0x68] sm:$0xff] }
 0x29b   : > { %4307 = vperm.xlu1 %4906, %v4229_v4   ;;  %v1809_v4 = vld [vmem:[%s7166_s14 + $0x70] sm:$0xff] }
 0x29c   : > { %4252 = vperm.xlu2 %4907, %v4218_v6   ;;  %1998 = vmatmul.f32.gmra.mxu3 %v1809_v4  ;;  %v2005_v4 = vld [vmem:[%s7168_s16] sm:$0xff] }
 0x2a4   : > { %4267 = vperm.xlu2 %4907, %v4221_v8   ;;  %v1825_v8 = vld [vmem:[%s7167_s15 + $0x70] sm:$0xff] }
 0x2ac   : > { %4282 = vperm.xlu2 %4907, %v4224_v41   ;;  %v1810_v41 = vld [vmem:[%s7166_s14 + $0x78] sm:$0xff] }
 0x2ad   : > { %2001 = vmatmul.f32.gmra.mxu3 %v1810_v41  ;;  %v4614_v41 = vld [vmem:[%s7168_s16 + $0x80] sm:$0xff] }
 0x2b4   : > { %4297 = vperm.xlu2 %4907, %v4227_v55  }
 0x2d5   : > { %v1634_v10 = vpop.f32.mrf.mxu3 }
 0x2dd   : > { %v1637_v15 = vpop.f32.mrf.mxu3 }
 0x2e5   : > { %v1640_v63 = vpop.f32.mrf.mxu3 }
 0x2ed   : > { %v1643_v20 = vpop.f32.mrf.mxu3 }
 0x2ee   : > { %4525 = vmatpush.msk.msra.mxu0 %vm1187_vm4, %v1643_v20 }
 0x2f0   : > { %1743 = vmatpush.msra.mxu0 %v1640_v63  ;;  %v1695_v63 = vpop.permute.xlu0 %1694 }
 0x2f2   : > { %1744 = vmatpush.msra.mxu0 %v1637_v15  ;;  %v1700_v15 = vpop.permute.xlu2 %1699 }
 0x2f4   : > { %1745 = vmatpush.msra.mxu0 %v1634_v10  ;;  %v1826_v10 = vld [vmem:[%s7167_s15 + $0x78] sm:$0xff] }
 0x2f5   : > { %4526 = vmatmul.msk.f32.vlgmr.msra.gmra.mxu0 %vm1702_vm0, %v1646_v44  ;;  %v6019_v44 = vpop.f32.mrf.mxu1 }
 0x2f6   : > { %2242 = vmatpush.msrb.mxu0 %v5592_v11  ;;  %v1648_v11 = vld [vmem:[%s7163_s11 + $0x10] sm:$0xff] }
 0x2f8   : > { %2243 = vmatpush.msrb.mxu0 %v5602_v28  ;;  %v1649_v28 = vld [vmem:[%s7163_s11 + $0x18] sm:$0xff] }
 0x2fa   : > { %2244 = vmatpush.msrb.mxu0 %v5611_v34  ;;  %v1812_v34 = vld [vmem:[%s7167_s15 + $0x8] sm:$0xff] }
 0x2fb   : > { %4535 = vmatmul.msk.f32.gmra.mxu1 %vm815_vm1, %v1812_v34  ;;  %v1680_v34 = vpop.permute.xlu0 %1679 }
 0x2fc   : > { %2245 = vmatpush.msrb.mxu0 %v5622_v17  ;;  %v1795_v17 = vld [vmem:[%s7166_s14] sm:$0xff] }
 0x2fd   : > { %4527 = vmatmul.msk.f32.gmra.mxu0 %vm1702_vm0, %v1647_v2  ;;  %1956 = vmatmul.f32.vlgmr.msrb.gmra.mxu2 %v1795_v17  ;;  %v4582_v2 = vld [vmem:[%s7167_s15 + $0x80] sm:$0xff] }
 0x2fe   : > { %2246 = vmatpush.msrb.mxu0 %v5629_v43  ;;  %v1650_v43 = vld [vmem:[%s7163_s11 + $0x20] sm:$0xff] }
 0x300   : > { %2247 = vmatpush.msrb.mxu0 %v5637_v47  ;;  %v1813_v47 = vld [vmem:[%s7167_s15 + $0x10] sm:$0xff] }
 0x302   : > { %2248 = vmatpush.msrb.mxu0 %v5646_v52  ;;  %v1796_v52 = vld [vmem:[%s7166_s14 + $0x8] sm:$0xff] }
 0x303   : > { %4536 = vmatmul.msk.f32.gmra.mxu1 %vm815_vm1, %v1813_v47  ;;  %v1665_v46 = vpop.permute.xlu0 %1664 }
 0x304   : > { %2249 = vmatpush.msrb.mxu0 %v5658_v59  ;;  %v1651_v59 = vld [vmem:[%s7163_s11 + $0x28] sm:$0xff] }
 0x305   : > { %4528 = vmatmul.msk.f32.gmra.mxu0 %vm1702_vm0, %v1648_v11  ;;  %1959 = vmatmul.f32.gmra.mxu2 %v1796_v52  ;;  %v1690_v11 = vpop.permute.xlu1 %1689 }
 0x30b   : > { %4537 = vmatmul.msk.f32.gmra.mxu1 %vm815_vm1, %v1814_v18  ;;  %v4583_v18 = vld [vmem:[%s7167_s15 + $0x88] sm:$0xff] }
 0x30d   : > { %4529 = vmatmul.msk.f32.gmra.mxu0 %vm1702_vm0, %v1649_v28  ;;  %1962 = vmatmul.f32.gmra.mxu2 %v1797_v53  ;;  %v1685_v28 = vpop.permute.xlu2 %1684 }
 0x313   : > { %4538 = vmatmul.msk.f32.gmra.mxu1 %vm815_vm1, %v1815_v24 }
 0x315   : > { %4530 = vmatmul.msk.f32.gmra.mxu0 %vm1702_vm0, %v1650_v43  ;;  %1965 = vmatmul.f32.gmra.mxu2 %v1798_v27  ;;  %v4566_v27 = vld [vmem:[%s7166_s14 + $0x80] sm:$0xff] }
 0x31b   : > { %4539 = vmatmul.msk.f32.gmra.mxu1 %vm815_vm1, %v1816_v14 }
 0x31d   : > { %4531 = vmatmul.msk.f32.gmra.mxu0 %vm1702_vm0, %v1651_v59  ;;  %1968 = vmatmul.f32.gmra.mxu2 %v1799_v36 }
 0x323   : > { %4540 = vmatmul.msk.f32.gmra.mxu1 %vm815_vm1, %v1817_v26  ;;  %v1675_v26 = vpop.permute.xlu1 %1674 }
 0x325   : > { %4532 = vmatmul.msk.f32.gmra.mxu0 %vm1702_vm0, %v1652_v23  ;;  %1971 = vmatmul.f32.gmra.mxu2 %v1800_v56 }
 0x32b   : > { %4541 = vmatmul.msk.f32.gmra.mxu1 %vm815_vm1, %v1818_v22 }
 0x32d   : > { %4533 = vmatmul.msk.f32.gmra.mxu0 %vm1702_vm0, %v1653_v33  ;;  %1974 = vmatmul.f32.gmra.mxu2 %v1801_v37 }
 0x333   : > { %4542 = vmatmul.msk.f32.gmra.mxu1 %vm815_vm1, %v1819_v32  ;;  %v1670_v32 = vpop.permute.xlu2 %1669 }
 0x335   : > { %1977 = vmatmul.f32.gmra.mxu2 %v1802_v38  ;;  %4598 = vmatmul.msk.f32.vlgmr.msrb.gmra.mxu0 %vm815_vm1, %v4582_v2  ;;  %v4571_v2 = vld [vmem:[%s7166_s14 + $0xa8] sm:$0xff] }
 0x33b   : > { %4543 = vmatmul.msk.f32.gmra.mxu1 %vm815_vm1, %v1820_v19 }
 0x33d   : > { %1980 = vmatmul.f32.gmra.mxu2 %v1803_v42  ;;  %4599 = vmatmul.msk.f32.gmra.mxu0 %vm815_vm1, %v4583_v18  ;;  %v2011_v18 = vld [vmem:[%s7168_s16 + $0x30] sm:$0xff] }
 0x343   : > { %4544 = vmatmul.msk.f32.gmra.mxu1 %vm815_vm1, %v1821_v48  ;;  %v4584_v48 = vld [vmem:[%s7167_s15 + $0x90] sm:$0xff] }
 0x345   : > { %4600 = vmatmul.msk.f32.gmra.mxu0 %vm815_vm1, %v4584_v48  ;;  %v4576_v48 = vld [vmem:[%s7166_s14 + $0xd0] sm:$0xff] }
 0x34b   : > { %4545 = vmatmul.msk.f32.gmra.mxu1 %vm815_vm1, %v1822_v30 }
 0x353   : > { %4546 = vmatmul.msk.f32.gmra.mxu1 %vm815_vm1, %v1823_v60 }
 0x35b   : > { %4547 = vmatmul.msk.f32.gmra.mxu1 %vm815_vm1, %v1824_v50 }
 0x363   : > { %4548 = vmatmul.msk.f32.gmra.mxu1 %vm815_vm1, %v1825_v8 }
 0x36b   : > { %4549 = vmatmul.msk.f32.gmra.mxu1 %vm815_vm1, %v1826_v10 }
 0x372   : > { %v5978_v13 = vpop.f32.mrf.mxu0 }
 0x373   : > { %2315 = vmatmul.f32.vlgmr.msra.gmra.mxu1 %v4566_v27  ;;  %v1748_v54 = vadd.f32 %v5978_v13, %v1665_v46  ;;  %v4592_v27 = vld [vmem:[%s7167_s15 + $0xd0] sm:$0xff]  ;;  %v4622_v46 = vld [vmem:[%s7168_s16 + $0xc0] sm:$0xff] }
 0x375   : > { %v1779_v62 = vmul.f32 0.1, %v1748_v54  ;;  %vm1771_vm9 = vcmp.ge.f32.partialorder %v1748_v54, 0.0 }
 0x377   : > { %v6080_v8 = vsel %vm1771_vm9, %v1748_v54, %v1779_v62 }
 0x378   : > { %v6025_v47 = vpop.f32.mrf.mxu1 }
 0x37a   : > { %v1750_v31 = vpop.f32.mrf.mxu0 }
 0x37b   : > { %v1751_v40 = vadd.f32 %v1750_v31, %v1670_v32  ;;  %v4567_v31 = vld [vmem:[%s7166_s14 + $0x88] sm:$0xff] }
 0x37c   : > { %2318 = vmatmul.f32.gmra.mxu1 %v4567_v31  ;;  %v2014_v31 = vld [vmem:[%s7168_s16 + $0x48] sm:$0xff] }
 0x37d   : > { %v1780_v60 = vmul.f32 0.1, %v1751_v40  ;;  %vm1772_vm8 = vcmp.ge.f32.partialorder %v1751_v40, 0.0 }
 0x37f   : > { %v6070_v50 = vsel %vm1772_vm8, %v1751_v40, %v1780_v60  ;;  %v2013_v40 = vld [vmem:[%s7168_s16 + $0x40] sm:$0xff]  ;;  %v4623_v60 = vld [vmem:[%s7168_s16 + $0xc8] sm:$0xff] }
 0x380   : > { %v6042_v38 = vpop.f32.mrf.mxu1 }
 0x382   : > { %v1753_v51 = vpop.f32.mrf.mxu0 }
 0x383   : > { %v1754_v56 = vadd.f32 %v1753_v51, %v1675_v26  ;;  %v4621_v26 = vld [vmem:[%s7168_s16 + $0xb8] sm:$0xff] }
 0x385   : > { %v1781_v57 = vmul.f32 0.1, %v1754_v56  ;;  %vm1773_vm7 = vcmp.ge.f32.partialorder %v1754_v56, 0.0 }
 0x387   : > { %v6064_v13 = vsel %vm1773_vm7, %v1754_v56, %v1781_v57  ;;  %v4575_v56 = vld [vmem:[%s7166_s14 + $0xc8] sm:$0xff]  ;;  %v4594_v57 = vld [vmem:[%s7167_s15 + $0xe0] sm:$0xff] }
 0x38a   : > { %v1756_v1 = vpop.f32.mrf.mxu0 }
 0x38b   : > { %v1757_v33 = vadd.f32 %v1756_v1, %v1680_v34  ;;  %v6068_v1 = vpop.f32.mrf.mxu1  ;;  %v2010_v34 = vld [vmem:[%s7168_s16 + $0x28] sm:$0xff] }
 0x38d   : > { %v1782_v42 = vmul.f32 0.1, %v1757_v33  ;;  %vm1774_vm6 = vcmp.ge.f32.partialorder %v1757_v33, 0.0 }
 0x38f   : > { %v6060_v51 = vsel %vm1774_vm6, %v1757_v33, %v1782_v42  ;;  %v2012_v33 = vld [vmem:[%s7168_s16 + $0x38] sm:$0xff]  ;;  %v6256_v42 = vpop.f32.mrf.mxu3 }
 0x392   : > { %v1759_v6 = vpop.f32.mrf.mxu0 }
 0x393   : > { %v1760_v53 = vadd.f32 %v1759_v6, %v1685_v28  ;;  %v4585_v6 = vld [vmem:[%s7167_s15 + $0x98] sm:$0xff]  ;;  %v6097_v10 = vpop.f32.mrf.mxu1  ;;  %v4590_v28 = vld [vmem:[%s7167_s15 + $0xc0] sm:$0xff] }
 0x394   : > { %4601 = vmatmul.msk.f32.gmra.mxu0 %vm815_vm1, %v4585_v6  ;;  %v4577_v6 = vld [vmem:[%s7166_s14 + $0xd8] sm:$0xff] }
 0x395   : > { %v1783_v37 = vmul.f32 0.1, %v1760_v53  ;;  %vm1775_vm5 = vcmp.ge.f32.partialorder %v1760_v53, 0.0 }
 0x397   : > { %v6052_v30 = vsel %vm1775_vm5, %v1760_v53, %v1783_v37  ;;  %v4620_v53 = vld [vmem:[%s7168_s16 + $0xb0] sm:$0xff]  ;;  %v4593_v37 = vld [vmem:[%s7167_s15 + $0xd8] sm:$0xff] }
 0x39a   : > { %v1762_v55 = vpop.f32.mrf.mxu0 }
 0x39b   : > { %v1763_v52 = vadd.f32 %v1762_v55, %v1690_v11  ;;  %v4568_v55 = vld [vmem:[%s7166_s14 + $0x90] sm:$0xff] }
 0x39c   : > { %2321 = vmatmul.f32.gmra.mxu1 %v4568_v55  ;;  %v4572_v11 = vld [vmem:[%s7166_s14 + $0xb0] sm:$0xff]  ;;  %v4595_v55 = vld [vmem:[%s7167_s15 + $0xe8] sm:$0xff] }
 0x39d   : > { %v1784_v36 = vmul.f32 0.1, %v1763_v52  ;;  %vm1776_vm4 = vcmp.ge.f32.partialorder %v1763_v52, 0.0 }
 0x39f   : > { %v6044_v19 = vsel %vm1776_vm4, %v1763_v52, %v1784_v36  ;;  %v4591_v52 = vld [vmem:[%s7167_s15 + $0xc8] sm:$0xff] }
 0x3a2   : > { %v1765_v20 = vpop.f32.mrf.mxu0 }
 0x3a3   : > { %v1766_v17 = vadd.f32 %v1765_v20, %v1695_v63  ;;  %v4569_v63 = vld [vmem:[%s7166_s14 + $0x98] sm:$0xff]  ;;  %v4570_v20 = vld [vmem:[%s7166_s14 + $0xa0] sm:$0xff] }
 0x3a4   : > { %2324 = vmatmul.f32.gmra.mxu1 %v4569_v63 }
 0x3a5   : > { %v1785_v24 = vmul.f32 0.1, %v1766_v17  ;;  %vm1777_vm3 = vcmp.ge.f32.partialorder %v1766_v17, 0.0 }
 0x3a7   : > { %v6038_v22 = vsel %vm1777_vm3, %v1766_v17, %v1785_v24  ;;  %v4573_v17 = vld [vmem:[%s7166_s14 + $0xb8] sm:$0xff] }
 0x3aa   : > { %v1768_v43 = vpop.f32.mrf.mxu0 }
 0x3ab   : > { %v1769_v59 = vadd.f32 %v1768_v43, %v1700_v15  ;;  %v4586_v15 = vld [vmem:[%s7167_s15 + $0xa0] sm:$0xff] }
 0x3ac   : > { %4602 = vmatmul.msk.f32.gmra.mxu0 %vm815_vm1, %v4586_v15  ;;  %2327 = vmatmul.f32.gmra.mxu1 %v4570_v20  ;;  %v2015_v15 = vld [vmem:[%s7168_s16 + $0x50] sm:$0xff]  ;;  %v2016_v20 = vld [vmem:[%s7168_s16 + $0x58] sm:$0xff] }
 0x3ad   : > { %v1786_v23 = vmul.f32 0.1, %v1769_v59  ;;  %vm1778_vm2 = vcmp.ge.f32.partialorder %v1769_v59, 0.0 }
 0x3af   : > { %v6034_v14 = vsel %vm1778_vm2, %v1769_v59, %v1786_v23  ;;  %v6215_v59 = vpop.f32.mrf.mxu2  ;;  %v4574_v23 = vld [vmem:[%s7166_s14 + $0xc0] sm:$0xff] }
 0x3b0   : > { %2077 = vmatpush.msra.mxu3 %v6034_v14  ;;  %2437 = vmatpush.msra.mxu2 %v6034_v14 }
 0x3b2   : > { %2078 = vmatpush.msra.mxu3 %v6038_v22  ;;  %2438 = vmatpush.msra.mxu2 %v6038_v22 }
 0x3b4   : > { %2079 = vmatpush.msra.mxu3 %v6044_v19  ;;  %2439 = vmatpush.msra.mxu2 %v6044_v19 }
 0x3b5   : > { %2330 = vmatmul.f32.gmra.mxu1 %v4571_v2  ;;  %v6333_v2 = vld [vmem:[%s7165_s13 + $0x10] sm:$0xff] }
 0x3b6   : > { %2080 = vmatpush.msra.mxu3 %v6052_v30  ;;  %2440 = vmatpush.msra.mxu2 %v6052_v30 }
 0x3b7   : > { %v6237_v36 = vpop.f32.mrf.mxu2 }
 0x3b8   : > { %2081 = vmatpush.msra.mxu3 %v6060_v51  ;;  %2441 = vmatpush.msra.mxu2 %v6060_v51 }
 0x3ba   : > { %2082 = vmatpush.msra.mxu3 %v6064_v13  ;;  %2442 = vmatpush.msra.mxu2 %v6064_v13 }
 0x3bc   : > { %2083 = vmatpush.msra.mxu3 %v6070_v50  ;;  %2443 = vmatpush.msra.mxu2 %v6070_v50 }
 0x3bd   : > { %2333 = vmatmul.f32.gmra.mxu1 %v4572_v11  ;;  %v2017_v11 = vld [vmem:[%s7168_s16 + $0x60] sm:$0xff] }
 0x3be   : > { %2084 = vmatpush.msra.mxu3 %v6080_v8  ;;  %2444 = vmatpush.msra.mxu2 %v6080_v8 }
 0x3bf   : > { %4550 = vmatmul.msk.f32.vlgmr.msra.gmra.mxu3 %vm815_vm1, %v2005_v4  ;;  %4630 = vmatmul.msk.f32.vlgmr.msra.gmra.mxu2 %vm815_vm1, %v4614_v41  ;;  %v6265_v54 = vpop.f32.mrf.mxu2  ;;  %v6281_v4 = vpop.f32.mrf.mxu3 }
 0x3c0   : > { %2887 = vmatpush.msrb.mxu2 %v5560_v45  ;;  %4878 = vmatpush.msrb.mxu3 %v5560_v45  ;;  %v2006_v45 = vld [vmem:[%s7168_s16 + $0x8] sm:$0xff] }
 0x3c2   : > { %2888 = vmatpush.msrb.mxu2 %v5545_v35  ;;  %4879 = vmatpush.msrb.mxu3 %v5545_v35  ;;  %v4615_v35 = vld [vmem:[%s7168_s16 + $0x88] sm:$0xff] }
 0x3c4   : > { %2889 = vmatpush.msrb.mxu2 %v5532_v29  ;;  %4880 = vmatpush.msrb.mxu3 %v5532_v29  ;;  %v6122_v29 = vpop.f32.mrf.mxu1 }
 0x3c5   : > { %2336 = vmatmul.f32.gmra.mxu1 %v4573_v17 }
 0x3c6   : > { %2890 = vmatpush.msrb.mxu2 %v5525_v25  ;;  %4881 = vmatpush.msrb.mxu3 %v5525_v25  ;;  %v4587_v25 = vld [vmem:[%s7167_s15 + $0xa8] sm:$0xff] }
 0x3c7   : > { %4551 = vmatmul.msk.f32.gmra.mxu3 %vm815_vm1, %v2006_v45  ;;  %4631 = vmatmul.msk.f32.gmra.mxu2 %vm815_vm1, %v4615_v35  ;;  %v6288_v41 = vpop.f32.mrf.mxu2  ;;  %v4624_v45 = vld [vmem:[%s7168_s16 + $0xd0] sm:$0xff]  ;;  %v4578_v35 = vld [vmem:[%s7166_s14 + $0xe0] sm:$0xff] }
 0x3c8   : > { %2891 = vmatpush.msrb.mxu2 %v5515_v21  ;;  %4882 = vmatpush.msrb.mxu3 %v5515_v21  ;;  %v2007_v21 = vld [vmem:[%s7168_s16 + $0x10] sm:$0xff] }
 0x3c9   : > { %4603 = vmatmul.msk.f32.gmra.mxu0 %vm815_vm1, %v4587_v25  ;;  %v6307_v25 = vpop.f32.mrf.mxu3 }
 0x3ca   : > { %2892 = vmatpush.msrb.mxu2 %v5503_v16  ;;  %4883 = vmatpush.msrb.mxu3 %v5503_v16  ;;  %v4616_v16 = vld [vmem:[%s7168_s16 + $0x90] sm:$0xff] }
 0x3cc   : > { %2893 = vmatpush.msrb.mxu2 %v5493_v12  ;;  %4884 = vmatpush.msrb.mxu3 %v5493_v12  ;;  %v6147_v12 = vpop.f32.mrf.mxu1 }
 0x3cd   : > { %2339 = vmatmul.f32.gmra.mxu1 %v4574_v23  ;;  %v4627_v23 = vld [vmem:[%s7168_s16 + $0xe8] sm:$0xff] }
 0x3ce   : > { %2894 = vmatpush.msrb.mxu2 %v5485_v9  ;;  %4885 = vmatpush.msrb.mxu3 %v5485_v9  ;;  %v4588_v9 = vld [vmem:[%s7167_s15 + $0xb0] sm:$0xff] }
 0x3cf   : > { %4552 = vmatmul.msk.f32.gmra.mxu3 %vm815_vm1, %v2007_v21  ;;  %4632 = vmatmul.msk.f32.gmra.mxu2 %vm815_vm1, %v4616_v16  ;;  %v4596_v21 = vld [vmem:[%s7167_s15 + $0xf0] sm:$0xff]  ;;  %v6312_v16 = vpop.f32.mrf.mxu2 }
 0x3d0   : > { %2895 = vmatpush.msrb.mxu2 %v5480_v7  ;;  %4886 = vmatpush.msrb.mxu3 %v5480_v7  ;;  %v2008_v7 = vld [vmem:[%s7168_s16 + $0x18] sm:$0xff] }
 0x3d1   : > { %4604 = vmatmul.msk.f32.gmra.mxu0 %vm815_vm1, %v4588_v9  ;;  %v4625_v9 = vld [vmem:[%s7168_s16 + $0xd8] sm:$0xff] }
 0x3d2   : > { %2896 = vmatpush.msrb.mxu2 %v5475_v5  ;;  %4887 = vmatpush.msrb.mxu3 %v5475_v5  ;;  %v4617_v5 = vld [vmem:[%s7168_s16 + $0x98] sm:$0xff] }
 0x3d4   : > { %2897 = vmatpush.msrb.mxu2 %v5470_v3  ;;  %4888 = vmatpush.msrb.mxu3 %v5470_v3  ;;  %v6172_v3 = vpop.f32.mrf.mxu1 }
 0x3d5   : > { %2342 = vmatmul.f32.gmra.mxu1 %v4575_v56  ;;  %v2251_v56 = vpop.f32.mrf.mxu0 }
 0x3d6   : > { %2898 = vmatpush.msrb.mxu2 %v5462_v0  ;;  %4889 = vmatpush.msrb.mxu3 %v5462_v0  ;;  %v4589_v0 = vld [vmem:[%s7167_s15 + $0xb8] sm:$0xff] }
 0x3d7   : > { %4553 = vmatmul.msk.f32.gmra.mxu3 %vm815_vm1, %v2008_v7  ;;  %4633 = vmatmul.msk.f32.gmra.mxu2 %vm815_vm1, %v4617_v5  ;;  %v4579_v7 = vld [vmem:[%s7166_s14 + $0xe8] sm:$0xff]  ;;  %v6328_v5 = vld [vmem:[%s7165_s13 + $0x18] sm:$0xff] }
 0x3d8   : > { %2899 = vmatpush.msrb.mxu2 %v5454_v61  ;;  %4890 = vmatpush.msrb.mxu3 %v5454_v61  ;;  %v2009_v61 = vld [vmem:[%s7168_s16 + $0x20] sm:$0xff] }
 0x3d9   : > { %4605 = vmatmul.msk.f32.gmra.mxu0 %vm815_vm1, %v4589_v0 }
 0x3da   : > { %2900 = vmatpush.msrb.mxu2 %v5446_v58  ;;  %4891 = vmatpush.msrb.mxu3 %v5446_v58  ;;  %v4618_v58 = vld [vmem:[%s7168_s16 + $0xa0] sm:$0xff] }
 0x3dc   : > { %2901 = vmatpush.msrb.mxu2 %v5432_v49  ;;  %4892 = vmatpush.msrb.mxu3 %v5432_v49  ;;  %v6193_v49 = vpop.f32.mrf.mxu1 }
 0x3dd   : > { %2345 = vmatmul.f32.gmra.mxu1 %v4576_v48  ;;  %v2020_v48 = vld [vmem:[%s7168_s16 + $0x78] sm:$0xff] }
 0x3de   : > { %2902 = vmatpush.msrb.mxu2 %v5418_v39  ;;  %4893 = vmatpush.msrb.mxu3 %v5418_v39  ;;  %v4619_v39 = vld [vmem:[%s7168_s16 + $0xa8] sm:$0xff] }
 0x3df   : > { %4554 = vmatmul.msk.f32.gmra.mxu3 %vm815_vm1, %v2009_v61  ;;  %4634 = vmatmul.msk.f32.gmra.mxu2 %vm815_vm1, %v4618_v58  ;;  %v6339_v61 = vpop.f32.mrf.mxu3  ;;  %v4597_v58 = vld [vmem:[%s7167_s15 + $0xf8] sm:$0xff] }
 0x3e0   : > { %2576 = vmatpush.msra.mxu3 %v6328_v5 }
 0x3e1   : > { %4606 = vmatmul.msk.f32.gmra.mxu0 %vm815_vm1, %v4590_v28  ;;  %v6348_v28 = vpop.f32.mrf.mxu2 }
 0x3e2   : > { %2577 = vmatpush.msra.mxu3 %v6333_v2 }
 0x3e4   : > { %v6210_v43 = vpop.f32.mrf.mxu1 }
 0x3e5   : > { %2348 = vmatmul.f32.gmra.mxu1 %v4577_v6 }
 0x3e7   : > { %4555 = vmatmul.msk.f32.gmra.mxu3 %vm815_vm1, %v2010_v34  ;;  %4635 = vmatmul.msk.f32.gmra.mxu2 %vm815_vm1, %v4619_v39  ;;  %v4626_v34 = vld [vmem:[%s7168_s16 + $0xe0] sm:$0xff]  ;;  %v6359_v39 = vld [vmem:[%s7165_s13 + $0x8] sm:$0xff] }
 0x3e8   : > { %2689 = vmatpush.msra.mxu0 %v6359_v39 }
 0x3e9   : > { %4607 = vmatmul.msk.f32.gmra.mxu0 %vm815_vm1, %v4591_v52  ;;  %v2018_v52 = vld [vmem:[%s7168_s16 + $0x68] sm:$0xff] }
 0x3ec   : > { %v6229_v24 = vpop.f32.mrf.mxu1 }
 0x3ed   : > { %2351 = vmatmul.f32.gmra.mxu1 %v4578_v35 }
 0x3ef   : > { %4556 = vmatmul.msk.f32.gmra.mxu3 %vm815_vm1, %v2011_v18  ;;  %4636 = vmatmul.msk.f32.gmra.mxu2 %vm815_vm1, %v4620_v53  ;;  %v6367_v18 = vpop.f32.mrf.mxu3  ;;  %v6372_v53 = vld [vmem:[%s7165_s13] sm:$0xff] }
 0x3f0   : > { %2690 = vmatpush.msra.mxu0 %v6372_v53 }
 0x3f1   : > { %4608 = vmatmul.msk.f32.gmra.mxu0 %vm815_vm1, %v4592_v27  ;;  %v6378_v27 = vpop.f32.mrf.mxu2 }
 0x3f4   : > { %v6251_v32 = vpop.f32.mrf.mxu1 }
 0x3f5   : > { %2354 = vmatmul.f32.gmra.mxu1 %v4579_v7 }
 0x3f7   : > { %4557 = vmatmul.msk.f32.gmra.mxu3 %vm815_vm1, %v2012_v33  ;;  %4637 = vmatmul.msk.f32.gmra.mxu2 %vm815_vm1, %v4621_v26  ;;  %v2019_v26 = vld [vmem:[%s7168_s16 + $0x70] sm:$0xff] }
 0x3f9   : > { %4609 = vmatmul.msk.f32.gmra.mxu0 %vm815_vm1, %v4593_v37  ;;  %v4628_v37 = vld [vmem:[%s7168_s16 + $0xf0] sm:$0xff] }
 0x3fc   : > { %v6278_v62 = vpop.f32.mrf.mxu1 }
 0x3ff   : > { %4558 = vmatmul.msk.f32.gmra.mxu3 %vm815_vm1, %v2013_v40  ;;  %4638 = vmatmul.msk.f32.gmra.mxu2 %vm815_vm1, %v4622_v46  ;;  %v6388_v40 = vpop.f32.mrf.mxu3  ;;  %v6392_v46 = vpop.f32.mrf.mxu2 }
 0x401   : > { %4610 = vmatmul.msk.f32.gmra.mxu0 %vm815_vm1, %v4594_v57 }
 0x404   : > { %v6304_v63 = vpop.f32.mrf.mxu1 }
 0x407   : > { %4559 = vmatmul.msk.f32.gmra.mxu3 %vm815_vm1, %v2014_v31  ;;  %4639 = vmatmul.msk.f32.gmra.mxu2 %vm815_vm1, %v4623_v60  ;;  %v4629_v31 = vld [vmem:[%s7168_s16 + $0xf8] sm:$0xff]  ;;  %v2254_v60 = vpop.f32.mrf.mxu0  ;;  %v6401_v6 = vpop.f32.mrf.mxu3 }
 0x409   : > { %4611 = vmatmul.msk.f32.gmra.mxu0 %vm815_vm1, %v4595_v55  ;;  %v6404_v55 = vpop.f32.mrf.mxu2 }
 0x40c   : > { %v6337_v0 = vpop.f32.mrf.mxu1 }
 0x40f   : > { %4560 = vmatmul.msk.f32.gmra.mxu3 %vm815_vm1, %v2015_v15  ;;  %4640 = vmatmul.msk.f32.gmra.mxu2 %vm815_vm1, %v4624_v45  ;;  %v4580_v15 = vld [vmem:[%s7166_s14 + $0xf0] sm:$0xff]  ;;  %v2257_v35 = vpop.f32.mrf.mxu0 }
 0x411   : > { %4612 = vmatmul.msk.f32.gmra.mxu0 %vm815_vm1, %v4596_v21  ;;  %v1958_v21 = vadd.f32 %v6215_v59, %v6019_v44 }
 0x414   : > { %v6361_v17 = vpop.f32.mrf.mxu1 }
 0x417   : > { %4561 = vmatmul.msk.f32.gmra.mxu3 %vm815_vm1, %v2016_v20  ;;  %4641 = vmatmul.msk.f32.gmra.mxu2 %vm815_vm1, %v4625_v9 }
 0x419   : > { %4613 = vmatmul.msk.f32.gmra.mxu0 %vm815_vm1, %v4597_v58  ;;  %v4581_v58 = vld [vmem:[%s7166_s14 + $0xf8] sm:$0xff] }
 0x41c   : > { %v2316_v33 = vpop.f32.mrf.mxu1 }
 0x41f   : > { %4562 = vmatmul.msk.f32.gmra.mxu3 %vm815_vm1, %v2017_v11  ;;  %4642 = vmatmul.msk.f32.gmra.mxu2 %vm815_vm1, %v4626_v34 }
 0x424   : > { %v2319_v57 = vpop.f32.mrf.mxu1 }
 0x427   : > { %4563 = vmatmul.msk.f32.gmra.mxu3 %vm815_vm1, %v2018_v52  ;;  %4643 = vmatmul.msk.f32.gmra.mxu2 %vm815_vm1, %v4627_v23 }
 0x42c   : > { %v2322_v45 = vpop.f32.mrf.mxu1 }
 0x42f   : > { %4564 = vmatmul.msk.f32.gmra.mxu3 %vm815_vm1, %v2019_v26  ;;  %4644 = vmatmul.msk.f32.gmra.mxu2 %vm815_vm1, %v4628_v37  ;;  %v1967_v26 = vadd.f32 %v6288_v41, %v6068_v1 }
 0x434   : > { %v2325_v44 = vpop.f32.mrf.mxu1 }
 0x437   : > { %4565 = vmatmul.msk.f32.gmra.mxu3 %vm815_vm1, %v2020_v48  ;;  %4645 = vmatmul.msk.f32.gmra.mxu2 %vm815_vm1, %v4629_v31 }
 0x43f   : > { %2357 = vmatmul.f32.vlgmr.msrb.gmra.mxu3 %v4580_v15 }
 0x440   : > { %3025 = vmatpush.msrb.mxu3 %v6034_v14  ;;  %v2317_v14 = vadd.f32 %v2316_v33, %v2251_v56 }
 0x442   : > { %3026 = vmatpush.msrb.mxu3 %v6038_v22  ;;  %v2086_v20 = vpop.f32.mrf.mxu3  ;;  %v2446_v7 = vpop.f32.mrf.mxu2  ;;  %v1961_v22 = vadd.f32 %v6237_v36, %v6025_v47  ;;  %v1964_v47 = vadd.f32 %v6265_v54, %v6042_v38 }
 0x443   : > { %v2134_v9 = vadd.f32 %v2086_v20, %v1958_v21  ;;  %v2494_v34 = vadd.f32 %v2446_v7, %v2317_v14  ;;  %v1973_v21 = vadd.f32 %v6348_v28, %v6122_v29  ;;  %v1976_v14 = vadd.f32 %v6378_v27, %v6147_v12 }
 0x444   : > { %3027 = vmatpush.msrb.mxu3 %v6044_v19  ;;  %v2260_v19 = vpop.f32.mrf.mxu0  ;;  %v1979_v28 = vadd.f32 %v6392_v46, %v6172_v3  ;;  %v1982_v27 = vadd.f32 %v6404_v55, %v6193_v49 }
 0x445   : > { %4664 = vmatmul.msk.f32.vlgmr.msra.gmra.mxu0 %vm2513_vm10, %v2134_v9  ;;  %v2326_v48 = vadd.f32 %v2325_v44, %v2260_v19 }
 0x446   : > { %3028 = vmatpush.msrb.mxu3 %v6052_v30  ;;  %v2320_v30 = vadd.f32 %v2319_v57, %v2254_v60  ;;  %v1970_v57 = vadd.f32 %v6312_v16, %v6097_v10 }
 0x447   : > { %2360 = vmatmul.f32.gmra.mxu3 %v4581_v58 }
 0x448   : > { %3029 = vmatpush.msrb.mxu3 %v6060_v51 }
 0x44a   : > { %3030 = vmatpush.msrb.mxu3 %v6064_v13  ;;  %v2089_v59 = vpop.f32.mrf.mxu3  ;;  %v2449_v52 = vpop.f32.mrf.mxu2 }
 0x44b   : > { %v2135_v11 = vadd.f32 %v2089_v59, %v1961_v22  ;;  %v2328_v13 = vpop.f32.mrf.mxu1  ;;  %v2495_v23 = vadd.f32 %v2449_v52, %v2320_v30 }
 0x44c   : > { %3031 = vmatpush.msrb.mxu3 %v6070_v50  ;;  %v2263_v50 = vpop.f32.mrf.mxu0 }
 0x44d   : > { %4665 = vmatmul.msk.f32.gmra.mxu0 %vm2513_vm10, %v2135_v11  ;;  %v2329_v41 = vadd.f32 %v2328_v13, %v2263_v50 }
 0x44e   : > { %3032 = vmatpush.msrb.mxu3 %v6080_v8  ;;  %v2323_v8 = vadd.f32 %v2322_v45, %v2257_v35 }
 0x44f   : > { %4648 = vmatmul.msk.f32.vlgmr.msra.gmra.mxu3 %vm2513_vm10, %v2494_v34 }
 0x450   : > { %3727 = vmatpush.msra.mxu3 %v6328_v5 }
 0x452   : > { %v2092_v51 = vpop.f32.mrf.mxu3  ;;  %3728 = vmatpush.msra.mxu3 %v6333_v2  ;;  %v2452_v33 = vpop.f32.mrf.mxu2 }
 0x453   : > { %v2136_v36 = vadd.f32 %v2092_v51, %v1964_v47  ;;  %v2496_v37 = vadd.f32 %v2452_v33, %v2323_v8  ;;  %v2331_v54 = vpop.f32.mrf.mxu1 }
 0x454   : > { %v2266_v2 = vpop.f32.mrf.mxu0 }
 0x455   : > { %4666 = vmatmul.msk.f32.gmra.mxu0 %vm2513_vm10, %v2136_v36  ;;  %v2332_v10 = vadd.f32 %v2331_v54, %v2266_v2  ;;  %v1988_v2 = vadd.f32 %v6281_v4, %v6229_v24  ;;  %v1994_v4 = vadd.f32 %v6339_v61, %v6278_v62 }
 0x457   : > { %4649 = vmatmul.msk.f32.gmra.mxu3 %vm2513_vm10, %v2495_v23 }
 0x45a   : > { %v2095_v5 = vpop.f32.mrf.mxu3  ;;  %v2455_v38 = vpop.f32.mrf.mxu2 }
 0x45b   : > { %v2137_v56 = vadd.f32 %v2095_v5, %v1967_v26  ;;  %v2497_v15 = vadd.f32 %v2455_v38, %v2326_v48  ;;  %v2334_v1 = vpop.f32.mrf.mxu1  ;;  %v1985_v26 = vadd.f32 %v6256_v42, %v6210_v43 }
 0x45c   : > { %v2269_v35 = vpop.f32.mrf.mxu0 }
 0x45d   : > { %4667 = vmatmul.msk.f32.gmra.mxu0 %vm2513_vm10, %v2137_v56  ;;  %v2335_v29 = vadd.f32 %v2334_v1, %v2269_v35 }
 0x45f   : > { %4650 = vmatmul.msk.f32.gmra.mxu3 %vm2513_vm10, %v2496_v37 }
 0x462   : > { %v2098_v31 = vpop.f32.mrf.mxu3  ;;  %v2458_v45 = vpop.f32.mrf.mxu2 }
 0x463   : > { %v2138_v60 = vadd.f32 %v2098_v31, %v1970_v57  ;;  %v2498_v7 = vadd.f32 %v2458_v45, %v2329_v41  ;;  %v2337_v16 = vpop.f32.mrf.mxu1 }
 0x464   : > { %v2272_v22 = vpop.f32.mrf.mxu0 }
 0x465   : > { %4668 = vmatmul.msk.f32.gmra.mxu0 %vm2513_vm10, %v2138_v60  ;;  %v2338_v12 = vadd.f32 %v2337_v16, %v2272_v22  ;;  %v1997_v16 = vadd.f32 %v6367_v18, %v6304_v63  ;;  %v4680_v63 = vld [vmem:[%s7166_s14 + $0x100] sm:$0xff]  ;;  %v2003_v18 = vadd.f32 %v6401_v6, %v6361_v17  ;;  %v4697_v17 = vld [vmem:[%s7167_s15 + $0x108] sm:$0xff]  ;;  %v4682_v6 = vld [vmem:[%s7166_s14 + $0x110] sm:$0xff] }
 0x466   : > { %2903 = vmatmul.f32.vlgmr.msrb.gmra.mxu2 %v4680_v63  ;;  %v4694_v63 = vld [vmem:[%s7166_s14 + $0x170] sm:$0xff] }
 0x467   : > { %4651 = vmatmul.msk.f32.gmra.mxu3 %vm2513_vm10, %v2497_v15  ;;  %v1991_v15 = vadd.f32 %v6307_v25, %v6251_v32 }
 0x46a   : > { %v2101_v20 = vpop.f32.mrf.mxu3  ;;  %v2461_v58 = vpop.f32.mrf.mxu2 }
 0x46b   : > { %v2139_v9 = vadd.f32 %v2101_v20, %v1973_v21  ;;  %v2499_v19 = vadd.f32 %v2461_v58, %v2332_v10  ;;  %v2340_v52 = vpop.f32.mrf.mxu1 }
 0x46c   : > { %v2275_v13 = vpop.f32.mrf.mxu0 }
 0x46d   : > { %4669 = vmatmul.msk.f32.gmra.mxu0 %vm2513_vm10, %v2139_v9  ;;  %v2341_v46 = vadd.f32 %v2340_v52, %v2275_v13 }
 0x46f   : > { %4652 = vmatmul.msk.f32.gmra.mxu3 %vm2513_vm10, %v2498_v7 }
 0x472   : > { %v2104_v44 = vpop.f32.mrf.mxu3  ;;  %v2464_v11 = vpop.f32.mrf.mxu2 }
 0x473   : > { %v2140_v59 = vadd.f32 %v2104_v44, %v1976_v14  ;;  %v2500_v47 = vadd.f32 %v2464_v11, %v2335_v29  ;;  %v2343_v8 = vpop.f32.mrf.mxu1  ;;  %v2000_v11 = vadd.f32 %v6388_v40, %v6337_v0  ;;  %v4696_v0 = vld [vmem:[%s7167_s15 + $0x100] sm:$0xff]  ;;  %v4681_v40 = vld [vmem:[%s7166_s14 + $0x108] sm:$0xff] }
 0x474   : > { %v2278_v3 = vpop.f32.mrf.mxu0  ;;  %4712 = vmatmul.msk.f32.vlgmr.msrb.gmra.mxu1 %vm815_vm1, %v4696_v0  ;;  %2906 = vmatmul.f32.gmra.mxu2 %v4681_v40  ;;  %v4695_v0 = vld [vmem:[%s7166_s14 + $0x178] sm:$0xff] }
 0x475   : > { %4670 = vmatmul.msk.f32.gmra.mxu0 %vm2513_vm10, %v2140_v59  ;;  %v2344_v55 = vadd.f32 %v2343_v8, %v2278_v3  ;;  %v4698_v8 = vld [vmem:[%s7167_s15 + $0x110] sm:$0xff]  ;;  %v4683_v3 = vld [vmem:[%s7166_s14 + $0x118] sm:$0xff] }
 0x476   : > { %v4739_v40 = vld [vmem:[%s7168_s16 + $0x158] sm:$0xff] }
 0x477   : > { %4653 = vmatmul.msk.f32.gmra.mxu3 %vm2513_vm10, %v2499_v19 }
 0x47a   : > { %v2107_v34 = vpop.f32.mrf.mxu3  ;;  %v2467_v51 = vpop.f32.mrf.mxu2 }
 0x47b   : > { %v2141_v30 = vadd.f32 %v2107_v34, %v1979_v28  ;;  %v2501_v33 = vadd.f32 %v2467_v51, %v2338_v12  ;;  %v2346_v49 = vpop.f32.mrf.mxu1 }
 0x47c   : > { %v2281_v54 = vpop.f32.mrf.mxu0  ;;  %4713 = vmatmul.msk.f32.gmra.mxu1 %vm815_vm1, %v4697_v17  ;;  %2909 = vmatmul.f32.gmra.mxu2 %v4682_v6 }
 0x47d   : > { %4671 = vmatmul.msk.f32.gmra.mxu0 %vm2513_vm10, %v2141_v30  ;;  %v2347_v43 = vadd.f32 %v2346_v49, %v2281_v54  ;;  %v4700_v49 = vld [vmem:[%s7167_s15 + $0x120] sm:$0xff]  ;;  %v4729_v54 = vld [vmem:[%s7168_s16 + $0x108] sm:$0xff] }
 0x47f   : > { %4654 = vmatmul.msk.f32.gmra.mxu3 %vm2513_vm10, %v2500_v47 }
 0x482   : > { %v2110_v36 = vpop.f32.mrf.mxu3  ;;  %v2470_v50 = vpop.f32.mrf.mxu2 }
 0x483   : > { %v2142_v23 = vadd.f32 %v2110_v36, %v1982_v27  ;;  %v2502_v37 = vadd.f32 %v2470_v50, %v2341_v46  ;;  %v2349_v42 = vpop.f32.mrf.mxu1 }
 0x484   : > { %v2284_v1 = vpop.f32.mrf.mxu0  ;;  %4714 = vmatmul.msk.f32.gmra.mxu1 %vm815_vm1, %v4698_v8  ;;  %2912 = vmatmul.f32.gmra.mxu2 %v4683_v3  ;;  %v4742_v3 = vld [vmem:[%s7168_s16 + $0x170] sm:$0xff] }
 0x485   : > { %4672 = vmatmul.msk.f32.gmra.mxu0 %vm2513_vm10, %v2142_v23  ;;  %v2350_v24 = vadd.f32 %v2349_v42, %v2284_v1  ;;  %v4687_v42 = vld [vmem:[%s7166_s14 + $0x138] sm:$0xff] }
 0x486   : > { %v4703_v1 = vld [vmem:[%s7167_s15 + $0x138] sm:$0xff] }
 0x487   : > { %4655 = vmatmul.msk.f32.gmra.mxu3 %vm2513_vm10, %v2501_v33 }
 0x48a   : > { %v2113_v5 = vpop.f32.mrf.mxu3  ;;  %v2473_v38 = vpop.f32.mrf.mxu2 }
 0x48b   : > { %v2143_v56 = vadd.f32 %v2113_v5, %v1985_v26  ;;  %v2503_v31 = vadd.f32 %v2473_v38, %v2344_v55  ;;  %v2352_v9 = vpop.f32.mrf.mxu1  ;;  %v4699_v5 = vld [vmem:[%s7167_s15 + $0x118] sm:$0xff]  ;;  %v4685_v55 = vld [vmem:[%s7166_s14 + $0x128] sm:$0xff] }
 0x48c   : > { %v2287_v10 = vpop.f32.mrf.mxu0  ;;  %4715 = vmatmul.msk.f32.gmra.mxu1 %vm815_vm1, %v4699_v5 }
 0x48d   : > { %4673 = vmatmul.msk.f32.gmra.mxu0 %vm2513_vm10, %v2143_v56  ;;  %v2353_v25 = vadd.f32 %v2352_v9, %v2287_v10  ;;  %v4684_v56 = vld [vmem:[%s7166_s14 + $0x120] sm:$0xff]  ;;  %v4734_v10 = vld [vmem:[%s7168_s16 + $0x130] sm:$0xff] }
 0x48e   : > { %2915 = vmatmul.f32.gmra.mxu2 %v4684_v56 }
 0x48f   : > { %4656 = vmatmul.msk.f32.gmra.mxu3 %vm2513_vm10, %v2502_v37  ;;  %v4728_v37 = vld [vmem:[%s7168_s16 + $0x100] sm:$0xff] }
 0x492   : > { %v2116_v48 = vpop.f32.mrf.mxu3  ;;  %v2476_v60 = vpop.f32.mrf.mxu2 }
 0x493   : > { %v2144_v57 = vadd.f32 %v2116_v48, %v1988_v2  ;;  %v2504_v35 = vadd.f32 %v2476_v60, %v2347_v43  ;;  %v2355_v59 = vpop.f32.mrf.mxu1  ;;  %v4701_v48 = vld [vmem:[%s7167_s15 + $0x128] sm:$0xff]  ;;  %v4702_v43 = vld [vmem:[%s7167_s15 + $0x130] sm:$0xff] }
 0x494   : > { %v2290_v62 = vpop.f32.mrf.mxu0  ;;  %4716 = vmatmul.msk.f32.gmra.mxu1 %vm815_vm1, %v4700_v49 }
 0x495   : > { %4674 = vmatmul.msk.f32.gmra.mxu0 %vm2513_vm10, %v2144_v57  ;;  %v2356_v61 = vadd.f32 %v2355_v59, %v2290_v62  ;;  %v4686_v57 = vld [vmem:[%s7166_s14 + $0x130] sm:$0xff]  ;;  %v4692_v59 = vld [vmem:[%s7166_s14 + $0x160] sm:$0xff] }
 0x496   : > { %2918 = vmatmul.f32.gmra.mxu2 %v4685_v55  ;;  %v4736_v62 = vld [vmem:[%s7168_s16 + $0x140] sm:$0xff] }
 0x497   : > { %4657 = vmatmul.msk.f32.gmra.mxu3 %vm2513_vm10, %v2503_v31  ;;  %v4730_v31 = vld [vmem:[%s7168_s16 + $0x110] sm:$0xff] }
 0x49a   : > { %v2119_v45 = vpop.f32.mrf.mxu3  ;;  %v2479_v21 = vpop.f32.mrf.mxu2 }
 0x49b   : > { %v2145_v41 = vadd.f32 %v2119_v45, %v1991_v15  ;;  %v2505_v58 = vadd.f32 %v2479_v21, %v2350_v24  ;;  %v4731_v15 = vld [vmem:[%s7168_s16 + $0x118] sm:$0xff]  ;;  %v4704_v24 = vld [vmem:[%s7167_s15 + $0x140] sm:$0xff] }
 0x49c   : > { %v2293_v47 = vpop.f32.mrf.mxu0  ;;  %4717 = vmatmul.msk.f32.gmra.mxu1 %vm815_vm1, %v4701_v48 }
 0x49d   : > { %4675 = vmatmul.msk.f32.gmra.mxu0 %vm2513_vm10, %v2145_v41  ;;  %v4688_v41 = vld [vmem:[%s7166_s14 + $0x140] sm:$0xff] }
 0x49e   : > { %2921 = vmatmul.f32.gmra.mxu2 %v4686_v57 }
 0x49f   : > { %4658 = vmatmul.msk.f32.gmra.mxu3 %vm2513_vm10, %v2504_v35  ;;  %v4732_v35 = vld [vmem:[%s7168_s16 + $0x120] sm:$0xff] }
 0x4a2   : > { %v2122_v20 = vpop.f32.mrf.mxu3  ;;  %v2482_v32 = vpop.f32.mrf.mxu2 }
 0x4a3   : > { %v2146_v7 = vadd.f32 %v2122_v20, %v1994_v4  ;;  %v2506_v22 = vadd.f32 %v2482_v32, %v2353_v25  ;;  %v4689_v4 = vld [vmem:[%s7166_s14 + $0x148] sm:$0xff]  ;;  %v4706_v25 = vld [vmem:[%s7167_s15 + $0x150] sm:$0xff] }
 0x4a4   : > { %v2296_v36 = vpop.f32.mrf.mxu0  ;;  %4718 = vmatmul.msk.f32.gmra.mxu1 %vm815_vm1, %v4702_v43  ;;  %v4733_v20 = vld [vmem:[%s7168_s16 + $0x128] sm:$0xff] }
 0x4a5   : > { %4676 = vmatmul.msk.f32.gmra.mxu0 %vm2513_vm10, %v2146_v7  ;;  %v4705_v7 = vld [vmem:[%s7167_s15 + $0x148] sm:$0xff] }
 0x4a6   : > { %2924 = vmatmul.f32.gmra.mxu2 %v4687_v42 }
 0x4a7   : > { %4659 = vmatmul.msk.f32.gmra.mxu3 %vm2513_vm10, %v2505_v58  ;;  %v4690_v58 = vld [vmem:[%s7166_s14 + $0x150] sm:$0xff] }
 0x4aa   : > { %v2125_v14 = vpop.f32.mrf.mxu3  ;;  %v2485_v19 = vpop.f32.mrf.mxu2 }
 0x4ab   : > { %v2147_v44 = vadd.f32 %v2125_v14, %v1997_v16  ;;  %v2507_v34 = vadd.f32 %v2485_v19, %v2356_v61  ;;  %v4691_v16 = vld [vmem:[%s7166_s14 + $0x158] sm:$0xff]  ;;  %v4708_v19 = vld [vmem:[%s7167_s15 + $0x160] sm:$0xff] }
 0x4ac   : > { %4719 = vmatmul.msk.f32.gmra.mxu1 %vm815_vm1, %v4703_v1  ;;  %v4735_v14 = vld [vmem:[%s7168_s16 + $0x138] sm:$0xff] }
 0x4ad   : > { %4677 = vmatmul.msk.f32.gmra.mxu0 %vm2513_vm10, %v2147_v44 }
 0x4ae   : > { %2927 = vmatmul.f32.gmra.mxu2 %v4688_v41 }
 0x4af   : > { %4660 = vmatmul.msk.f32.gmra.mxu3 %vm2513_vm10, %v2506_v22  ;;  %v4707_v22 = vld [vmem:[%s7167_s15 + $0x158] sm:$0xff] }
 0x4b2   : > { %v2128_v29 = vpop.f32.mrf.mxu3  ;;  %v2488_v51 = vpop.f32.mrf.mxu2 }
 0x4b3   : > { %v2148_v28 = vadd.f32 %v2128_v29, %v2000_v11  ;;  %v4693_v11 = vld [vmem:[%s7166_s14 + $0x168] sm:$0xff] }
 0x4b4   : > { %4720 = vmatmul.msk.f32.gmra.mxu1 %vm815_vm1, %v4704_v24  ;;  %v6638_v29 = vld [vmem:[%s7165_s13 + $0x28] sm:$0xff] }
 0x4b5   : > { %4678 = vmatmul.msk.f32.gmra.mxu0 %vm2513_vm10, %v2148_v28  ;;  %7196 = vst [vmem:[#allocation5_spill] sm:$0xff] %v6638_v29  ;;  %v4737_v28 = vld [vmem:[%s7168_s16 + $0x148] sm:$0xff] }
 0x4b6   : > { %2930 = vmatmul.f32.gmra.mxu2 %v4689_v4  ;;  %3163 = vmatpush.msrb.mxu0 %v6638_v29 }
 0x4b7   : > { %4661 = vmatmul.msk.f32.gmra.mxu3 %vm2513_vm10, %v2507_v34  ;;  %v4709_v34 = vld [vmem:[%s7167_s15 + $0x168] sm:$0xff] }
 0x4ba   : > { %v2131_v52 = vpop.f32.mrf.mxu3  ;;  %v2491_v33 = vpop.f32.mrf.mxu2 }
 0x4bb   : > { %v2149_v30 = vadd.f32 %v2131_v52, %v2003_v18  ;;  %v4738_v52 = vld [vmem:[%s7168_s16 + $0x150] sm:$0xff] }
 0x4bc   : > { %4721 = vmatmul.msk.f32.gmra.mxu1 %vm815_vm1, %v4705_v7 }
 0x4bd   : > { %4679 = vmatmul.msk.f32.gmra.mxu0 %vm2513_vm10, %v2149_v30  ;;  %v4710_v30 = vld [vmem:[%s7167_s15 + $0x170] sm:$0xff] }
 0x4be   : > { %2933 = vmatmul.f32.gmra.mxu2 %v4690_v58 }
 0x4c2   : > { %v2358_v13 = vpop.f32.mrf.mxu3 }
 0x4c3   : > { %v2359_v12 = vadd.f32 %v2358_v13, %v2293_v47  ;;  %v4740_v13 = vld [vmem:[%s7168_s16 + $0x160] sm:$0xff] }
 0x4c4   : > { %4722 = vmatmul.msk.f32.gmra.mxu1 %vm815_vm1, %v4706_v25 }
 0x4c5   : > { %v2508_v27 = vadd.f32 %v2488_v51, %v2359_v12  ;;  %v4711_v51 = vld [vmem:[%s7167_s15 + $0x178] sm:$0xff] }
 0x4c6   : > { %2936 = vmatmul.f32.gmra.mxu2 %v4691_v16 }
 0x4c7   : > { %4662 = vmatmul.msk.f32.gmra.mxu3 %vm2513_vm10, %v2508_v27  ;;  %v6685_v27 = vld [vmem:[%s7165_s13 + $0x20] sm:$0xff] }
 0x4c8   : > { %7197 = vst [vmem:[#allocation6_spill] sm:$0xff] %v6685_v27  ;;  %3164 = vmatpush.msrb.mxu0 %v6685_v27 }
 0x4ca   : > { %v2361_v23 = vpop.f32.mrf.mxu3  ;;  %3840 = vmatpush.msra.mxu0 %v6359_v39 }
 0x4cb   : > { %v2362_v50 = vadd.f32 %v2361_v23, %v2296_v36  ;;  %v6687_v36 = vpop.f32.mrf.mxu0  ;;  %v4741_v23 = vld [vmem:[%s7168_s16 + $0x168] sm:$0xff] }
 0x4cc   : > { %4723 = vmatmul.msk.f32.gmra.mxu1 %vm815_vm1, %v4707_v22  ;;  %7198 = vst [vmem:[#allocation7_spill] sm:$0xff] %v6687_v36  ;;  %3841 = vmatpush.msra.mxu0 %v6372_v53 }
 0x4cd   : > { %v2509_v46 = vadd.f32 %v2491_v33, %v2362_v50 }
 0x4ce   : > { %2939 = vmatmul.f32.gmra.mxu2 %v4692_v59 }
 0x4cf   : > { %4663 = vmatmul.msk.f32.gmra.mxu3 %vm2513_vm10, %v2509_v46 }
 0x4d2   : > { %v6510_v26 = vpop.f32.mrf.mxu3 }
 0x4d3   : > { %7193 = vst [vmem:[#allocation2_spill] sm:$0xff] %v6510_v26  ;;  %v6701_v46 = vpop.f32.mrf.mxu0 }
 0x4d4   : > { %4724 = vmatmul.msk.f32.gmra.mxu1 %vm815_vm1, %v4708_v19  ;;  %7199 = vst [vmem:[#allocation8_spill] sm:$0xff] %v6701_v46 }
 0x4d6   : > { %2942 = vmatmul.f32.gmra.mxu2 %v4693_v11 }
 0x4d7   : > { %4744 = vmatmul.msk.f32.vlgmr.msrb.gmra.mxu3 %vm815_vm1, %v4728_v37  ;;  %v4743_v37 = vld [vmem:[%s7168_s16 + $0x178] sm:$0xff] }
 0x4da   : > { %v6523_v38 = vpop.f32.mrf.mxu3 }
 0x4db   : > { %7194 = vst [vmem:[#allocation3_spill] sm:$0xff] %v6523_v38  ;;  %v6710_v53 = vpop.f32.mrf.mxu0 }
 0x4dc   : > { %4725 = vmatmul.msk.f32.gmra.mxu1 %vm815_vm1, %v4709_v34  ;;  %7200 = vst [vmem:[#allocation9_spill] sm:$0xff] %v6710_v53 }
 0x4de   : > { %2945 = vmatmul.f32.gmra.mxu2 %v4694_v63 }
 0x4df   : > { %4745 = vmatmul.msk.f32.gmra.mxu3 %vm815_vm1, %v4729_v54 }
 0x4e2   : > { %v6536_v2 = vpop.f32.mrf.mxu3 }
 0x4e3   : > { %7195 = vst [vmem:[#allocation4_spill] sm:$0xff] %v6536_v2  ;;  %v6714_v57 = vpop.f32.mrf.mxu0 }
 0x4e4   : > { %4726 = vmatmul.msk.f32.gmra.mxu1 %vm815_vm1, %v4710_v30 }
 0x4e6   : > { %2948 = vmatmul.f32.gmra.mxu2 %v4695_v0 }
 0x4e7   : > { %4746 = vmatmul.msk.f32.gmra.mxu3 %vm815_vm1, %v4730_v31 }
 0x4e9   : > { %v2904_v12 = vpop.f32.mrf.mxu2 }
 0x4ea   : > { %v6549_v60 = vpop.f32.mrf.mxu3 }
 0x4eb   : > { %v6717_v24 = vpop.f32.mrf.mxu0 }
 0x4ec   : > { %4727 = vmatmul.msk.f32.gmra.mxu1 %vm815_vm1, %v4711_v51 }
 0x4ef   : > { %4747 = vmatmul.msk.f32.gmra.mxu3 %vm815_vm1, %v4731_v15 }
 0x4f1   : > { %v2839_v6 = vpop.f32.mrf.mxu1 }
 0x4f2   : > { %v6562_v45 = vpop.f32.mrf.mxu3  ;;  %v2905_v48 = vadd.f32 %v2904_v12, %v2839_v6 }
 0x4f3   : > { %v6721_v25 = vpop.f32.mrf.mxu0 }
 0x4f7   : > { %4748 = vmatmul.msk.f32.gmra.mxu3 %vm815_vm1, %v4732_v35  ;;  %v2907_v33 = vpop.f32.mrf.mxu2 }
 0x4f9   : > { %v2842_v50 = vpop.f32.mrf.mxu1 }
 0x4fa   : > { %v6575_v21 = vpop.f32.mrf.mxu3  ;;  %v2908_v1 = vadd.f32 %v2907_v33, %v2842_v50 }
 0x4fb   : > { %v6724_v11 = vpop.f32.mrf.mxu0 }
 0x4ff   : > { %4749 = vmatmul.msk.f32.gmra.mxu3 %vm815_vm1, %v4733_v20  ;;  %v2910_v5 = vpop.f32.mrf.mxu2 }
 0x501   : > { %v2845_v39 = vpop.f32.mrf.mxu1 }
 0x502   : > { %v6588_v9 = vpop.f32.mrf.mxu3  ;;  %v2911_v4 = vadd.f32 %v2910_v5, %v2845_v39 }
 0x503   : > { %v6727_v0 = vpop.f32.mrf.mxu0 }
 0x507   : > { %4750 = vmatmul.msk.f32.gmra.mxu3 %vm815_vm1, %v4734_v10  ;;  %v2913_v55 = vpop.f32.mrf.mxu2 }
 0x509   : > { %v2848_v54 = vpop.f32.mrf.mxu1 }
 0x50a   : > { %v6601_v32 = vpop.f32.mrf.mxu3  ;;  %v2914_v16 = vadd.f32 %v2913_v55, %v2848_v54 }
 0x50b   : > { %v6730_v50 = vpop.f32.mrf.mxu0 }
 0x50f   : > { %4751 = vmatmul.msk.f32.gmra.mxu3 %vm815_vm1, %v4735_v14 }
 0x511   : > { %v2916_v42 = vpop.f32.mrf.mxu2  ;;  %v2851_v15 = vpop.f32.mrf.mxu1 }
 0x512   : > { %v6614_v44 = vpop.f32.mrf.mxu3  ;;  %v2917_v19 = vadd.f32 %v2916_v42, %v2851_v15 }
 0x513   : > { %v6734_v54 = vpop.f32.mrf.mxu0 }
 0x517   : > { %4752 = vmatmul.msk.f32.gmra.mxu3 %vm815_vm1, %v4736_v62 }
 0x519   : > { %v2919_v20 = vpop.f32.mrf.mxu2  ;;  %v2854_v7 = vpop.f32.mrf.mxu1 }
 0x51a   : > { %v6627_v61 = vpop.f32.mrf.mxu3  ;;  %v2920_v30 = vadd.f32 %v2919_v20, %v2854_v7 }
 0x51f   : > { %4753 = vmatmul.msk.f32.gmra.mxu3 %vm815_vm1, %v4737_v28 }
 0x521   : > { %v2922_v14 = vpop.f32.mrf.mxu2  ;;  %v2857_v59 = vpop.f32.mrf.mxu1 }
 0x522   : > { %v6652_v18 = vpop.f32.mrf.mxu3  ;;  %v2923_v6 = vadd.f32 %v2922_v14, %v2857_v59 }
 0x527   : > { %4754 = vmatmul.msk.f32.gmra.mxu3 %vm815_vm1, %v4738_v52 }
 0x529   : > { %v2925_v63 = vpop.f32.mrf.mxu2  ;;  %v2860_v52 = vpop.f32.mrf.mxu1 }
 0x52a   : > { %v6669_v47 = vpop.f32.mrf.mxu3 }
 0x52f   : > { %4755 = vmatmul.msk.f32.gmra.mxu3 %vm815_vm1, %v4739_v40 }
 0x531   : > { %v2863_v12 = vpop.f32.mrf.mxu1 }
 0x532   : > { %v6680_v17 = vpop.f32.mrf.mxu3 }
 0x537   : > { %4756 = vmatmul.msk.f32.gmra.mxu3 %vm815_vm1, %v4740_v13  ;;  %v2928_v13 = vpop.f32.mrf.mxu2 }
 0x539   : > { %v2866_v39 = vpop.f32.mrf.mxu1 }
 0x53a   : > { %v6696_v8 = vpop.f32.mrf.mxu3 }
 0x53f   : > { %4757 = vmatmul.msk.f32.gmra.mxu3 %vm815_vm1, %v4741_v23  ;;  %v2931_v5 = vpop.f32.mrf.mxu2 }
 0x541   : > { %v2869_v42 = vpop.f32.mrf.mxu1 }
 0x547   : > { %4758 = vmatmul.msk.f32.gmra.mxu3 %vm815_vm1, %v4742_v3  ;;  %v2926_v3 = vadd.f32 %v2925_v63, %v2860_v52 }
 0x549   : > { %v2872_v7 = vpop.f32.mrf.mxu1 }
 0x54a   : > { %v6704_v56 = vpop.f32.mrf.mxu3 }
 0x54f   : > { %4759 = vmatmul.msk.f32.gmra.mxu3 %vm815_vm1, %v4743_v37 }
 0x551   : > { %v2875_v59 = vpop.f32.mrf.mxu1 }
 0x552   : > { %v6712_v49 = vpop.f32.mrf.mxu3 }
 0x55a   : > { %v3034_v31 = vpop.f32.mrf.mxu3 }
 0x55b   : > { %v3082_v43 = vadd.f32 %v3034_v31, %v2905_v48  ;;  %v2929_v48 = vadd.f32 %v2928_v13, %v2863_v12  ;;  %v2934_v31 = vpop.f32.mrf.mxu2 }
 0x55d   : > { %4762 = vmatmul.msk.f32.vlgmr.msrb.gmra.mxu0 %vm2513_vm10, %v3082_v43 }
 0x562   : > { %v3037_v41 = vpop.f32.mrf.mxu3 }
 0x563   : > { %v3083_v35 = vadd.f32 %v3037_v41, %v2908_v1  ;;  %v2932_v1 = vadd.f32 %v2931_v5, %v2866_v39  ;;  %v6737_v41 = vpop.f32.mrf.mxu0  ;;  %v2937_v20 = vpop.f32.mrf.mxu2 }
 0x565   : > { %4763 = vmatmul.msk.f32.gmra.mxu0 %vm2513_vm10, %v3083_v35 }
 0x56a   : > { %v3040_v58 = vpop.f32.mrf.mxu3 }
 0x56b   : > { %v3084_v10 = vadd.f32 %v3040_v58, %v2911_v4  ;;  %v2935_v58 = vadd.f32 %v2934_v31, %v2869_v42 }
 0x56d   : > { %4764 = vmatmul.msk.f32.gmra.mxu0 %vm2513_vm10, %v3084_v10  ;;  %v6740_v10 = vpop.f32.mrf.mxu0 }
 0x572   : > { %v3043_v22 = vpop.f32.mrf.mxu3 }
 0x573   : > { %v3085_v62 = vadd.f32 %v3043_v22, %v2914_v16  ;;  %v2940_v22 = vpop.f32.mrf.mxu2 }
 0x574   : > { %v2941_v63 = vadd.f32 %v2940_v22, %v2875_v59  ;;  %v3319_v59 = vpop.permute.xlu2 %3318 }
 0x575   : > { %4765 = vmatmul.msk.f32.gmra.mxu0 %vm2513_vm10, %v3085_v62  ;;  %v2938_v62 = vadd.f32 %v2937_v20, %v2872_v7 }
 0x57a   : > { %v3046_v28 = vpop.f32.mrf.mxu3 }
 0x57b   : > { %v3086_v34 = vadd.f32 %v3046_v28, %v2917_v19  ;;  %v2943_v52 = vpop.f32.mrf.mxu2 }
 0x57d   : > { %4766 = vmatmul.msk.f32.gmra.mxu0 %vm2513_vm10, %v3086_v34  ;;  %v6743_v34 = vpop.f32.mrf.mxu0 }
 0x582   : > { %v3049_v40 = vpop.f32.mrf.mxu3 }
 0x583   : > { %v3087_v51 = vadd.f32 %v3049_v40, %v2920_v30  ;;  %v2878_v30 = vpop.f32.mrf.mxu1 }
 0x584   : > { %v2944_v12 = vadd.f32 %v2943_v52, %v2878_v30 }
 0x585   : > { %4767 = vmatmul.msk.f32.gmra.mxu0 %vm2513_vm10, %v3087_v51  ;;  %v2731_v13 = vpop.f32.mrf.mxu0 }
 0x58a   : > { %v3052_v23 = vpop.f32.mrf.mxu3 }
 0x58b   : > { %v3088_v33 = vadd.f32 %v3052_v23, %v2923_v6  ;;  %v2946_v6 = vpop.f32.mrf.mxu2 }
 0x58d   : > { %4768 = vmatmul.msk.f32.gmra.mxu0 %vm2513_vm10, %v3088_v33  ;;  %v2881_v33 = vpop.f32.mrf.mxu1  ;;  %v2734_v39 = vpop.f32.mrf.mxu0 }
 0x58e   : > { %v2947_v5 = vadd.f32 %v2946_v6, %v2881_v33  ;;  %v2735_v26 = vadd.f32 %v2734_v39, %v6704_v56 }
 0x592   : > { %v3055_v37 = vpop.f32.mrf.mxu3 }
 0x593   : > { %v3089_v55 = vadd.f32 %v3055_v37, %v2926_v3  ;;  %v2949_v31 = vpop.f32.mrf.mxu2 }
 0x595   : > { %4769 = vmatmul.msk.f32.gmra.mxu0 %vm2513_vm10, %v3089_v55  ;;  %v2737_v42 = vpop.f32.mrf.mxu0 }
 0x59a   : > { %v3058_v43 = vpop.f32.mrf.mxu3 }
 0x59b   : > { %v3090_v15 = vadd.f32 %v3058_v43, %v2929_v48  ;;  %v2884_v48 = vpop.f32.mrf.mxu1 }
 0x59c   : > { %v2950_v43 = vadd.f32 %v2949_v31, %v2884_v48 }
 0x59d   : > { %4770 = vmatmul.msk.f32.gmra.mxu0 %vm2513_vm10, %v3090_v15 }
 0x5a2   : > { %v3061_v35 = vpop.f32.mrf.mxu3 }
 0x5a3   : > { %v3091_v4 = vadd.f32 %v3061_v35, %v2932_v1 }
 0x5a5   : > { %4771 = vmatmul.msk.f32.gmra.mxu0 %vm2513_vm10, %v3091_v4 }
 0x5aa   : > { %v3064_v16 = vpop.f32.mrf.mxu3 }
 0x5ab   : > { %v3092_v14 = vadd.f32 %v3064_v16, %v2935_v58 }
 0x5ad   : > { %4772 = vmatmul.msk.f32.gmra.mxu0 %vm2513_vm10, %v3092_v14  ;;  %v3324_v14 = vpop.permute.xlu1 %3323 }
 0x5b2   : > { %v3067_v19 = vpop.f32.mrf.mxu3 }
 0x5b3   : > { %v3093_v28 = vadd.f32 %v3067_v19, %v2938_v62  ;;  %v3436_v62 = vpop.permute.xlu0 %3435 }
 0x5b5   : > { %4773 = vmatmul.msk.f32.gmra.mxu0 %vm2513_vm10, %v3093_v28  ;;  %v3314_v28 = vpop.permute.xlu1 %3313 }
 0x5ba   : > { %v3070_v40 = vpop.f32.mrf.mxu3 }
 0x5bb   : > { %v3094_v51 = vadd.f32 %v3070_v40, %v2941_v63  ;;  %v3431_v63 = vpop.permute.xlu2 %3430  ;;  %v3309_v30 = vpop.permute.xlu0 %3308 }
 0x5bd   : > { %4774 = vmatmul.msk.f32.gmra.mxu0 %vm2513_vm10, %v3094_v51  ;;  %v3426_v40 = vpop.permute.xlu1 %3425 }
 0x5c2   : > { %v3073_v23 = vpop.f32.mrf.mxu3 }
 0x5c3   : > { %v3095_v3 = vadd.f32 %v3073_v23, %v2944_v12  ;;  %v3304_v51 = vpop.permute.xlu2 %3303  ;;  %v3421_v6 = vpop.permute.xlu0 %3420 }
 0x5c5   : > { %4775 = vmatmul.msk.f32.gmra.mxu0 %vm2513_vm10, %v3095_v3  ;;  %v3299_v23 = vpop.permute.xlu1 %3298 }
 0x5ca   : > { %v3076_v37 = vpop.f32.mrf.mxu3 }
 0x5cb   : > { %v3096_v55 = vadd.f32 %v3076_v37, %v2947_v5  ;;  %v3416_v33 = vpop.permute.xlu2 %3415  ;;  %v3294_v5 = vpop.permute.xlu0 %3293 }
 0x5cd   : > { %4776 = vmatmul.msk.f32.gmra.mxu0 %vm2513_vm10, %v3096_v55  ;;  %v3411_v37 = vpop.permute.xlu1 %3410 }
 0x5d2   : > { %v3079_v15 = vpop.f32.mrf.mxu3 }
 0x5d3   : > { %v3097_v1 = vadd.f32 %v3079_v15, %v2950_v43  ;;  %v3289_v48 = vpop.permute.xlu2 %3288  ;;  %v6764_v31 = vpop.permute.xlu0 %3405 }
 0x5d5   : > { %4777 = vmatmul.msk.f32.gmra.mxu0 %vm2513_vm10, %v3097_v1  ;;  %v6766_v15 = vpop.permute.xlu1 %3283 }
 0x5da   : > { %v6750_v35 = vpop.f32.mrf.mxu0 }
 0x5db   : > { %7201 = vst [vmem:[#allocation10_spill] sm:$0xff] %v6750_v35  ;;  %v6768_v1 = vpop.permute.xlu2 %3400  ;;  %v6770_v29 = vpop.permute.xlu0 %3278 }
 0x5dc   : > { %7206 = vst [vmem:[#allocation15_spill] sm:$0xff] %v6768_v1  ;;  %v2726_v1 = vadd.f32 %v6740_v10, %v6669_v47 }
 0x5dd   : > { %7207 = vst [vmem:[#allocation16_spill] sm:$0xff] %v6770_v29  ;;  %v6772_v35 = vpop.permute.xlu1 %3395 }
 0x5de   : > { %7208 = vst [vmem:[#allocation17_spill] sm:$0xff] %v6772_v35  ;;  %v2738_v35 = vadd.f32 %v2737_v42, %v6712_v49  ;;  %v2717_v49 = vadd.f32 %v6730_v50, %v6614_v44  ;;  %v2711_v44 = vadd.f32 %v6724_v11, %v6588_v9 }
 0x5e2   : > { %v6752_v4 = vpop.f32.mrf.mxu0 }
 0x5e3   : > { %7202 = vst [vmem:[#allocation11_spill] sm:$0xff] %v6752_v4  ;;  %v6774_v4 = vpop.permute.xlu2 %3273  ;;  %v6778_v38 = vpop.permute.xlu0 %3390 }
 0x5e4   : > { %7209 = vst [vmem:[#allocation18_spill] sm:$0xff] %v6774_v4 }
 0x5e5   : > { %v6782_v2 = vpop.permute.xlu1 %3268 }
 0x5ea   : > { %v6754_v20 = vpop.f32.mrf.mxu0 }
 0x5eb   : > { %7203 = vst [vmem:[#allocation12_spill] sm:$0xff] %v6754_v20  ;;  %v2732_v20 = vadd.f32 %v2731_v13, %v6696_v8 }
 0x5f2   : > { %v6756_v7 = vpop.f32.mrf.mxu0 }
 0x5f3   : > { %7204 = vst [vmem:[#allocation13_spill] sm:$0xff] %v6756_v7  ;;  %v2729_v7 = vadd.f32 %v6743_v34, %v6680_v17 }
 0x5fa   : > { %v6758_v58 = vpop.f32.mrf.mxu0 }
 0x5fb   : > { %7205 = vst [vmem:[#allocation14_spill] sm:$0xff] %v6758_v58  ;;  %v6787_v58 = vpop.permute.xlu2 %3385 }
 0x602   : > { %v6760_v16 = vpop.f32.mrf.mxu0 }
 0x60a   : > { %v6762_v22 = vpop.f32.mrf.mxu0 }
 0x612   : > { %v3187_v19 = vpop.f32.mrf.mxu0 }
 0x61a   : > { %v3190_v52 = vpop.f32.mrf.mxu0 }
 0x622   : > { %v3193_v12 = vpop.f32.mrf.mxu0 }
 0x62a   : > { %v3196_v3 = vpop.f32.mrf.mxu0 }
 0x632   : > { %v3199_v55 = vpop.f32.mrf.mxu0 }
 0x633   : > { %v3225_v8 = vadd.f32 %v3199_v55, %v2726_v1  ;;  %v7214_v55 = vld [vmem:[#allocation9_spill] sm:$0xff] }
 0x635   : > { %v3337_v10 = vmul.f32 %v3304_v51, %v3225_v8  ;;  %v2702_v51 = vadd.f32 %v6714_v57, %v6549_v60  ;;  %v7216_v57 = vld [vmem:[#allocation18_spill] sm:$0xff] }
 0x63a   : > { %v3202_v43 = vpop.f32.mrf.mxu0 }
 0x63b   : > { %v3226_v4 = vadd.f32 %v3202_v43, %v2729_v7  ;;  %v6795_v7 = vpop.permute.xlu0 %3263 }
 0x63d   : > { %v3338_v34 = vmul.f32 %v3309_v30, %v3226_v4 }
 0x642   : > { %v3205_v27 = vpop.f32.mrf.mxu0 }
 0x643   : > { %v3227_v53 = vadd.f32 %v3205_v27, %v2732_v20  ;;  %v2720_v27 = vadd.f32 %v6734_v54, %v6627_v61 }
 0x645   : > { %v3339_v56 = vmul.f32 %v3314_v28, %v3227_v53  ;;  %v3222_v53 = vadd.f32 %v3190_v52, %v2717_v49  ;;  %v3259_v28 = vpop.permute.xlu2 %3258  ;;  %v2705_v52 = vadd.f32 %v6717_v24, %v6562_v45  ;;  %v7211_v45 = vld [vmem:[#allocation16_spill] sm:$0xff] }
 0x647   : > { %v3451_v42 = vadd.f32 %v3426_v40, %v3339_v56  ;;  %v7218_v56 = vld [vmem:[#allocation3_spill] sm:$0xff] }
 0x649   : > { %vm3467_vm12 = vcmp.ge.f32.partialorder %v3451_v42, 0.0 }
 0x64a   : > { %v3208_v36 = vpop.f32.mrf.mxu0 }
 0x64b   : > { %v3228_v46 = vadd.f32 %v3208_v36, %v2735_v26  ;;  %v2723_v26 = vadd.f32 %v6737_v41, %v6652_v18  ;;  %v2714_v18 = vadd.f32 %v6727_v0, %v6601_v32  ;;  %v2708_v32 = vadd.f32 %v6721_v25, %v6575_v21 }
 0x64c   : > { %v3220_v0 = vadd.f32 %v6762_v22, %v2711_v44 }
 0x64d   : > { %v3340_v29 = vmul.f32 %v3319_v59, %v3228_v46  ;;  %v3224_v17 = vadd.f32 %v3196_v3, %v2723_v26  ;;  %v3223_v46 = vadd.f32 %v3193_v12, %v2720_v27  ;;  %v3221_v50 = vadd.f32 %v3187_v19, %v2714_v18  ;;  %v7210_v12 = vld [vmem:[#allocation14_spill] sm:$0xff]  ;;  %v7220_v27 = vld [vmem:[#allocation12_spill] sm:$0xff] }
 0x64e   : > { %v3219_v30 = vadd.f32 %v6760_v16, %v2708_v32  ;;  %v3332_v24 = vmul.f32 %v7211_v45, %v3220_v0  ;;  %v7212_v16 = vld [vmem:[#allocation15_spill] sm:$0xff] }
 0x64f   : > { %v3452_v39 = vadd.f32 %v3431_v63, %v3340_v29  ;;  %v3336_v41 = vmul.f32 %v3299_v23, %v3224_v17  ;;  %v6799_v29 = vpop.permute.xlu1 %3380  ;;  %v3335_v4 = vmul.f32 %v3294_v5, %v3223_v46  ;;  %v3334_v63 = vmul.f32 %v3289_v48, %v3222_v53  ;;  %v3376_v5 = vpop.permute.xlu0 %3375  ;;  %v7223_v53 = vld [vmem:[#allocation11_spill] sm:$0xff] }
 0x650   : > { %v3333_v21 = vmul.f32 %v6766_v15, %v3221_v50  ;;  %v3331_v43 = vmul.f32 %v7216_v57, %v3219_v30  ;;  %v7217_v15 = vld [vmem:[#allocation17_spill] sm:$0xff]  ;;  %v4779_v57 = vld [vmem:[%s7171_s19 + $0x88] sm:$0xff] }
 0x651   : > { %v3484_v54 = vmul.f32 0.1, %v3452_v39  ;;  %vm3468_vm11 = vcmp.ge.f32.partialorder %v3452_v39, 0.0  ;;  %v3448_v9 = vadd.f32 %v3411_v37, %v3336_v41  ;;  %v3447_v25 = vadd.f32 %v6764_v31, %v3335_v4  ;;  %v7213_v37 = vld [vmem:[#allocation4_spill] sm:$0xff]  ;;  %v7215_v31 = vld [vmem:[#allocation13_spill] sm:$0xff] }
 0x652   : > { %v3211_v36 = vpop.f32.mrf.mxu0  ;;  %v3446_v23 = vadd.f32 %v7212_v16, %v3334_v63  ;;  %v2699_v48 = vadd.f32 %v7214_v55, %v7213_v37  ;;  %v3217_v60 = vadd.f32 %v7215_v31, %v2702_v51  ;;  %v3445_v1 = vadd.f32 %v7217_v15, %v3333_v21  ;;  %v4778_v37 = vld [vmem:[%s7171_s19 + $0x80] sm:$0xff] }
 0x653   : > { %v3229_v13 = vadd.f32 %v3211_v36, %v2738_v35  ;;  %v3450_v35 = vadd.f32 %v3421_v6, %v3338_v34  ;;  %v6810_v11 = vsel %vm3468_vm11, %v3452_v39, %v3484_v54  ;;  %v3218_v6 = vadd.f32 %v7210_v12, %v2705_v52  ;;  %v7224_v54 = vld [vmem:[#allocation10_spill] sm:$0xff] }
 0x654   : > { %v3480_v3 = vmul.f32 0.1, %v3448_v9  ;;  %vm3464_vm15 = vcmp.ge.f32.partialorder %v3448_v9, 0.0  ;;  %v3479_v36 = vmul.f32 0.1, %v3447_v25  ;;  %v3216_v34 = vadd.f32 %v7220_v27, %v2699_v48  ;;  %v7225_v48 = vld [vmem:[#allocation5_spill] sm:$0xff] }
 0x655   : > { %v3341_v47 = vmul.f32 %v3324_v14, %v3229_v13  ;;  %v3449_v14 = vadd.f32 %v3416_v33, %v3337_v10  ;;  %v3482_v19 = vmul.f32 0.1, %v3450_v35  ;;  %vm3466_vm13 = vcmp.ge.f32.partialorder %v3450_v35, 0.0  ;;  %v7219_v13 = vld [vmem:[#allocation8_spill] sm:$0xff]  ;;  %v3371_v10 = vpop.permute.xlu2 %3370  ;;  %v7226_v31 = vld [vmem:[#allocation6_spill] sm:$0xff] }
 0x656   : > { %v2696_v17 = vadd.f32 %v7219_v13, %v7218_v56  ;;  %vm3463_vm0 = vcmp.ge.f32.partialorder %v3447_v25, 0.0  ;;  %v3330_v39 = vmul.f32 %v6782_v2, %v3218_v6  ;;  %v6846_v49 = vsel %vm3464_vm15, %v3448_v9, %v3480_v3  ;;  %v4782_v15 = vld [vmem:[%s7171_s19 + $0xa0] sm:$0xff]  ;;  %v3509_v56 = vld [vmem:[%s7171_s19 + $0x38] sm:$0xff] }
 0x657   : > { %v3453_v20 = vadd.f32 %v3436_v62, %v3341_v47  ;;  %v3483_v62 = vmul.f32 0.1, %v3451_v42  ;;  %v3481_v40 = vmul.f32 0.1, %v3449_v14  ;;  %vm3465_vm14 = vcmp.ge.f32.partialorder %v3449_v14, 0.0  ;;  %v3254_v8 = vpop.permute.xlu1 %3253  ;;  %v3249_v63 = vpop.permute.xlu0 %3248  ;;  %v4785_v13 = vld [vmem:[%s7171_s19 + $0xb8] sm:$0xff] }
 0x658   : > { %v6828_v33 = vsel %vm3466_vm13, %v3450_v35, %v3482_v19  ;;  %v3444_v47 = vadd.f32 %v6778_v38, %v3332_v24  ;;  %v3478_v46 = vmul.f32 0.1, %v3446_v23  ;;  %v3215_v41 = vadd.f32 %v7223_v53, %v2696_v17  ;;  %v3510_v17 = vld [vmem:[%s7171_s19 + $0x40] sm:$0xff]  ;;  %v4791_v53 = vld [vmem:[%s7171_s19 + $0xe8] sm:$0xff] }
 0x659   : > { %vm3469_vm1 = vcmp.ge.f32.partialorder %v3453_v20, 0.0  ;;  %v3485_v61 = vmul.f32 0.1, %v3453_v20  ;;  %v6819_v22 = vsel %vm3467_vm12, %v3451_v42, %v3483_v62  ;;  %v6837_v26 = vsel %vm3465_vm14, %v3449_v14, %v3481_v40  ;;  %v7221_v42 = vld [vmem:[#allocation2_spill] sm:$0xff] }
 0x65a   : > { %vm3462_vm2 = vcmp.ge.f32.partialorder %v3446_v23, 0.0  ;;  %v3329_v35 = vmul.f32 %v6795_v7, %v3217_v60  ;;  %v3443_v2 = vadd.f32 %v6787_v58, %v3331_v43  ;;  %v3477_v38 = vmul.f32 0.1, %v3445_v1  ;;  %v3503_v60 = vld [vmem:[%s7171_s19 + $0x8] sm:$0xff]  ;;  %v3506_v43 = vld [vmem:[%s7171_s19 + $0x20] sm:$0xff] }
 0x65b   : > { %v6803_v59 = vsel %vm3469_vm1, %v3453_v20, %v3485_v61  ;;  %v7222_v20 = vld [vmem:[#allocation7_spill] sm:$0xff]  ;;  %v6855_v61 = vsel %vm3463_vm0, %v3447_v25, %v3479_v36  ;;  %vm3461_vm3 = vcmp.ge.f32.partialorder %v3445_v1, 0.0  ;;  %v3328_v50 = vmul.f32 %v3259_v28, %v3216_v34  ;;  %v3508_v36 = vld [vmem:[%s7171_s19 + $0x30] sm:$0xff]  ;;  %v4786_v27 = vld [vmem:[%s7171_s19 + $0xc0] sm:$0xff] }
 0x65c   : > { %3518 = vmatpush.msra.mxu1 %v6803_v59  ;;  %3600 = vmatpush.msra.mxu2 %v6803_v59  ;;  %v2693_v18 = vadd.f32 %v7222_v20, %v7221_v42  ;;  %v3442_v4 = vadd.f32 %v6799_v29, %v3330_v39  ;;  %v6861_v14 = vsel %vm3462_vm2, %v3446_v23, %v3478_v46  ;;  %v3476_v62 = vmul.f32 0.1, %v3444_v47  ;;  %v3511_v34 = vld [vmem:[%s7171_s19 + $0x48] sm:$0xff]  ;;  %v3513_v46 = vld [vmem:[%s7171_s19 + $0x58] sm:$0xff]  ;;  %v3514_v42 = vld [vmem:[%s7171_s19 + $0x60] sm:$0xff] }
 0x65d   : > { %vm3460_vm4 = vcmp.ge.f32.partialorder %v3444_v47, 0.0  ;;  %v3327_v58 = vmul.f32 %v3254_v8, %v3215_v41  ;;  %v3441_v7 = vadd.f32 %v3376_v5, %v3329_v35  ;;  %v6865_v32 = vsel %vm3461_vm3, %v3445_v1, %v3477_v38  ;;  %v3361_v40 = vpop.permute.xlu2 %3360  ;;  %v3502_v5 = vld [vmem:[%s7171_s19] sm:$0xff]  ;;  %v3507_v1 = vld [vmem:[%s7171_s19 + $0x28] sm:$0xff]  ;;  %v4784_v8 = vld [vmem:[%s7171_s19 + $0xb0] sm:$0xff] }
 0x65e   : > { %3519 = vmatpush.msra.mxu1 %v6810_v11  ;;  %3601 = vmatpush.msra.mxu2 %v6810_v11  ;;  %v3214_v44 = vadd.f32 %v7224_v54, %v2693_v18  ;;  %v3475_v0 = vmul.f32 0.1, %v3443_v2  ;;  %vm3459_vm5 = vcmp.ge.f32.partialorder %v3443_v2, 0.0  ;;  %v3440_v28 = vadd.f32 %v3371_v10, %v3328_v50  ;;  %v4787_v39 = vld [vmem:[%s7171_s19 + $0xc8] sm:$0xff]  ;;  %v4789_v10 = vld [vmem:[%s7171_s19 + $0xd8] sm:$0xff]  ;;  %v4790_v20 = vld [vmem:[%s7171_s19 + $0xe0] sm:$0xff] }
 0x65f   : > { %v3492_v9 = vsel %vm3460_vm4, %v3444_v47, %v3476_v62  ;;  %v3474_v19 = vmul.f32 0.1, %v3442_v4  ;;  %v3366_v52 = vpop.permute.xlu1 %3365  ;;  %vm3458_vm6 = vcmp.ge.f32.partialorder %v3442_v4, 0.0  ;;  %v3473_v25 = vmul.f32 0.1, %v3441_v7  ;;  %v3512_v47 = vld [vmem:[%s7171_s19 + $0x50] sm:$0xff] }
 0x660   : > { %3520 = vmatpush.msra.mxu1 %v6819_v22  ;;  %3602 = vmatpush.msra.mxu2 %v6819_v22  ;;  %v3326_v29 = vmul.f32 %v3249_v63, %v3214_v44  ;;  %v3439_v30 = vadd.f32 %v3366_v52, %v3327_v58  ;;  %v3491_v21 = vsel %vm3459_vm5, %v3443_v2, %v3475_v0  ;;  %vm3457_vm7 = vcmp.ge.f32.partialorder %v3441_v7, 0.0  ;;  %v3515_v18 = vld [vmem:[%s7171_s19 + $0x68] sm:$0xff]  ;;  %v3516_v41 = vld [vmem:[%s7171_s19 + $0x70] sm:$0xff]  ;;  %v3517_v2 = vld [vmem:[%s7171_s19 + $0x78] sm:$0xff] }
 0x661   : > { %v3490_v12 = vsel %vm3458_vm6, %v3442_v4, %v3474_v19  ;;  %v3472_v6 = vmul.f32 0.1, %v3440_v28  ;;  %vm3456_vm8 = vcmp.ge.f32.partialorder %v3440_v28, 0.0  ;;  %v3489_v45 = vsel %vm3457_vm7, %v3441_v7, %v3473_v25  ;;  %v4792_v35 = vld [vmem:[%s7171_s19 + $0xf0] sm:$0xff]  ;;  %v4826_v54 = vld [vmem:[%s7171_s19 + $0x100] sm:$0xff]  ;;  %v4827_v4 = vld [vmem:[%s7171_s19 + $0x108] sm:$0xff] }
 0x662   : > { %3521 = vmatpush.msra.mxu1 %v6828_v33  ;;  %3603 = vmatpush.msra.mxu2 %v6828_v33  ;;  %v3438_v51 = vadd.f32 %v3361_v40, %v3326_v29  ;;  %v3471_v24 = vmul.f32 0.1, %v3439_v30  ;;  %vm3455_vm9 = vcmp.ge.f32.partialorder %v3439_v30, 0.0  ;;  %v4828_v58 = vld [vmem:[%s7171_s19 + $0x110] sm:$0xff]  ;;  %v4829_v0 = vld [vmem:[%s7171_s19 + $0x118] sm:$0xff]  ;;  %v4831_v52 = vld [vmem:[%s7171_s19 + $0x128] sm:$0xff] }
 0x663   : > { %v3488_v16 = vsel %vm3456_vm8, %v3440_v28, %v3472_v6  ;;  %v4830_v28 = vld [vmem:[%s7171_s19 + $0x120] sm:$0xff]  ;;  %v4832_v25 = vld [vmem:[%s7171_s19 + $0x130] sm:$0xff] }
 0x664   : > { %3522 = vmatpush.msra.mxu1 %v6837_v26  ;;  %3604 = vmatpush.msra.mxu2 %v6837_v26  ;;  %v3470_v23 = vmul.f32 0.1, %v3438_v51  ;;  %vm3454_vm1 = vcmp.ge.f32.partialorder %v3438_v51, 0.0  ;;  %v3487_v3 = vsel %vm3455_vm9, %v3439_v30, %v3471_v24  ;;  %v4834_v24 = vld [vmem:[%s7171_s19 + $0x140] sm:$0xff] }
 0x666   : > { %3523 = vmatpush.msra.mxu1 %v6846_v49  ;;  %3605 = vmatpush.msra.mxu2 %v6846_v49  ;;  %v3486_v55 = vsel %vm3454_vm1, %v3438_v51, %v3470_v23 }
 0x668   : > { %3524 = vmatpush.msra.mxu1 %v6855_v61  ;;  %3606 = vmatpush.msra.mxu2 %v6855_v61 }
 0x66a   : > { %3525 = vmatpush.msra.mxu1 %v6861_v14  ;;  %3607 = vmatpush.msra.mxu2 %v6861_v14 }
 0x66c   : > { %3526 = vmatpush.msra.mxu1 %v6865_v32  ;;  %3608 = vmatpush.msra.mxu2 %v6865_v32 }
 0x66e   : > { %3527 = vmatpush.msra.mxu1 %v3492_v9  ;;  %3609 = vmatpush.msra.mxu2 %v3492_v9 }
 0x670   : > { %3528 = vmatpush.msra.mxu1 %v3491_v21  ;;  %3610 = vmatpush.msra.mxu2 %v3491_v21 }
 0x672   : > { %3529 = vmatpush.msra.mxu1 %v3490_v12  ;;  %3611 = vmatpush.msra.mxu2 %v3490_v12 }
 0x674   : > { %3530 = vmatpush.msra.mxu1 %v3489_v45  ;;  %3612 = vmatpush.msra.mxu2 %v3489_v45 }
 0x676   : > { %3531 = vmatpush.msra.mxu1 %v3488_v16  ;;  %3613 = vmatpush.msra.mxu2 %v3488_v16 }
 0x678   : > { %3532 = vmatpush.msra.mxu1 %v3487_v3  ;;  %3614 = vmatpush.msra.mxu2 %v3487_v3 }
 0x67a   : > { %3533 = vmatpush.msra.mxu1 %v3486_v55  ;;  %3615 = vmatpush.msra.mxu2 %v3486_v55 }
 0x67b   : > { %3534 = vmatmul.f32.vlgmr.msra.gmra.mxu1 %v3502_v5  ;;  %3616 = vmatmul.f32.vlgmr.msra.gmra.mxu2 %v4778_v37 }
 0x67c   : > { %3908 = vmatpush.msrb.mxu1 %v6803_v59  ;;  %4035 = vmatpush.msrb.mxu2 %v7225_v48  ;;  %v3504_v59 = vld [vmem:[%s7171_s19 + $0x10] sm:$0xff] }
 0x67e   : > { %3909 = vmatpush.msrb.mxu1 %v6810_v11  ;;  %4036 = vmatpush.msrb.mxu2 %v7226_v31  ;;  %v4780_v11 = vld [vmem:[%s7171_s19 + $0x90] sm:$0xff] }
 0x680   : > { %3910 = vmatpush.msrb.mxu1 %v6819_v22  ;;  %v3505_v22 = vld [vmem:[%s7171_s19 + $0x18] sm:$0xff] }
 0x682   : > { %3911 = vmatpush.msrb.mxu1 %v6828_v33  ;;  %v4781_v33 = vld [vmem:[%s7171_s19 + $0x98] sm:$0xff] }
 0x683   : > { %3537 = vmatmul.f32.gmra.mxu1 %v3503_v60  ;;  %3619 = vmatmul.f32.gmra.mxu2 %v4779_v57  ;;  %v4837_v60 = vld [vmem:[%s7171_s19 + $0x158] sm:$0xff] }
 0x684   : > { %3912 = vmatpush.msrb.mxu1 %v6837_v26  ;;  %v4783_v26 = vld [vmem:[%s7171_s19 + $0xa8] sm:$0xff] }
 0x686   : > { %3913 = vmatpush.msrb.mxu1 %v6846_v49  ;;  %v4788_v49 = vld [vmem:[%s7171_s19 + $0xd0] sm:$0xff] }
 0x688   : > { %3914 = vmatpush.msrb.mxu1 %v6855_v61  ;;  %v4793_v61 = vld [vmem:[%s7171_s19 + $0xf8] sm:$0xff] }
 0x68a   : > { %3915 = vmatpush.msrb.mxu1 %v6861_v14 }
 0x68b   : > { %3540 = vmatmul.f32.gmra.mxu1 %v3504_v59  ;;  %3622 = vmatmul.f32.gmra.mxu2 %v4780_v11  ;;  %v4838_v11 = vld [vmem:[%s7171_s19 + $0x160] sm:$0xff] }
 0x68c   : > { %3916 = vmatpush.msrb.mxu1 %v6865_v32 }
 0x68e   : > { %3917 = vmatpush.msrb.mxu1 %v3492_v9 }
 0x690   : > { %3918 = vmatpush.msrb.mxu1 %v3491_v21 }
 0x692   : > { %3919 = vmatpush.msrb.mxu1 %v3490_v12  ;;  %v4833_v12 = vld [vmem:[%s7171_s19 + $0x138] sm:$0xff] }
 0x693   : > { %3543 = vmatmul.f32.gmra.mxu1 %v3505_v22  ;;  %3625 = vmatmul.f32.gmra.mxu2 %v4781_v33 }
 0x694   : > { %3920 = vmatpush.msrb.mxu1 %v3489_v45 }
 0x696   : > { %3921 = vmatpush.msrb.mxu1 %v3488_v16 }
 0x698   : > { %3922 = vmatpush.msrb.mxu1 %v3487_v3  ;;  %v4835_v3 = vld [vmem:[%s7171_s19 + $0x148] sm:$0xff] }
 0x69a   : > { %3923 = vmatpush.msrb.mxu1 %v3486_v55  ;;  %v4836_v55 = vld [vmem:[%s7171_s19 + $0x150] sm:$0xff] }
 0x69b   : > { %3546 = vmatmul.f32.gmra.mxu1 %v3506_v43  ;;  %3628 = vmatmul.f32.gmra.mxu2 %v4782_v15  ;;  %v4839_v43 = vld [vmem:[%s7171_s19 + $0x168] sm:$0xff] }
 0x6a3   : > { %3549 = vmatmul.f32.gmra.mxu1 %v3507_v1  ;;  %3631 = vmatmul.f32.gmra.mxu2 %v4783_v26  ;;  %v4840_v26 = vld [vmem:[%s7171_s19 + $0x170] sm:$0xff] }
 0x6ab   : > { %3552 = vmatmul.f32.gmra.mxu1 %v3508_v36  ;;  %3634 = vmatmul.f32.gmra.mxu2 %v4784_v8 }
 0x6b3   : > { %3555 = vmatmul.f32.gmra.mxu1 %v3509_v56  ;;  %3637 = vmatmul.f32.gmra.mxu2 %v4785_v13  ;;  %v4841_v56 = vld [vmem:[%s7171_s19 + $0x178] sm:$0xff] }
 0x6bb   : > { %3558 = vmatmul.f32.gmra.mxu1 %v3510_v17  ;;  %3640 = vmatmul.f32.gmra.mxu2 %v4786_v27 }
 0x6c3   : > { %3561 = vmatmul.f32.gmra.mxu1 %v3511_v34  ;;  %3643 = vmatmul.f32.gmra.mxu2 %v4787_v39 }
 0x6cb   : > { %3564 = vmatmul.f32.gmra.mxu1 %v3512_v47  ;;  %3646 = vmatmul.f32.gmra.mxu2 %v4788_v49 }
 0x6d3   : > { %3567 = vmatmul.f32.gmra.mxu1 %v3513_v46  ;;  %3649 = vmatmul.f32.gmra.mxu2 %v4789_v10 }
 0x6db   : > { %3570 = vmatmul.f32.gmra.mxu1 %v3514_v42  ;;  %3652 = vmatmul.f32.gmra.mxu2 %v4790_v20 }
 0x6e3   : > { %3573 = vmatmul.f32.gmra.mxu1 %v3515_v18  ;;  %3655 = vmatmul.f32.gmra.mxu2 %v4791_v53  ;;  %v4126_v53 = vpop.permute.xlu1 %4125 }
 0x6eb   : > { %3576 = vmatmul.f32.gmra.mxu1 %v3516_v41  ;;  %3658 = vmatmul.f32.gmra.mxu2 %v4792_v35  ;;  %v4121_v35 = vpop.permute.xlu0 %4120 }
 0x6f3   : > { %3579 = vmatmul.f32.gmra.mxu1 %v3517_v2  ;;  %3661 = vmatmul.f32.gmra.mxu2 %v4793_v61  ;;  %v4131_v2 = vpop.permute.xlu2 %4130  ;;  %v7068_v61 = vpop.permute.xlu1 %4140 }
 0x6f8   : > { %v3535_v38 = vpop.f32.mrf.mxu1 }
 0x6f9   : > { %4810 = vmatmul.msk.f32.vlgmr.msra.gmra.mxu0 %vm2513_vm10, %v3535_v38 }
 0x6fb   : > { %3924 = vmatmul.f32.vlgmr.msrb.gmra.mxu1 %v4826_v54 }
 0x6fe   : > { %v3617_v44 = vpop.f32.mrf.mxu2 }
 0x6ff   : > { %4794 = vmatmul.msk.f32.vlgmr.msra.gmra.mxu3 %vm2513_vm10, %v3617_v44 }
 0x700   : > { %v3538_v50 = vpop.f32.mrf.mxu1 }
 0x701   : > { %4811 = vmatmul.msk.f32.gmra.mxu0 %vm2513_vm10, %v3538_v50  ;;  %v7071_v50 = vpop.permute.xlu0 %4135 }
 0x703   : > { %3927 = vmatmul.f32.gmra.mxu1 %v4827_v4  ;;  %v7073_v4 = vpop.permute.xlu2 %4145 }
 0x706   : > { %v3620_v14 = vpop.f32.mrf.mxu2 }
 0x707   : > { %4795 = vmatmul.msk.f32.gmra.mxu3 %vm2513_vm10, %v3620_v14 }
 0x708   : > { %v3541_v62 = vpop.f32.mrf.mxu1 }
 0x709   : > { %4812 = vmatmul.msk.f32.gmra.mxu0 %vm2513_vm10, %v3541_v62  ;;  %v7076_v62 = vpop.permute.xlu1 %4155 }
 0x70b   : > { %3930 = vmatmul.f32.gmra.mxu1 %v4828_v58 }
 0x70e   : > { %v3623_v7 = vpop.f32.mrf.mxu2 }
 0x70f   : > { %4796 = vmatmul.msk.f32.gmra.mxu3 %vm2513_vm10, %v3623_v7 }
 0x710   : > { %v3544_v32 = vpop.f32.mrf.mxu1 }
 0x711   : > { %4813 = vmatmul.msk.f32.gmra.mxu0 %vm2513_vm10, %v3544_v32  ;;  %v7078_v32 = vpop.permute.xlu0 %4150 }
 0x713   : > { %3933 = vmatmul.f32.gmra.mxu1 %v4829_v0 }
 0x716   : > { %v3626_v63 = vpop.f32.mrf.mxu2 }
 0x717   : > { %4797 = vmatmul.msk.f32.gmra.mxu3 %vm2513_vm10, %v3626_v63  ;;  %v7081_v63 = vpop.permute.xlu2 %4160 }
 0x718   : > { %v3547_v29 = vpop.f32.mrf.mxu1 }
 0x719   : > { %4814 = vmatmul.msk.f32.gmra.mxu0 %vm2513_vm10, %v3547_v29  ;;  %v7083_v29 = vpop.permute.xlu1 %4170 }
 0x71b   : > { %3936 = vmatmul.f32.gmra.mxu1 %v4830_v28 }
 0x71e   : > { %v3629_v9 = vpop.f32.mrf.mxu2 }
 0x71f   : > { %4798 = vmatmul.msk.f32.gmra.mxu3 %vm2513_vm10, %v3629_v9 }
 0x720   : > { %v3550_v19 = vpop.f32.mrf.mxu1 }
 0x721   : > { %4815 = vmatmul.msk.f32.gmra.mxu0 %vm2513_vm10, %v3550_v19 }
 0x723   : > { %3939 = vmatmul.f32.gmra.mxu1 %v4831_v52  ;;  %v7086_v52 = vpop.permute.xlu0 %4165 }
 0x726   : > { %v3632_v30 = vpop.f32.mrf.mxu2 }
 0x727   : > { %4799 = vmatmul.msk.f32.gmra.mxu3 %vm2513_vm10, %v3632_v30  ;;  %v7088_v30 = vpop.permute.xlu2 %4175 }
 0x728   : > { %v3553_v21 = vpop.f32.mrf.mxu1 }
 0x729   : > { %4816 = vmatmul.msk.f32.gmra.mxu0 %vm2513_vm10, %v3553_v21  ;;  %v7090_v21 = vpop.permute.xlu1 %4185 }
 0x72b   : > { %3942 = vmatmul.f32.gmra.mxu1 %v4832_v25 }
 0x72e   : > { %v3635_v40 = vpop.f32.mrf.mxu2 }
 0x72f   : > { %4800 = vmatmul.msk.f32.gmra.mxu3 %vm2513_vm10, %v3635_v40 }
 0x730   : > { %v3556_v51 = vpop.f32.mrf.mxu1 }
 0x731   : > { %4817 = vmatmul.msk.f32.gmra.mxu0 %vm2513_vm10, %v3556_v51 }
 0x733   : > { %3945 = vmatmul.f32.gmra.mxu1 %v4833_v12  ;;  %v7092_v12 = vpop.permute.xlu0 %4180 }
 0x736   : > { %v3638_v6 = vpop.f32.mrf.mxu2 }
 0x737   : > { %4801 = vmatmul.msk.f32.gmra.mxu3 %vm2513_vm10, %v3638_v6 }
 0x738   : > { %v3559_v45 = vpop.f32.mrf.mxu1 }
 0x739   : > { %4818 = vmatmul.msk.f32.gmra.mxu0 %vm2513_vm10, %v3559_v45 }
 0x73b   : > { %3948 = vmatmul.f32.gmra.mxu1 %v4834_v24  ;;  %v7094_v24 = vpop.permute.xlu2 %4190 }
 0x73e   : > { %v3641_v16 = vpop.f32.mrf.mxu2 }
 0x73f   : > { %4802 = vmatmul.msk.f32.gmra.mxu3 %vm2513_vm10, %v3641_v16 }
 0x740   : > { %v3562_v23 = vpop.f32.mrf.mxu1 }
 0x741   : > { %4819 = vmatmul.msk.f32.gmra.mxu0 %vm2513_vm10, %v3562_v23  ;;  %v4233_v23 = vpop.permute.xlu1 %4232 }
 0x743   : > { %3951 = vmatmul.f32.gmra.mxu1 %v4835_v3 }
 0x746   : > { %v3644_v5 = vpop.f32.mrf.mxu2 }
 0x747   : > { %4803 = vmatmul.msk.f32.gmra.mxu3 %vm2513_vm10, %v3644_v5 }
 0x748   : > { %v3565_v37 = vpop.f32.mrf.mxu1 }
 0x749   : > { %4820 = vmatmul.msk.f32.gmra.mxu0 %vm2513_vm10, %v3565_v37 }
 0x74b   : > { %3954 = vmatmul.f32.gmra.mxu1 %v4836_v55 }
 0x74e   : > { %v3647_v48 = vpop.f32.mrf.mxu2 }
 0x74f   : > { %4804 = vmatmul.msk.f32.gmra.mxu3 %vm2513_vm10, %v3647_v48 }
 0x750   : > { %v3568_v31 = vpop.f32.mrf.mxu1 }
 0x751   : > { %4821 = vmatmul.msk.f32.gmra.mxu0 %vm2513_vm10, %v3568_v31 }
 0x753   : > { %3957 = vmatmul.f32.gmra.mxu1 %v4837_v60 }
 0x756   : > { %v3650_v57 = vpop.f32.mrf.mxu2 }
 0x757   : > { %4805 = vmatmul.msk.f32.gmra.mxu3 %vm2513_vm10, %v3650_v57 }
 0x758   : > { %v3571_v59 = vpop.f32.mrf.mxu1 }
 0x759   : > { %4822 = vmatmul.msk.f32.gmra.mxu0 %vm2513_vm10, %v3571_v59  ;;  %v7102_v59 = vpop.permute.xlu0 %4195 }
 0x75b   : > { %3960 = vmatmul.f32.gmra.mxu1 %v4838_v11 }
 0x75e   : > { %v3653_v22 = vpop.f32.mrf.mxu2 }
 0x75f   : > { %4806 = vmatmul.msk.f32.gmra.mxu3 %vm2513_vm10, %v3653_v22  ;;  %v4238_v22 = vpop.permute.xlu2 %4237 }
 0x760   : > { %v3574_v33 = vpop.f32.mrf.mxu1 }
 0x761   : > { %4823 = vmatmul.msk.f32.gmra.mxu0 %vm2513_vm10, %v3574_v33 }
 0x763   : > { %3963 = vmatmul.f32.gmra.mxu1 %v4839_v43 }
 0x766   : > { %v3656_v15 = vpop.f32.mrf.mxu2 }
 0x767   : > { %4807 = vmatmul.msk.f32.gmra.mxu3 %vm2513_vm10, %v3656_v15 }
 0x768   : > { %v3577_v1 = vpop.f32.mrf.mxu1 }
 0x769   : > { %4824 = vmatmul.msk.f32.gmra.mxu0 %vm2513_vm10, %v3577_v1 }
 0x76b   : > { %3966 = vmatmul.f32.gmra.mxu1 %v4840_v26 }
 0x76e   : > { %v3659_v36 = vpop.f32.mrf.mxu2 }
 0x76f   : > { %4808 = vmatmul.msk.f32.gmra.mxu3 %vm2513_vm10, %v3659_v36 }
 0x770   : > { %v3580_v8 = vpop.f32.mrf.mxu1 }
 0x771   : > { %4825 = vmatmul.msk.f32.gmra.mxu0 %vm2513_vm10, %v3580_v8 }
 0x773   : > { %3969 = vmatmul.f32.gmra.mxu1 %v4841_v56 }
 0x776   : > { %v3662_v13 = vpop.f32.mrf.mxu2  ;;  %v3843_v44 = vpop.f32.mrf.mxu0 }
 0x777   : > { %4809 = vmatmul.msk.f32.gmra.mxu3 %vm2513_vm10, %v3662_v13 }
 0x778   : > { %v3925_v17 = vpop.f32.mrf.mxu1 }
 0x779   : > { %4842 = vmatmul.msk.f32.vlgmr.msrb.gmra.mxu2 %vm2513_vm10, %v3925_v17  ;;  %v4243_v17 = vpop.permute.xlu0 %4242 }
 0x77e   : > { %v3846_v7 = vpop.f32.mrf.mxu0 }
 0x780   : > { %v3928_v27 = vpop.f32.mrf.mxu1 }
 0x781   : > { %4843 = vmatmul.msk.f32.gmra.mxu2 %vm2513_vm10, %v3928_v27 }
 0x782   : > { %v3730_v54 = vpop.f32.mrf.mxu3 }
 0x783   : > { %v3844_v51 = vadd.f32 %v3843_v44, %v3730_v54 }
 0x786   : > { %v3849_v9 = vpop.f32.mrf.mxu0 }
 0x788   : > { %v3931_v34 = vpop.f32.mrf.mxu1 }
 0x789   : > { %4844 = vmatmul.msk.f32.gmra.mxu2 %vm2513_vm10, %v3931_v34 }
 0x78a   : > { %v3733_v58 = vpop.f32.mrf.mxu3 }
 0x78b   : > { %v3847_v37 = vadd.f32 %v3846_v7, %v3733_v58 }
 0x78e   : > { %v3852_v40 = vpop.f32.mrf.mxu0 }
 0x790   : > { %v3934_v39 = vpop.f32.mrf.mxu1 }
 0x791   : > { %4845 = vmatmul.msk.f32.gmra.mxu2 %vm2513_vm10, %v3934_v39 }
 0x792   : > { %v3736_v28 = vpop.f32.mrf.mxu3 }
 0x793   : > { %v3850_v43 = vadd.f32 %v3849_v9, %v3736_v28 }
 0x796   : > { %v3855_v48 = vpop.f32.mrf.mxu0 }
 0x798   : > { %v3937_v47 = vpop.f32.mrf.mxu1 }
 0x799   : > { %4846 = vmatmul.msk.f32.gmra.mxu2 %vm2513_vm10, %v3937_v47 }
 0x79a   : > { %v3739_v25 = vpop.f32.mrf.mxu3 }
 0x79b   : > { %v3853_v34 = vadd.f32 %v3852_v40, %v3739_v25 }
 0x79e   : > { %v3858_v56 = vpop.f32.mrf.mxu0 }
 0x7a0   : > { %v3940_v49 = vpop.f32.mrf.mxu1 }
 0x7a1   : > { %4847 = vmatmul.msk.f32.gmra.mxu2 %vm2513_vm10, %v3940_v49 }
 0x7a2   : > { %v3742_v5 = vpop.f32.mrf.mxu3 }
 0x7a8   : > { %v3943_v46 = vpop.f32.mrf.mxu1 }
 0x7a9   : > { %4848 = vmatmul.msk.f32.gmra.mxu2 %vm2513_vm10, %v3943_v46 }
 0x7aa   : > { %v3745_v1 = vpop.f32.mrf.mxu3 }
 0x7ab   : > { %v3859_v28 = vadd.f32 %v3858_v56, %v3745_v1 }
 0x7b0   : > { %v3946_v10 = vpop.f32.mrf.mxu1 }
 0x7b1   : > { %4849 = vmatmul.msk.f32.gmra.mxu2 %vm2513_vm10, %v3946_v10 }
 0x7b2   : > { %v3748_v10 = vpop.f32.mrf.mxu3 }
 0x7b8   : > { %v3949_v42 = vpop.f32.mrf.mxu1 }
 0x7b9   : > { %4850 = vmatmul.msk.f32.gmra.mxu2 %vm2513_vm10, %v3949_v42 }
 0x7ba   : > { %v3751_v58 = vpop.f32.mrf.mxu3 }
 0x7c0   : > { %v3952_v20 = vpop.f32.mrf.mxu1 }
 0x7c1   : > { %4851 = vmatmul.msk.f32.gmra.mxu2 %vm2513_vm10, %v3952_v20  ;;  %v4248_v20 = vpop.permute.xlu1 %4247 }
 0x7c8   : > { %v3955_v18 = vpop.f32.mrf.mxu1 }
 0x7c9   : > { %4852 = vmatmul.msk.f32.gmra.mxu2 %vm2513_vm10, %v3955_v18  ;;  %v3861_v18 = vpop.f32.mrf.mxu0 }
 0x7d0   : > { %v3958_v41 = vpop.f32.mrf.mxu1 }
 0x7d1   : > { %4853 = vmatmul.msk.f32.gmra.mxu2 %vm2513_vm10, %v3958_v41  ;;  %v3856_v41 = vadd.f32 %v3855_v48, %v3742_v5  ;;  %v4263_v48 = vpop.permute.xlu1 %4262 }
 0x7d8   : > { %v3961_v38 = vpop.f32.mrf.mxu1 }
 0x7d9   : > { %4854 = vmatmul.msk.f32.gmra.mxu2 %vm2513_vm10, %v3961_v38 }
 0x7e0   : > { %v3964_v14 = vpop.f32.mrf.mxu1 }
 0x7e1   : > { %4855 = vmatmul.msk.f32.gmra.mxu2 %vm2513_vm10, %v3964_v14  ;;  %v4253_v14 = vpop.permute.xlu2 %4252 }
 0x7e8   : > { %v3967_v0 = vpop.f32.mrf.mxu1 }
 0x7e9   : > { %4856 = vmatmul.msk.f32.gmra.mxu2 %vm2513_vm10, %v3967_v0  ;;  %v3864_v0 = vpop.f32.mrf.mxu0  ;;  %v4268_v1 = vpop.permute.xlu2 %4267 }
 0x7f0   : > { %v3970_v19 = vpop.f32.mrf.mxu1 }
 0x7f1   : > { %4857 = vmatmul.msk.f32.gmra.mxu2 %vm2513_vm10, %v3970_v19 }
 0x7fc   : > { %v4038_v6 = vpop.f32.mrf.mxu2 }
 0x7fd   : > { %v4086_v45 = vadd.f32 %v4038_v6, %v3844_v51  ;;  %v4258_v51 = vpop.permute.xlu0 %4257 }
 0x7ff   : > { %v4198_v16 = vmul.f32 %v4121_v35, %v4086_v45  ;;  %v3754_v45 = vpop.f32.mrf.mxu3 }
 0x801   : > { %v4310_v3 = vadd.f32 %v4233_v23, %v4198_v16  ;;  %v3862_v16 = vadd.f32 %v3861_v18, %v3748_v10  ;;  %v3867_v23 = vpop.f32.mrf.mxu0  ;;  %v4278_v18 = vpop.permute.xlu1 %4277 }
 0x803   : > { %vm4326_vm11 = vcmp.ge.f32.partialorder %v4310_v3, 0.0  ;;  %v4342_v55 = vmul.f32 0.1, %v4310_v3 }
 0x804   : > { %v4041_v31 = vpop.f32.mrf.mxu2 }
 0x805   : > { %v4358_v60 = vsel %vm4326_vm11, %v4310_v3, %v4342_v55  ;;  %v4087_v57 = vadd.f32 %v4041_v31, %v3847_v37 }
 0x806   : > { %4374 = vst.msk [vmem:[%s7100_s30] sm:$0xff] %vm2513_vm10, %v4358_v60  ;;  %v3865_v60 = vadd.f32 %v3864_v0, %v3751_v58  ;;  %v4283_v58 = vpop.permute.xlu2 %4282 }
 0x807   : > { %v4199_v11 = vmul.f32 %v4126_v53, %v4087_v57  ;;  %v3757_v57 = vpop.f32.mrf.mxu3 }
 0x809   : > { %v4311_v33 = vadd.f32 %v4238_v22, %v4199_v11 }
 0x80b   : > { %vm4327_vm12 = vcmp.ge.f32.partialorder %v4311_v33, 0.0  ;;  %v4343_v15 = vmul.f32 0.1, %v4311_v33 }
 0x80c   : > { %v4044_v26 = vpop.f32.mrf.mxu2 }
 0x80d   : > { %v4359_v36 = vsel %vm4327_vm12, %v4311_v33, %v4343_v15  ;;  %v4088_v8 = vadd.f32 %v4044_v26, %v3850_v43  ;;  %v3870_v43 = vpop.f32.mrf.mxu0 }
 0x80e   : > { %4375 = vst.msk [vmem:[%s7100_s30 + $0x8] sm:$0xff] %vm2513_vm10, %v4359_v36  ;;  %v3868_v36 = vadd.f32 %v3867_v23, %v3754_v45 }
 0x80f   : > { %v4200_v13 = vmul.f32 %v4131_v2, %v4088_v8 }
 0x811   : > { %v4312_v27 = vadd.f32 %v4243_v17, %v4200_v13  ;;  %v3760_v17 = vpop.f32.mrf.mxu3 }
 0x813   : > { %vm4328_vm13 = vcmp.ge.f32.partialorder %v4312_v27, 0.0  ;;  %v4344_v39 = vmul.f32 0.1, %v4312_v27 }
 0x814   : > { %v4047_v47 = vpop.f32.mrf.mxu2 }
 0x815   : > { %v4360_v49 = vsel %vm4328_vm13, %v4312_v27, %v4344_v39  ;;  %v4089_v46 = vadd.f32 %v4047_v47, %v3853_v34  ;;  %v4273_v34 = vpop.permute.xlu0 %4272  ;;  %v3873_v39 = vpop.f32.mrf.mxu0 }
 0x816   : > { %4376 = vst.msk [vmem:[%s7100_s30 + $0x10] sm:$0xff] %vm2513_vm10, %v4360_v49  ;;  %v3871_v49 = vadd.f32 %v3870_v43, %v3757_v57 }
 0x817   : > { %v4201_v42 = vmul.f32 %v7071_v50, %v4089_v46 }
 0x819   : > { %v4313_v53 = vadd.f32 %v4248_v20, %v4201_v42 }
 0x81b   : > { %vm4329_vm14 = vcmp.ge.f32.partialorder %v4313_v53, 0.0  ;;  %v4345_v35 = vmul.f32 0.1, %v4313_v53 }
 0x81c   : > { %v4050_v2 = vpop.f32.mrf.mxu2 }
 0x81d   : > { %v4361_v38 = vsel %vm4329_vm14, %v4313_v53, %v4345_v35  ;;  %v4090_v54 = vadd.f32 %v4050_v2, %v3856_v41  ;;  %v3763_v53 = vpop.f32.mrf.mxu3  ;;  %v3876_v35 = vpop.f32.mrf.mxu0  ;;  %v3874_v2 = vadd.f32 %v3873_v39, %v3760_v17 }
 0x81e   : > { %4377 = vst.msk [vmem:[%s7100_s30 + $0x18] sm:$0xff] %vm2513_vm10, %v4361_v38 }
 0x81f   : > { %v4202_v44 = vmul.f32 %v7068_v61, %v4090_v54 }
 0x821   : > { %v4314_v7 = vadd.f32 %v4253_v14, %v4202_v44 }
 0x823   : > { %vm4330_vm15 = vcmp.ge.f32.partialorder %v4314_v7, 0.0  ;;  %v4346_v50 = vmul.f32 0.1, %v4314_v7 }
 0x824   : > { %v4053_v9 = vpop.f32.mrf.mxu2 }
 0x825   : > { %v4362_v19 = vsel %vm4330_vm15, %v4314_v7, %v4346_v50  ;;  %v4091_v25 = vadd.f32 %v4053_v9, %v3859_v28  ;;  %v3766_v0 = vpop.f32.mrf.mxu3  ;;  %v3877_v28 = vadd.f32 %v3876_v35, %v3763_v53  ;;  %v3879_v50 = vpop.f32.mrf.mxu0 }
 0x826   : > { %4378 = vst.msk [vmem:[%s7100_s30 + $0x20] sm:$0xff] %vm2513_vm10, %v4362_v19  ;;  %v3880_v45 = vadd.f32 %v3879_v50, %v3766_v0 }
 0x827   : > { %v4203_v40 = vmul.f32 %v7073_v4, %v4091_v25 }
 0x829   : > { %v4315_v6 = vadd.f32 %v4258_v51, %v4203_v40  ;;  %v4288_v51 = vpop.permute.xlu0 %4287 }
 0x82b   : > { %vm4331_vm0 = vcmp.ge.f32.partialorder %v4315_v6, 0.0  ;;  %v4347_v61 = vmul.f32 0.1, %v4315_v6 }
 0x82c   : > { %v4056_v3 = vpop.f32.mrf.mxu2 }
 0x82d   : > { %v4363_v5 = vsel %vm4331_vm0, %v4315_v6, %v4347_v61  ;;  %v4092_v37 = vadd.f32 %v4056_v3, %v3862_v16  ;;  %v3769_v16 = vpop.f32.mrf.mxu3 }
 0x82e   : > { %4379 = vst.msk [vmem:[%s7100_s30 + $0x28] sm:$0xff] %vm2513_vm10, %v4363_v5  ;;  %v3882_v5 = vpop.f32.mrf.mxu0 }
 0x82f   : > { %v4204_v55 = vmul.f32 %v7078_v32, %v4092_v37 }
 0x831   : > { %v4316_v31 = vadd.f32 %v4263_v48, %v4204_v55  ;;  %v4293_v55 = vpop.permute.xlu1 %4292 }
 0x833   : > { %vm4332_vm2 = vcmp.ge.f32.partialorder %v4316_v31, 0.0  ;;  %v4348_v4 = vmul.f32 0.1, %v4316_v31 }
 0x834   : > { %v4059_v11 = vpop.f32.mrf.mxu2 }
 0x835   : > { %v4364_v22 = vsel %vm4332_vm2, %v4316_v31, %v4348_v4  ;;  %v4093_v33 = vadd.f32 %v4059_v11, %v3865_v60  ;;  %v3883_v31 = vadd.f32 %v3882_v5, %v3769_v16  ;;  %v3772_v11 = vpop.f32.mrf.mxu3 }
 0x836   : > { %4380 = vst.msk [vmem:[%s7100_s30 + $0x30] sm:$0xff] %vm2513_vm10, %v4364_v22  ;;  %v3885_v43 = vpop.f32.mrf.mxu0 }
 0x837   : > { %v4205_v15 = vmul.f32 %v7076_v62, %v4093_v33  ;;  %v4298_v33 = vpop.permute.xlu2 %4297 }
 0x839   : > { %v4317_v26 = vadd.f32 %v4268_v1, %v4205_v15  ;;  %v3886_v1 = vadd.f32 %v3885_v43, %v3772_v11 }
 0x83b   : > { %vm4333_vm3 = vcmp.ge.f32.partialorder %v4317_v26, 0.0  ;;  %v4349_v32 = vmul.f32 0.1, %v4317_v26 }
 0x83c   : > { %v4062_v8 = vpop.f32.mrf.mxu2 }
 0x83d   : > { %v4365_v56 = vsel %vm4333_vm3, %v4317_v26, %v4349_v32  ;;  %v4094_v13 = vadd.f32 %v4062_v8, %v3868_v36 }
 0x83e   : > { %4381 = vst.msk [vmem:[%s7100_s30 + $0x38] sm:$0xff] %vm2513_vm10, %v4365_v56  ;;  %v4303_v56 = vpop.permute.xlu0 %4302 }
 0x83f   : > { %v4206_v27 = vmul.f32 %v7081_v63, %v4094_v13  ;;  %v3775_v13 = vpop.f32.mrf.mxu3 }
 0x841   : > { %v4318_v47 = vadd.f32 %v4273_v34, %v4206_v27  ;;  %v3888_v27 = vpop.f32.mrf.mxu0 }
 0x843   : > { %vm4334_vm4 = vcmp.ge.f32.partialorder %v4318_v47, 0.0  ;;  %v4350_v62 = vmul.f32 0.1, %v4318_v47 }
 0x844   : > { %v4065_v46 = vpop.f32.mrf.mxu2 }
 0x845   : > { %v4366_v10 = vsel %vm4334_vm4, %v4318_v47, %v4350_v62  ;;  %v4095_v42 = vadd.f32 %v4065_v46, %v3871_v49  ;;  %v4308_v46 = vpop.permute.xlu1 %4307 }
 0x846   : > { %4382 = vst.msk [vmem:[%s7100_s30 + $0x40] sm:$0xff] %vm2513_vm10, %v4366_v10 }
 0x847   : > { %v4207_v20 = vmul.f32 %v7086_v52, %v4095_v42 }
 0x849   : > { %v4319_v41 = vadd.f32 %v4278_v18, %v4207_v20 }
 0x84b   : > { %vm4335_vm5 = vcmp.ge.f32.partialorder %v4319_v41, 0.0  ;;  %v4351_v63 = vmul.f32 0.1, %v4319_v41 }
 0x84c   : > { %v4068_v38 = vpop.f32.mrf.mxu2 }
 0x84d   : > { %v4367_v54 = vsel %vm4335_vm5, %v4319_v41, %v4351_v63  ;;  %v4096_v44 = vadd.f32 %v4068_v38, %v3874_v2 }
 0x84e   : > { %4383 = vst.msk [vmem:[%s7100_s30 + $0x48] sm:$0xff] %vm2513_vm10, %v4367_v54 }
 0x84f   : > { %v4208_v14 = vmul.f32 %v7083_v29, %v4096_v44 }
 0x851   : > { %v4320_v7 = vadd.f32 %v4283_v58, %v4208_v14 }
 0x853   : > { %vm4336_vm6 = vcmp.ge.f32.partialorder %v4320_v7, 0.0  ;;  %v4352_v52 = vmul.f32 0.1, %v4320_v7 }
 0x854   : > { %v4071_v9 = vpop.f32.mrf.mxu2 }
 0x855   : > { %v4368_v19 = vsel %vm4336_vm6, %v4320_v7, %v4352_v52  ;;  %v4097_v25 = vadd.f32 %v4071_v9, %v3877_v28 }
 0x856   : > { %4384 = vst.msk [vmem:[%s7100_s30 + $0x50] sm:$0xff] %vm2513_vm10, %v4368_v19 }
 0x857   : > { %v4209_v40 = vmul.f32 %v7088_v30, %v4097_v25 }
 0x859   : > { %v4321_v6 = vadd.f32 %v4288_v51, %v4209_v40 }
 0x85b   : > { %vm4337_vm7 = vcmp.ge.f32.partialorder %v4321_v6, 0.0  ;;  %v4353_v29 = vmul.f32 0.1, %v4321_v6 }
 0x85c   : > { %v4074_v61 = vpop.f32.mrf.mxu2 }
 0x85d   : > { %v4369_v23 = vsel %vm4337_vm7, %v4321_v6, %v4353_v29  ;;  %v4098_v3 = vadd.f32 %v4074_v61, %v3880_v45 }
 0x85e   : > { %4385 = vst.msk [vmem:[%s7100_s30 + $0x58] sm:$0xff] %vm2513_vm10, %v4369_v23 }
 0x85f   : > { %v4210_v37 = vmul.f32 %v7092_v12, %v4098_v3 }
 0x861   : > { %v4322_v48 = vadd.f32 %v4293_v55, %v4210_v37 }
 0x863   : > { %vm4338_vm8 = vcmp.ge.f32.partialorder %v4322_v48, 0.0  ;;  %v4354_v30 = vmul.f32 0.1, %v4322_v48 }
 0x864   : > { %v4077_v60 = vpop.f32.mrf.mxu2 }
 0x865   : > { %v4370_v4 = vsel %vm4338_vm8, %v4322_v48, %v4354_v30  ;;  %v4099_v57 = vadd.f32 %v4077_v60, %v3883_v31 }
 0x866   : > { %4386 = vst.msk [vmem:[%s7100_s30 + $0x60] sm:$0xff] %vm2513_vm10, %v4370_v4 }
 0x867   : > { %v4211_v22 = vmul.f32 %v7090_v21, %v4099_v57  ;;  %v3889_v21 = vadd.f32 %v3888_v27, %v3775_v13 }
 0x869   : > { %v4323_v15 = vadd.f32 %v4298_v33, %v4211_v22 }
 0x86b   : > { %vm4339_vm9 = vcmp.ge.f32.partialorder %v4323_v15, 0.0  ;;  %v4355_v12 = vmul.f32 0.1, %v4323_v15 }
 0x86c   : > { %v4080_v26 = vpop.f32.mrf.mxu2 }
 0x86d   : > { %v4371_v36 = vsel %vm4339_vm9, %v4323_v15, %v4355_v12  ;;  %v4100_v32 = vadd.f32 %v4080_v26, %v3886_v1 }
 0x86e   : > { %4387 = vst.msk [vmem:[%s7100_s30 + $0x68] sm:$0xff] %vm2513_vm10, %v4371_v36 }
 0x86f   : > { %v4212_v8 = vmul.f32 %v7094_v24, %v4100_v32 }
 0x871   : > { %v4324_v17 = vadd.f32 %v4303_v56, %v4212_v8 }
 0x873   : > { %vm4340_vm1 = vcmp.ge.f32.partialorder %v4324_v17, 0.0  ;;  %v4356_v34 = vmul.f32 0.1, %v4324_v17 }
 0x874   : > { %v4083_v39 = vpop.f32.mrf.mxu2 }
 0x875   : > { %v4372_v47 = vsel %vm4340_vm1, %v4324_v17, %v4356_v34  ;;  %v4101_v49 = vadd.f32 %v4083_v39, %v3889_v21 }
 0x876   : > { %4388 = vst.msk [vmem:[%s7100_s30 + $0x70] sm:$0xff] %vm2513_vm10, %v4372_v47 }
 0x877   : > { %v4213_v62 = vmul.f32 %v7102_v59, %v4101_v49 }
 0x879   : > { %v4325_v10 = vadd.f32 %v4308_v46, %v4213_v62 }
 0x87b   : > { %vm4341_vm11 = vcmp.ge.f32.partialorder %v4325_v10, 0.0  ;;  %v4357_v42 = vmul.f32 0.1, %v4325_v10 }
 0x87d   : > { %v4373_v24 = vsel %vm4341_vm11, %v4325_v10, %v4357_v42 }
 0x87e   : > { %4389 = vst.msk [vmem:[%s7100_s30 + $0x78] sm:$0xff] %vm2513_vm10, %v4373_v24 }
 0x87f PF: > { %s32_s3 = sadd.s32 1, %s4914_s3  }
 0x880   : > { %p29_p4 = scmp.ge.s32.totalorder %s32_s3, 4  }
 0x882   :  { %31 = sbr.rel (!%p29_p4) target bundleno = 8 (0x8), region = 154 }

</bundles_post_ra>
